<compile_context>
chip_gen: v7x
topology: tpu7x:2x2x1
jax: 0.10.0
libtpu: 0.0.40
codegen_flags: <defaults>
</compile_context>

<pallas_src>
import numpy as np
import jax
import jax.numpy as jnp
from jax.experimental import pallas as pl
from jax.experimental.pallas import tpu as pltpu

# ---------------- model hyper-parameters (small, consistent with the module) ----------
CLASS_NUM  = 4
IMAGE_SIZE = 16            # power of two so the (k=4,s=2,p=1) stack ends at 1x1 spatial
CONV_DIM   = 64            # attn2 is hard-coded to 64 channels in the PyTorch module
Z_DIM      = 16
ALPHA      = 0.3
NEG_SLOPE  = 0.1           # LeakyReLU(0.1)
KSIZE      = 4
GENE_NUM   = IMAGE_SIZE * IMAGE_SIZE
REPEAT_NUM = int(np.log2(IMAGE_SIZE))   # 4 conv layers: 16 -> 8 -> 4 -> 2 -> 1
LANE       = 128


# ---------------------------------- Pallas kernel --------------------------------------
def _softmax_last(x, approx=True):
    m = jnp.max(x, axis=-1, keepdims=True)
    e = jnp.exp(x - m)
    s = jnp.sum(e, axis=-1, keepdims=True)
    if approx:
        return e * pl.reciprocal(s, approx=True)   # EUP vrcp, off the VALU/issue path
    return e / s


def _disc_kernel(x2d_ref, xflat_ref, topic_ref,
                 sel1_ref, w1_ref, b1_ref,
                 sel2_ref, w2_hbm_ref, b2_ref,
                 sel3_ref, w3_ref, b3_ref,
                 sel4_ref, w4_ref, b4_ref,
                 wlast_ref, blast_ref, type_ref,
                 out_ref, w2_vmem, w2_sem):
    """Entire Discriminator forward, fully VMEM-resident and batched.

    Activations are (B*H, W*C) slabs with channels in the lane dim.  A stride-2 4x4 conv
    layer is:  concat_kh(SelBD_kh @ plane) @ Wcat + bias  -> LeakyReLU(0.1), i.e. one
    Toeplitz MXU matmul per layer (kh folded into K, batch folded into M).
    """
    # Prefetch the largest weight (layer-2 Toeplitz) behind layer-1 compute.
    w2_copy = pltpu.make_async_copy(w2_hbm_ref, w2_vmem, w2_sem)
    w2_copy.start()

    def conv_layer(plane, sel_ref, w, bias):
        # sel_ref: (KSIZE, B*OH, B*H) block-diag-over-batch stride-2 row selection
        # w      : (KSIZE * plane_width, OW*Cout) kh-stacked block-Toeplitz taps (bf16)
        # bias   : (1, OW*Cout)
        rows = [jnp.dot(sel_ref[kh], plane, preferred_element_type=jnp.float32)
                for kh in range(KSIZE)]
        lhs = jnp.concatenate(rows, axis=-1)             # (B*OH, KSIZE*plane_width)
        y = jnp.dot(lhs, w, preferred_element_type=jnp.float32) + bias
        return jnp.where(y >= 0.0, y, NEG_SLOPE * y)     # LeakyReLU(0.1)

    # ---- l1: 4 x [SpectralNorm(Conv2d(k=4, s=2, p=1)) + LeakyReLU(0.1)] ---------------
    plane = conv_layer(x2d_ref[...], sel1_ref, w1_ref[...], b1_ref[...])   # (B*8, 512)
    w2_copy.wait()
    plane = conv_layer(plane, sel2_ref, w2_vmem[...], b2_ref[...])         # (B*4, 256)
    plane = conv_layer(plane, sel3_ref, w3_ref[...], b3_ref[...])          # (B*2, 128)
    feat  = conv_layer(plane, sel4_ref, w4_ref[...], b4_ref[...])          # (B,   64)

    # ---- head (fully batched: 3 matmuls, 3 softmaxes, one store) ----------------------
    topic_dis = _softmax_last(
        jnp.dot(xflat_ref[...], topic_ref[...], preferred_element_type=jnp.float32))
    # Self_Attn at 1x1 spatial: softmax over a single key == 1 (query/key are dead), so
    # attn_out = gamma * value_conv(feat) + feat; that and the `last` 1x1 conv were folded
    # into (w_last, b_last) at prep time.  nn.Softmax() on the 4D output -> channel dim.
    last_sm = _softmax_last(
        jnp.dot(feat, wlast_ref[...], preferred_element_type=jnp.float32) + blast_ref[...])
    emerge = (1.0 - ALPHA) * last_sm + ALPHA * topic_dis
    out_ref[...] = _softmax_last(
        jnp.dot(emerge, type_ref[...], preferred_element_type=jnp.float32), approx=False)


# ---------------------------------- JAX wrapper -----------------------------------------
def discriminator_forward(x, prepped):
    """x: (B, 1, IMAGE_SIZE, IMAGE_SIZE) f32 -> (out_dis, topic_embeding, type_embeding)."""
    B = x.shape[0]
    H = IMAGE_SIZE
    x2d = x.reshape(B * H, H)                         # conv-stack view (Cin == 1)
    # zero-pad layer-1 plane columns so per-kh blocks concat at 128-aligned lane offsets
    pad_cols = prepped["layers"][0]["wbig"].shape[0] // KSIZE - H
    x2d = jnp.pad(x2d, ((0, 0), (0, pad_cols)))       # (B*H, 128)
    x_flat = x.reshape(B, H * H)                      # topic-embedding view

    args = [x2d, x_flat, prepped["topic"]]
    w2_arg_idx = -1
    for li, layer in enumerate(prepped["layers"]):
        args.append(layer["sel"])
        if li == 1:
            w2_arg_idx = len(args)                    # layer-2 Toeplitz weight position
        args.append(layer["wbig"])
        args.append(layer["bias"])
    args += [prepped["w_last"], prepped["b_last"], prepped["type"]]

    in_specs = [pl.BlockSpec(memory_space=pltpu.MemorySpace.VMEM) for _ in args]
    # Layer-2 Toeplitz weight (largest single DMA) stays in HBM; the kernel copies it into
    # a VMEM scratch asynchronously so the transfer hides behind layer-1 compute.
    in_specs[w2_arg_idx] = pl.BlockSpec(memory_space=pl.ANY)
    w2 = prepped["layers"][1]["wbig"]

    # Single fused, grid-less kernel (total on-chip footprint ~3 MiB -> fits every gen,
    # incl. v7x's 64 MiB VMEM).  For B >= ~8 on v7x, add a leading grid axis over B marked
    # "parallel" to split batches across the two TensorCores; at B=2 (and on v5e/v6e's
    # single TC) the grid would only add per-step overhead.
    out_dis = pl.pallas_call(
        _disc_kernel,
        out_shape=jax.ShapeDtypeStruct((B, CLASS_NUM + 1), jnp.float32),
        in_specs=in_specs,
        out_specs=pl.BlockSpec(memory_space=pltpu.MemorySpace.VMEM),
        scratch_shapes=[pltpu.VMEM(w2.shape, w2.dtype),
                        pltpu.SemaphoreType.DMA(())],
    )(*args)
    return out_dis, prepped["topic"], prepped["type"]


# ------------------------------ one-time host-side prep ---------------------------------
def spectral_sigma_np(w2d, iters=30):
    """Largest singular value via converged power iteration (SpectralNorm's sigma)."""
    w2d = np.asarray(w2d, np.float64)
    u = np.ones((w2d.shape[0],), np.float64)
    u /= np.linalg.norm(u) + 1e-12
    v = None
    for _ in range(iters):
        v = w2d.T @ u
        v /= np.linalg.norm(v) + 1e-12
        u = w2d @ v
        u /= np.linalg.norm(u) + 1e-12
    return float(u @ (w2d @ v))


def prepare_params(p, batch_size):
    """Spectral norm + conv->(block-diag Sel, kh-stacked Toeplitz) operands + head folding.

    Runs ONCE on the host.  The Toeplitz weights are stored in bf16 (halves the one-shot
    HBM->VMEM DMA, the dominant cost of this tiny kernel); everything the kernel
    accumulates stays f32.
    """
    B = int(batch_size)
    w_sn_list = []
    layers = []
    H = IMAGE_SIZE
    for (w, b) in p["l1"]:
        w_np = np.asarray(w, np.float32)
        b_np = np.asarray(b, np.float32)
        sigma = spectral_sigma_np(w_np.reshape(w_np.shape[0], -1))
        w_sn = (w_np / sigma).astype(np.float32)
        w_sn_list.append((w_sn, b_np))

        cout, cin, kh_sz, kw_sz = w_sn.shape
        OH = H // 2                                          # square, OW == OH
        in_w = H * cin                                       # plane column count (W*Cin)
        in_w_pad = int(np.ceil(in_w / float(LANE)) * LANE)   # lane-align each kh block

        # block-diagonal (over batch) stride-2 row selection, one slice per kh tap
        sel = np.zeros((kh_sz, B * OH, B * H), np.float32)
        # kh-stacked block-Toeplitz tap weights -> ONE matmul per layer
        wbig = np.zeros((kh_sz * in_w_pad, OH * cout), np.float32)
        for kh in range(kh_sz):
            for bb in range(B):
                for oh in range(OH):
                    h = 2 * oh + kh - 1
                    if 0 <= h < H:
                        sel[kh, bb * OH + oh, bb * H + h] = 1.0
            for ow in range(OH):
                for kw in range(kw_sz):
                    wcol = 2 * ow + kw - 1
                    if 0 <= wcol < H:
                        r0 = kh * in_w_pad + wcol * cin
                        wbig[r0:r0 + cin, ow * cout:(ow + 1) * cout] = w_sn[:, :, kh, kw].T
        bias_row = np.tile(b_np, OH).reshape(1, OH * cout)
        layers.append({"sel": jnp.asarray(sel),
                       "wbig": jnp.asarray(wbig, dtype=jnp.bfloat16),
                       "bias": jnp.asarray(bias_row)})
        H = OH

    # Fold Self_Attn (N==1 -> attention == 1, gamma residual) and `last` 1x1 conv:
    #   last_lin = feat @ (Wl^T + gamma * Wv^T @ Wl^T) + (bl + gamma * bv @ Wl^T)
    gamma = float(np.asarray(p["gamma"]).reshape(-1)[0])
    wv_t = np.asarray(p["wv"], np.float32).reshape(CONV_DIM, CONV_DIM).T
    bv = np.asarray(p["bv"], np.float32)
    wl_t = np.asarray(p["wl"], np.float32).reshape(Z_DIM, CONV_DIM).T
    bl = np.asarray(p["bl"], np.float32)
    w_eff = wl_t + gamma * (wv_t @ wl_t)                 # (64, 16)
    b_eff = (bl + gamma * (bv @ wl_t)).reshape(1, -1)    # (1, 16)

    prepped = {
        "layers": layers,
        "w_last": jnp.asarray(w_eff),
        "b_last": jnp.asarray(b_eff),
        "topic": jnp.asarray(np.asarray(p["topic_embeding"], np.float32)),
        "type": jnp.asarray(np.asarray(p["type_embeding"], np.float32)),
    }
    return w_sn_list, prepped


# ---------------------------------- parameter init --------------------------------------
def init_params(key):
    ks = list(jax.random.split(key, 16))
    p = {}

    def conv_init(k, cout, cin, kh, kw):
        k1, k2 = jax.random.split(k)
        fan_in = cin * kh * kw
        bound = 1.0 / np.sqrt(fan_in)
        w = jax.random.uniform(k1, (cout, cin, kh, kw), jnp.float32, -bound, bound)
        b = jax.random.uniform(k2, (cout,), jnp.float32, -bound, bound)
        return w, b

    convs = []
    cin = 1
    for _ in range(REPEAT_NUM):
        convs.append(conv_init(ks.pop(), CONV_DIM, cin, KSIZE, KSIZE))
        cin = CONV_DIM
    p["l1"] = convs

    # Self_Attn(64) 1x1 convs (query/key are dead on a 1x1 map; kept for the reference)
    p["wq"], p["bq"] = conv_init(ks.pop(), CONV_DIM // 8, CONV_DIM, 1, 1)
    p["wk"], p["bk"] = conv_init(ks.pop(), CONV_DIM // 8, CONV_DIM, 1, 1)
    p["wv"], p["bv"] = conv_init(ks.pop(), CONV_DIM, CONV_DIM, 1, 1)
    p["gamma"] = jnp.zeros((1,), jnp.float32)

    # last: Conv2d(64, z_dim, 1)
    p["wl"], p["bl"] = conv_init(ks.pop(), Z_DIM, CONV_DIM, 1, 1)

    # embeddings (torch.randn)
    p["topic_embeding"] = jax.random.normal(ks.pop(), (GENE_NUM, Z_DIM), jnp.float32)
    p["type_embeding"] = jax.random.normal(ks.pop(), (Z_DIM, CLASS_NUM + 1), jnp.float32)
    return p


# ------------------------- NumPy reference (straight port of torch) ---------------------
def _softmax_np(z, axis=-1):
    z = z - z.max(axis=axis, keepdims=True)
    e = np.exp(z)
    return e / e.sum(axis=axis, keepdims=True)


def reference_forward_np(x, p, w_sn_list):
    x = np.asarray(x, np.float64)
    B, C, H, W = x.shape
    topic = np.asarray(p["topic_embeding"], np.float64)
    type_e = np.asarray(p["type_embeding"], np.float64)
    x_emb = x.reshape(B, 1, H * W)
    topic_dis = _softmax_np(x_emb @ topic)                        # (B, 1, Z)

    out = x
    for (w, b) in w_sn_list:                                      # spectral-normalized weights
        w = np.asarray(w, np.float64)
        b = np.asarray(b, np.float64)
        Bq, Ci, Hh, Ww = out.shape
        OH, OW = Hh // 2, Ww // 2
        xp = np.pad(out, ((0, 0), (0, 0), (1, 1), (1, 1)))
        y = np.zeros((Bq, w.shape[0], OH, OW))
        for kh in range(KSIZE):
            for kw in range(KSIZE):
                patch = xp[:, :, kh:kh + 2 * OH:2, kw:kw + 2 * OW:2]
                y += np.einsum("bchw,oc->bohw", patch, w[:, :, kh, kw])
        y += b.reshape(1, -1, 1, 1)
        out = np.where(y >= 0.0, y, NEG_SLOPE * y)

    def conv1x1(z, wc, bc):
        w2 = np.asarray(wc, np.float64).reshape(wc.shape[0], wc.shape[1])
        return np.einsum("bchw,oc->bohw", z, w2) + np.asarray(bc, np.float64).reshape(1, -1, 1, 1)

    feat = out                                                    # (B, 64, 1, 1)
    q = conv1x1(feat, p["wq"], p["bq"]).reshape(B, -1, 1).transpose(0, 2, 1)
    k = conv1x1(feat, p["wk"], p["bk"]).reshape(B, -1, 1)
    energy = np.matmul(q, k)                                      # (B, 1, 1)
    attention = _softmax_np(energy)                               # == 1
    v = conv1x1(feat, p["wv"], p["bv"]).reshape(B, -1, 1)
    attn = np.matmul(v, attention.transpose(0, 2, 1)).reshape(B, -1, 1, 1)
    gamma = float(np.asarray(p["gamma"]).reshape(-1)[0])
    attn_out = gamma * attn + feat

    last = conv1x1(attn_out, p["wl"], p["bl"])                    # (B, Z, 1, 1)
    last = _softmax_np(last, axis=1)                              # nn.Softmax() -> dim=1 on 4D
    out2 = last.reshape(B, 1, Z_DIM)
    emerge = (1.0 - ALPHA) * out2 + ALPHA * topic_dis
    out_dis = _softmax_np(np.matmul(emerge, type_e))
    return out_dis.reshape(B, CLASS_NUM + 1)


# --------------------------------------- main -------------------------------------------
if __name__ == "__main__":
    key = jax.random.PRNGKey(0)
    k_param, k_x = jax.random.split(key)
    params = init_params(k_param)
    x = jax.random.normal(k_x, (2, 1, IMAGE_SIZE, IMAGE_SIZE), jnp.float32)

    # one-time host-side prep (spectral norm, conv operands, head folding)
    w_sn_list, prepped = prepare_params(params, batch_size=x.shape[0])

    fwd = jax.jit(discriminator_forward)
    out_dis, topic_emb, type_emb = fwd(x, prepped)
    jax.block_until_ready(out_dis)

    assert out_dis.shape == (2, CLASS_NUM + 1)
    assert topic_emb.shape == (GENE_NUM, Z_DIM)
    assert type_emb.shape == (Z_DIM, CLASS_NUM + 1)
    row_sums = np.asarray(jnp.sum(out_dis, axis=-1))
    assert np.allclose(row_sums, 1.0, atol=1e-5)

    # numerical check vs. a straight NumPy port of the PyTorch forward.  Tolerance 1e-2
    # gates the bf16 conv-weight cast (error observed/expected at the 1e-3 level or less);
    # structural/indexing bugs would show up at O(0.1-1).
    ref = reference_forward_np(np.asarray(x), params, w_sn_list)
    err = float(np.max(np.abs(np.asarray(out_dis, dtype=np.float64) - ref)))
    assert err < 1e-2, f"mismatch vs reference: {err}"
    print("KERNEL_OK")
</pallas_src>

<mosaic_0001>
module attributes {stable_mosaic.version = 11 : i64} {
  func.func @_disc_kernel(%arg0: memref<32x128xf32, #tpu.memory_space<vmem>>, %arg1: memref<2x256xf32, #tpu.memory_space<vmem>>, %arg2: memref<256x16xf32, #tpu.memory_space<vmem>>, %arg3: memref<4x16x32xf32, #tpu.memory_space<vmem>>, %arg4: memref<512x512xbf16, #tpu.memory_space<vmem>>, %arg5: memref<1x512xf32, #tpu.memory_space<vmem>>, %arg6: memref<4x8x16xf32, #tpu.memory_space<vmem>>, %arg7: memref<2048x256xbf16, #tpu.memory_space<any>>, %arg8: memref<1x256xf32, #tpu.memory_space<vmem>>, %arg9: memref<4x4x8xf32, #tpu.memory_space<vmem>>, %arg10: memref<1024x128xbf16, #tpu.memory_space<vmem>>, %arg11: memref<1x128xf32, #tpu.memory_space<vmem>>, %arg12: memref<4x2x4xf32, #tpu.memory_space<vmem>>, %arg13: memref<512x64xbf16, #tpu.memory_space<vmem>>, %arg14: memref<1x64xf32, #tpu.memory_space<vmem>>, %arg15: memref<64x16xf32, #tpu.memory_space<vmem>>, %arg16: memref<1x16xf32, #tpu.memory_space<vmem>>, %arg17: memref<16x5xf32, #tpu.memory_space<vmem>>, %arg18: memref<2x5xf32, #tpu.memory_space<vmem>>, %arg19: memref<2048x256xbf16, #tpu.memory_space<vmem>>, %arg20: memref<!tpu.dma_semaphore, #tpu.memory_space<semaphore_mem>>) attributes {dimension_semantics = [], scalar_prefetch = 0 : i64, scratch_operands = 2 : i64, tpu.core_type = #tpu.core_type<tc>} {
    tpu.enqueue_dma source(%arg7 : memref<2048x256xbf16, #tpu.memory_space<any>>) target(%arg19 : memref<2048x256xbf16, #tpu.memory_space<vmem>>) target_semaphore(%arg20 : memref<!tpu.dma_semaphore, #tpu.memory_space<semaphore_mem>>)
    %c0 = arith.constant 0 : index
    %c0_0 = arith.constant 0 : index
    %0 = vector.load %arg0[%c0, %c0_0] : memref<32x128xf32, #tpu.memory_space<vmem>>, vector<32x128xf32>
    %c0_1 = arith.constant 0 : index
    %c0_2 = arith.constant 0 : index
    %1 = vector.load %arg4[%c0_1, %c0_2] : memref<512x512xbf16, #tpu.memory_space<vmem>>, vector<512x512xbf16>
    %c0_3 = arith.constant 0 : index
    %c0_4 = arith.constant 0 : index
    %2 = vector.load %arg5[%c0_3, %c0_4] : memref<1x512xf32, #tpu.memory_space<vmem>>, vector<1x512xf32>
    %c0_5 = arith.constant 0 : index
    %c0_6 = arith.constant 0 : index
    %c0_7 = arith.constant 0 : index
    %3 = vector.load %arg3[%c0_5, %c0_6, %c0_7] : memref<4x16x32xf32, #tpu.memory_space<vmem>>, vector<1x16x32xf32>
    %4 = vector.shape_cast %3 : vector<1x16x32xf32> to vector<16x32xf32>
    %cst = arith.constant dense<0.000000e+00> : vector<16x128xf32>
    %5 = tpu.matmul %4, %0, %cst {dimension_numbers = #tpu.dot_dimension_numbers<[1], [0], [0], [1], [0, 0, 1, 1], [], []>} : vector<16x32xf32>, vector<32x128xf32>, vector<16x128xf32> -> vector<16x128xf32>
    %c1 = arith.constant 1 : index
    %c0_8 = arith.constant 0 : index
    %c0_9 = arith.constant 0 : index
    %6 = vector.load %arg3[%c1, %c0_8, %c0_9] : memref<4x16x32xf32, #tpu.memory_space<vmem>>, vector<1x16x32xf32>
    %7 = vector.shape_cast %6 : vector<1x16x32xf32> to vector<16x32xf32>
    %cst_10 = arith.constant dense<0.000000e+00> : vector<16x128xf32>
    %8 = tpu.matmul %7, %0, %cst_10 {dimension_numbers = #tpu.dot_dimension_numbers<[1], [0], [0], [1], [0, 0, 1, 1], [], []>} : vector<16x32xf32>, vector<32x128xf32>, vector<16x128xf32> -> vector<16x128xf32>
    %c2 = arith.constant 2 : index
    %c0_11 = arith.constant 0 : index
    %c0_12 = arith.constant 0 : index
    %9 = vector.load %arg3[%c2, %c0_11, %c0_12] : memref<4x16x32xf32, #tpu.memory_space<vmem>>, vector<1x16x32xf32>
    %10 = vector.shape_cast %9 : vector<1x16x32xf32> to vector<16x32xf32>
    %cst_13 = arith.constant dense<0.000000e+00> : vector<16x128xf32>
    %11 = tpu.matmul %10, %0, %cst_13 {dimension_numbers = #tpu.dot_dimension_numbers<[1], [0], [0], [1], [0, 0, 1, 1], [], []>} : vector<16x32xf32>, vector<32x128xf32>, vector<16x128xf32> -> vector<16x128xf32>
    %c3 = arith.constant 3 : index
    %c0_14 = arith.constant 0 : index
    %c0_15 = arith.constant 0 : index
    %12 = vector.load %arg3[%c3, %c0_14, %c0_15] : memref<4x16x32xf32, #tpu.memory_space<vmem>>, vector<1x16x32xf32>
    %13 = vector.shape_cast %12 : vector<1x16x32xf32> to vector<16x32xf32>
    %cst_16 = arith.constant dense<0.000000e+00> : vector<16x128xf32>
    %14 = tpu.matmul %13, %0, %cst_16 {dimension_numbers = #tpu.dot_dimension_numbers<[1], [0], [0], [1], [0, 0, 1, 1], [], []>} : vector<16x32xf32>, vector<32x128xf32>, vector<16x128xf32> -> vector<16x128xf32>
    %15 = tpu.concatenate %5, %8, %11, %14 in 1 : vector<16x128xf32>, vector<16x128xf32>, vector<16x128xf32>, vector<16x128xf32> -> vector<16x512xf32>
    %cst_17 = arith.constant dense<0.000000e+00> : vector<16x512xf32>
    %16 = tpu.matmul %15, %1, %cst_17 {dimension_numbers = #tpu.dot_dimension_numbers<[1], [0], [0], [1], [0, 0, 1, 1], [], []>} : vector<16x512xf32>, vector<512x512xbf16>, vector<16x512xf32> -> vector<16x512xf32>
    %17 = vector.broadcast %2 : vector<1x512xf32> to vector<16x512xf32>
    %18 = arith.addf %16, %17 : vector<16x512xf32>
    %cst_18 = arith.constant 0.000000e+00 : f32
    %19 = vector.broadcast %cst_18 : f32 to vector<16x512xf32>
    %20 = arith.cmpf oge, %18, %19 : vector<16x512xf32>
    %cst_19 = arith.constant 1.000000e-01 : f32
    %21 = vector.broadcast %cst_19 : f32 to vector<16x512xf32>
    %22 = arith.mulf %21, %18 : vector<16x512xf32>
    %23 = arith.select %20, %18, %22 : vector<16x512xi1>, vector<16x512xf32>
    tpu.wait_dma2 semaphore(%arg20 : memref<!tpu.dma_semaphore, #tpu.memory_space<semaphore_mem>>) src(%arg7 : memref<2048x256xbf16, #tpu.memory_space<any>>) dst(%arg19 : memref<2048x256xbf16, #tpu.memory_space<vmem>>)
    %c0_20 = arith.constant 0 : index
    %c0_21 = arith.constant 0 : index
    %24 = vector.load %arg19[%c0_20, %c0_21] : memref<2048x256xbf16, #tpu.memory_space<vmem>>, vector<2048x256xbf16>
    %c0_22 = arith.constant 0 : index
    %c0_23 = arith.constant 0 : index
    %25 = vector.load %arg8[%c0_22, %c0_23] : memref<1x256xf32, #tpu.memory_space<vmem>>, vector<1x256xf32>
    %c0_24 = arith.constant 0 : index
    %c0_25 = arith.constant 0 : index
    %c0_26 = arith.constant 0 : index
    %26 = vector.load %arg6[%c0_24, %c0_25, %c0_26] : memref<4x8x16xf32, #tpu.memory_space<vmem>>, vector<1x8x16xf32>
    %27 = vector.shape_cast %26 : vector<1x8x16xf32> to vector<8x16xf32>
    %cst_27 = arith.constant dense<0.000000e+00> : vector<8x512xf32>
    %28 = tpu.matmul %27, %23, %cst_27 {dimension_numbers = #tpu.dot_dimension_numbers<[1], [0], [0], [1], [0, 0, 1, 1], [], []>} : vector<8x16xf32>, vector<16x512xf32>, vector<8x512xf32> -> vector<8x512xf32>
    %c1_28 = arith.constant 1 : index
    %c0_29 = arith.constant 0 : index
    %c0_30 = arith.constant 0 : index
    %29 = vector.load %arg6[%c1_28, %c0_29, %c0_30] : memref<4x8x16xf32, #tpu.memory_space<vmem>>, vector<1x8x16xf32>
    %30 = vector.shape_cast %29 : vector<1x8x16xf32> to vector<8x16xf32>
    %cst_31 = arith.constant dense<0.000000e+00> : vector<8x512xf32>
    %31 = tpu.matmul %30, %23, %cst_31 {dimension_numbers = #tpu.dot_dimension_numbers<[1], [0], [0], [1], [0, 0, 1, 1], [], []>} : vector<8x16xf32>, vector<16x512xf32>, vector<8x512xf32> -> vector<8x512xf32>
    %c2_32 = arith.constant 2 : index
    %c0_33 = arith.constant 0 : index
    %c0_34 = arith.constant 0 : index
    %32 = vector.load %arg6[%c2_32, %c0_33, %c0_34] : memref<4x8x16xf32, #tpu.memory_space<vmem>>, vector<1x8x16xf32>
    %33 = vector.shape_cast %32 : vector<1x8x16xf32> to vector<8x16xf32>
    %cst_35 = arith.constant dense<0.000000e+00> : vector<8x512xf32>
    %34 = tpu.matmul %33, %23, %cst_35 {dimension_numbers = #tpu.dot_dimension_numbers<[1], [0], [0], [1], [0, 0, 1, 1], [], []>} : vector<8x16xf32>, vector<16x512xf32>, vector<8x512xf32> -> vector<8x512xf32>
    %c3_36 = arith.constant 3 : index
    %c0_37 = arith.constant 0 : index
    %c0_38 = arith.constant 0 : index
    %35 = vector.load %arg6[%c3_36, %c0_37, %c0_38] : memref<4x8x16xf32, #tpu.memory_space<vmem>>, vector<1x8x16xf32>
    %36 = vector.shape_cast %35 : vector<1x8x16xf32> to vector<8x16xf32>
    %cst_39 = arith.constant dense<0.000000e+00> : vector<8x512xf32>
    %37 = tpu.matmul %36, %23, %cst_39 {dimension_numbers = #tpu.dot_dimension_numbers<[1], [0], [0], [1], [0, 0, 1, 1], [], []>} : vector<8x16xf32>, vector<16x512xf32>, vector<8x512xf32> -> vector<8x512xf32>
    %38 = tpu.concatenate %28, %31, %34, %37 in 1 : vector<8x512xf32>, vector<8x512xf32>, vector<8x512xf32>, vector<8x512xf32> -> vector<8x2048xf32>
    %cst_40 = arith.constant dense<0.000000e+00> : vector<8x256xf32>
    %39 = tpu.matmul %38, %24, %cst_40 {dimension_numbers = #tpu.dot_dimension_numbers<[1], [0], [0], [1], [0, 0, 1, 1], [], []>} : vector<8x2048xf32>, vector<2048x256xbf16>, vector<8x256xf32> -> vector<8x256xf32>
    %40 = vector.broadcast %25 : vector<1x256xf32> to vector<8x256xf32>
    %41 = arith.addf %39, %40 : vector<8x256xf32>
    %cst_41 = arith.constant 0.000000e+00 : f32
    %42 = vector.broadcast %cst_41 : f32 to vector<8x256xf32>
    %43 = arith.cmpf oge, %41, %42 : vector<8x256xf32>
    %cst_42 = arith.constant 1.000000e-01 : f32
    %44 = vector.broadcast %cst_42 : f32 to vector<8x256xf32>
    %45 = arith.mulf %44, %41 : vector<8x256xf32>
    %46 = arith.select %43, %41, %45 : vector<8x256xi1>, vector<8x256xf32>
    %c0_43 = arith.constant 0 : index
    %c0_44 = arith.constant 0 : index
    %47 = vector.load %arg10[%c0_43, %c0_44] : memref<1024x128xbf16, #tpu.memory_space<vmem>>, vector<1024x128xbf16>
    %c0_45 = arith.constant 0 : index
    %c0_46 = arith.constant 0 : index
    %48 = vector.load %arg11[%c0_45, %c0_46] : memref<1x128xf32, #tpu.memory_space<vmem>>, vector<1x128xf32>
    %c0_47 = arith.constant 0 : index
    %c0_48 = arith.constant 0 : index
    %c0_49 = arith.constant 0 : index
    %49 = vector.load %arg9[%c0_47, %c0_48, %c0_49] : memref<4x4x8xf32, #tpu.memory_space<vmem>>, vector<1x4x8xf32>
    %50 = vector.shape_cast %49 : vector<1x4x8xf32> to vector<4x8xf32>
    %cst_50 = arith.constant dense<0.000000e+00> : vector<4x256xf32>
    %51 = tpu.matmul %50, %46, %cst_50 {dimension_numbers = #tpu.dot_dimension_numbers<[1], [0], [0], [1], [0, 0, 1, 1], [], []>} : vector<4x8xf32>, vector<8x256xf32>, vector<4x256xf32> -> vector<4x256xf32>
    %c1_51 = arith.constant 1 : index
    %c0_52 = arith.constant 0 : index
    %c0_53 = arith.constant 0 : index
    %52 = vector.load %arg9[%c1_51, %c0_52, %c0_53] : memref<4x4x8xf32, #tpu.memory_space<vmem>>, vector<1x4x8xf32>
    %53 = vector.shape_cast %52 : vector<1x4x8xf32> to vector<4x8xf32>
    %cst_54 = arith.constant dense<0.000000e+00> : vector<4x256xf32>
    %54 = tpu.matmul %53, %46, %cst_54 {dimension_numbers = #tpu.dot_dimension_numbers<[1], [0], [0], [1], [0, 0, 1, 1], [], []>} : vector<4x8xf32>, vector<8x256xf32>, vector<4x256xf32> -> vector<4x256xf32>
    %c2_55 = arith.constant 2 : index
    %c0_56 = arith.constant 0 : index
    %c0_57 = arith.constant 0 : index
    %55 = vector.load %arg9[%c2_55, %c0_56, %c0_57] : memref<4x4x8xf32, #tpu.memory_space<vmem>>, vector<1x4x8xf32>
    %56 = vector.shape_cast %55 : vector<1x4x8xf32> to vector<4x8xf32>
    %cst_58 = arith.constant dense<0.000000e+00> : vector<4x256xf32>
    %57 = tpu.matmul %56, %46, %cst_58 {dimension_numbers = #tpu.dot_dimension_numbers<[1], [0], [0], [1], [0, 0, 1, 1], [], []>} : vector<4x8xf32>, vector<8x256xf32>, vector<4x256xf32> -> vector<4x256xf32>
    %c3_59 = arith.constant 3 : index
    %c0_60 = arith.constant 0 : index
    %c0_61 = arith.constant 0 : index
    %58 = vector.load %arg9[%c3_59, %c0_60, %c0_61] : memref<4x4x8xf32, #tpu.memory_space<vmem>>, vector<1x4x8xf32>
    %59 = vector.shape_cast %58 : vector<1x4x8xf32> to vector<4x8xf32>
    %cst_62 = arith.constant dense<0.000000e+00> : vector<4x256xf32>
    %60 = tpu.matmul %59, %46, %cst_62 {dimension_numbers = #tpu.dot_dimension_numbers<[1], [0], [0], [1], [0, 0, 1, 1], [], []>} : vector<4x8xf32>, vector<8x256xf32>, vector<4x256xf32> -> vector<4x256xf32>
    %61 = tpu.concatenate %51, %54, %57, %60 in 1 : vector<4x256xf32>, vector<4x256xf32>, vector<4x256xf32>, vector<4x256xf32> -> vector<4x1024xf32>
    %cst_63 = arith.constant dense<0.000000e+00> : vector<4x128xf32>
    %62 = tpu.matmul %61, %47, %cst_63 {dimension_numbers = #tpu.dot_dimension_numbers<[1], [0], [0], [1], [0, 0, 1, 1], [], []>} : vector<4x1024xf32>, vector<1024x128xbf16>, vector<4x128xf32> -> vector<4x128xf32>
    %63 = vector.broadcast %48 : vector<1x128xf32> to vector<4x128xf32>
    %64 = arith.addf %62, %63 : vector<4x128xf32>
    %cst_64 = arith.constant 0.000000e+00 : f32
    %65 = vector.broadcast %cst_64 : f32 to vector<4x128xf32>
    %66 = arith.cmpf oge, %64, %65 : vector<4x128xf32>
    %cst_65 = arith.constant 1.000000e-01 : f32
    %67 = vector.broadcast %cst_65 : f32 to vector<4x128xf32>
    %68 = arith.mulf %67, %64 : vector<4x128xf32>
    %69 = arith.select %66, %64, %68 : vector<4x128xi1>, vector<4x128xf32>
    %c0_66 = arith.constant 0 : index
    %c0_67 = arith.constant 0 : index
    %70 = vector.load %arg13[%c0_66, %c0_67] : memref<512x64xbf16, #tpu.memory_space<vmem>>, vector<512x64xbf16>
    %c0_68 = arith.constant 0 : index
    %c0_69 = arith.constant 0 : index
    %71 = vector.load %arg14[%c0_68, %c0_69] : memref<1x64xf32, #tpu.memory_space<vmem>>, vector<1x64xf32>
    %c0_70 = arith.constant 0 : index
    %c0_71 = arith.constant 0 : index
    %c0_72 = arith.constant 0 : index
    %72 = vector.load %arg12[%c0_70, %c0_71, %c0_72] : memref<4x2x4xf32, #tpu.memory_space<vmem>>, vector<1x2x4xf32>
    %73 = vector.shape_cast %72 : vector<1x2x4xf32> to vector<2x4xf32>
    %cst_73 = arith.constant dense<0.000000e+00> : vector<2x128xf32>
    %74 = tpu.matmul %73, %69, %cst_73 {dimension_numbers = #tpu.dot_dimension_numbers<[1], [0], [0], [1], [0, 0, 1, 1], [], []>} : vector<2x4xf32>, vector<4x128xf32>, vector<2x128xf32> -> vector<2x128xf32>
    %c1_74 = arith.constant 1 : index
    %c0_75 = arith.constant 0 : index
    %c0_76 = arith.constant 0 : index
    %75 = vector.load %arg12[%c1_74, %c0_75, %c0_76] : memref<4x2x4xf32, #tpu.memory_space<vmem>>, vector<1x2x4xf32>
    %76 = vector.shape_cast %75 : vector<1x2x4xf32> to vector<2x4xf32>
    %cst_77 = arith.constant dense<0.000000e+00> : vector<2x128xf32>
    %77 = tpu.matmul %76, %69, %cst_77 {dimension_numbers = #tpu.dot_dimension_numbers<[1], [0], [0], [1], [0, 0, 1, 1], [], []>} : vector<2x4xf32>, vector<4x128xf32>, vector<2x128xf32> -> vector<2x128xf32>
    %c2_78 = arith.constant 2 : index
    %c0_79 = arith.constant 0 : index
    %c0_80 = arith.constant 0 : index
    %78 = vector.load %arg12[%c2_78, %c0_79, %c0_80] : memref<4x2x4xf32, #tpu.memory_space<vmem>>, vector<1x2x4xf32>
    %79 = vector.shape_cast %78 : vector<1x2x4xf32> to vector<2x4xf32>
    %cst_81 = arith.constant dense<0.000000e+00> : vector<2x128xf32>
    %80 = tpu.matmul %79, %69, %cst_81 {dimension_numbers = #tpu.dot_dimension_numbers<[1], [0], [0], [1], [0, 0, 1, 1], [], []>} : vector<2x4xf32>, vector<4x128xf32>, vector<2x128xf32> -> vector<2x128xf32>
    %c3_82 = arith.constant 3 : index
    %c0_83 = arith.constant 0 : index
    %c0_84 = arith.constant 0 : index
    %81 = vector.load %arg12[%c3_82, %c0_83, %c0_84] : memref<4x2x4xf32, #tpu.memory_space<vmem>>, vector<1x2x4xf32>
    %82 = vector.shape_cast %81 : vector<1x2x4xf32> to vector<2x4xf32>
    %cst_85 = arith.constant dense<0.000000e+00> : vector<2x128xf32>
    %83 = tpu.matmul %82, %69, %cst_85 {dimension_numbers = #tpu.dot_dimension_numbers<[1], [0], [0], [1], [0, 0, 1, 1], [], []>} : vector<2x4xf32>, vector<4x128xf32>, vector<2x128xf32> -> vector<2x128xf32>
    %84 = tpu.concatenate %74, %77, %80, %83 in 1 : vector<2x128xf32>, vector<2x128xf32>, vector<2x128xf32>, vector<2x128xf32> -> vector<2x512xf32>
    %cst_86 = arith.constant dense<0.000000e+00> : vector<2x64xf32>
    %85 = tpu.matmul %84, %70, %cst_86 {dimension_numbers = #tpu.dot_dimension_numbers<[1], [0], [0], [1], [0, 0, 1, 1], [], []>} : vector<2x512xf32>, vector<512x64xbf16>, vector<2x64xf32> -> vector<2x64xf32>
    %86 = vector.broadcast %71 : vector<1x64xf32> to vector<2x64xf32>
    %87 = arith.addf %85, %86 : vector<2x64xf32>
    %cst_87 = arith.constant 0.000000e+00 : f32
    %88 = vector.broadcast %cst_87 : f32 to vector<2x64xf32>
    %89 = arith.cmpf oge, %87, %88 : vector<2x64xf32>
    %cst_88 = arith.constant 1.000000e-01 : f32
    %90 = vector.broadcast %cst_88 : f32 to vector<2x64xf32>
    %91 = arith.mulf %90, %87 : vector<2x64xf32>
    %92 = arith.select %89, %87, %91 : vector<2x64xi1>, vector<2x64xf32>
    %c0_89 = arith.constant 0 : index
    %c0_90 = arith.constant 0 : index
    %93 = vector.load %arg1[%c0_89, %c0_90] : memref<2x256xf32, #tpu.memory_space<vmem>>, vector<2x256xf32>
    %c0_91 = arith.constant 0 : index
    %c0_92 = arith.constant 0 : index
    %94 = vector.load %arg2[%c0_91, %c0_92] : memref<256x16xf32, #tpu.memory_space<vmem>>, vector<256x16xf32>
    %cst_93 = arith.constant dense<0.000000e+00> : vector<2x16xf32>
    %95 = tpu.matmul %93, %94, %cst_93 {dimension_numbers = #tpu.dot_dimension_numbers<[1], [0], [0], [1], [0, 0, 1, 1], [], []>} : vector<2x256xf32>, vector<256x16xf32>, vector<2x16xf32> -> vector<2x16xf32>
    %cst_94 = arith.constant dense<0xFF800000> : vector<2xf32>
    %96 = vector.multi_reduction <maximumf>, %95, %cst_94 [1] : vector<2x16xf32> to vector<2xf32>
    %97 = vector.shape_cast %96 : vector<2xf32> to vector<2x1xf32>
    %98 = vector.broadcast %97 : vector<2x1xf32> to vector<2x16xf32>
    %99 = arith.subf %95, %98 : vector<2x16xf32>
    %100 = math.exp %99 : vector<2x16xf32>
    %cst_95 = arith.constant dense<0.000000e+00> : vector<2xf32>
    %101 = vector.multi_reduction <add>, %100, %cst_95 [1] : vector<2x16xf32> to vector<2xf32>
    %102 = vector.shape_cast %101 : vector<2xf32> to vector<2x1xf32>
    %103 = tpu.reciprocal %102 {approx = true} : vector<2x1xf32> -> vector<2x1xf32>
    %104 = vector.broadcast %103 : vector<2x1xf32> to vector<2x16xf32>
    %105 = arith.mulf %100, %104 : vector<2x16xf32>
    %c0_96 = arith.constant 0 : index
    %c0_97 = arith.constant 0 : index
    %106 = vector.load %arg15[%c0_96, %c0_97] : memref<64x16xf32, #tpu.memory_space<vmem>>, vector<64x16xf32>
    %cst_98 = arith.constant dense<0.000000e+00> : vector<2x16xf32>
    %107 = tpu.matmul %92, %106, %cst_98 {dimension_numbers = #tpu.dot_dimension_numbers<[1], [0], [0], [1], [0, 0, 1, 1], [], []>} : vector<2x64xf32>, vector<64x16xf32>, vector<2x16xf32> -> vector<2x16xf32>
    %c0_99 = arith.constant 0 : index
    %c0_100 = arith.constant 0 : index
    %108 = vector.load %arg16[%c0_99, %c0_100] : memref<1x16xf32, #tpu.memory_space<vmem>>, vector<1x16xf32>
    %109 = vector.broadcast %108 : vector<1x16xf32> to vector<2x16xf32>
    %110 = arith.addf %107, %109 : vector<2x16xf32>
    %cst_101 = arith.constant dense<0xFF800000> : vector<2xf32>
    %111 = vector.multi_reduction <maximumf>, %110, %cst_101 [1] : vector<2x16xf32> to vector<2xf32>
    %112 = vector.shape_cast %111 : vector<2xf32> to vector<2x1xf32>
    %113 = vector.broadcast %112 : vector<2x1xf32> to vector<2x16xf32>
    %114 = arith.subf %110, %113 : vector<2x16xf32>
    %115 = math.exp %114 : vector<2x16xf32>
    %cst_102 = arith.constant dense<0.000000e+00> : vector<2xf32>
    %116 = vector.multi_reduction <add>, %115, %cst_102 [1] : vector<2x16xf32> to vector<2xf32>
    %117 = vector.shape_cast %116 : vector<2xf32> to vector<2x1xf32>
    %118 = tpu.reciprocal %117 {approx = true} : vector<2x1xf32> -> vector<2x1xf32>
    %119 = vector.broadcast %118 : vector<2x1xf32> to vector<2x16xf32>
    %120 = arith.mulf %115, %119 : vector<2x16xf32>
    %cst_103 = arith.constant 0.699999988 : f32
    %121 = vector.broadcast %cst_103 : f32 to vector<2x16xf32>
    %122 = arith.mulf %121, %120 : vector<2x16xf32>
    %cst_104 = arith.constant 3.000000e-01 : f32
    %123 = vector.broadcast %cst_104 : f32 to vector<2x16xf32>
    %124 = arith.mulf %123, %105 : vector<2x16xf32>
    %125 = arith.addf %122, %124 : vector<2x16xf32>
    %c0_105 = arith.constant 0 : index
    %c0_106 = arith.constant 0 : index
    %126 = vector.load %arg17[%c0_105, %c0_106] : memref<16x5xf32, #tpu.memory_space<vmem>>, vector<16x5xf32>
    %cst_107 = arith.constant dense<0.000000e+00> : vector<2x5xf32>
    %127 = tpu.matmul %125, %126, %cst_107 {dimension_numbers = #tpu.dot_dimension_numbers<[1], [0], [0], [1], [0, 0, 1, 1], [], []>} : vector<2x16xf32>, vector<16x5xf32>, vector<2x5xf32> -> vector<2x5xf32>
    %cst_108 = arith.constant dense<0xFF800000> : vector<2xf32>
    %128 = vector.multi_reduction <maximumf>, %127, %cst_108 [1] : vector<2x5xf32> to vector<2xf32>
    %129 = vector.shape_cast %128 : vector<2xf32> to vector<2x1xf32>
    %130 = vector.broadcast %129 : vector<2x1xf32> to vector<2x5xf32>
    %131 = arith.subf %127, %130 : vector<2x5xf32>
    %132 = math.exp %131 : vector<2x5xf32>
    %cst_109 = arith.constant dense<0.000000e+00> : vector<2xf32>
    %133 = vector.multi_reduction <add>, %132, %cst_109 [1] : vector<2x5xf32> to vector<2xf32>
    %134 = vector.shape_cast %133 : vector<2xf32> to vector<2x1xf32>
    %135 = vector.broadcast %134 : vector<2x1xf32> to vector<2x5xf32>
    %136 = arith.divf %132, %135 : vector<2x5xf32>
    %c0_110 = arith.constant 0 : index
    %c0_111 = arith.constant 0 : index
    %137 = vector.load %arg18[%c0_110, %c0_111] : memref<2x5xf32, #tpu.memory_space<vmem>>, vector<2x5xf32>
    tpu.vector_store %arg18[%c0_110, %c0_111], %136 {strides = array<i32>} : memref<2x5xf32, #tpu.memory_space<vmem>>, vector<2x5xf32>,
    return
  }
}

</mosaic_0001>

<bundles_post_ra>
// kernel: discriminator_forward.1
= control target key start
LH: loop header
LB: loop body
LE: loop exit
PB: predicated region body
PF: predicated region fallthrough
CT: control target
= control target key end

     0   :  { %s6448_s0 = inlined_call_operand.vmem [shape: f32[32,128], index: 0, kind: input, shape index: {}]   ;;  %s6449_s1 = inlined_call_operand.vmem [shape: f32[2,256], index: 1, kind: input, shape index: {}]   ;;  %s6450_s2 = inlined_call_operand.vmem [shape: f32[256,16], index: 2, kind: input, shape index: {}]   ;;  %s6451_s3 = inlined_call_operand.vmem [shape: f32[4,16,32], index: 3, kind: input, shape index: {}]   ;;  %s6452_s4 = inlined_call_operand.hbm [shape: bf16[512,512], index: 4, kind: input, shape index: {}]   ;;  %s6453_s5 = inlined_call_operand.vmem [shape: f32[1,512], index: 5, kind: input, shape index: {}]   ;;  %s6454_s6 = inlined_call_operand.vmem [shape: f32[4,8,16], index: 6, kind: input, shape index: {}]   ;;  %s6455_s7 = inlined_call_operand.hbm [shape: bf16[2048,256], index: 7, kind: input, shape index: {}]   ;;  %s6456_s8 = inlined_call_operand.vmem [shape: f32[1,256], index: 8, kind: input, shape index: {}]   ;;  %s6457_s9 = inlined_call_operand.vmem [shape: f32[4,4,8], index: 9, kind: input, shape index: {}]   ;;  %s6458_s10 = inlined_call_operand.vmem [shape: bf16[1024,128], index: 10, kind: input, shape index: {}]   ;;  %s6459_s11 = inlined_call_operand.vmem [shape: f32[1,128], index: 11, kind: input, shape index: {}]   ;;  %s6460_s12 = inlined_call_operand.vmem [shape: f32[4,2,4], index: 12, kind: input, shape index: {}]   ;;  %s6461_s13 = inlined_call_operand.vmem [shape: bf16[512,64], index: 13, kind: input, shape index: {}]   ;;  %s6462_s14 = inlined_call_operand.vmem [shape: f32[1,64], index: 14, kind: input, shape index: {}]   ;;  %s6463_s15 = inlined_call_operand.vmem [shape: f32[64,16], index: 15, kind: input, shape index: {}]   ;;  %s6464_s16 = inlined_call_operand.vmem [shape: f32[1,16], index: 16, kind: input, shape index: {}]   ;;  %s6465_s17 = inlined_call_operand.vmem [shape: f32[16,5], index: 17, kind: input, shape index: {}]   ;;  %s6466_s18 = inlined_call_operand.hbm [shape: f32[2,5], index: 18, kind: output, shape index: {}]  }
   0x1   :  { %6469 = sst [smem:[#allocation13_spill]] %s6448_s0 }
   0x2   :  { %6470 = sst [smem:[#allocation14_spill]] %s6449_s1 }
   0x3   :  { %6471 = sst [smem:[#allocation15_spill]] %s6450_s2 }
   0x4   :  { %23 = vsyncpa [#allocation5], 0 }
   0x5   :  { %24 = vsyncpa [#allocation6], 0  ;;  %s5648_s27 = smov [#allocation4]   ;;  %s5598_s0 = scalar_lea.hbm %s6452_s4, 16384 }
   0x6   :  { %s38_s28 = sshll.u32 %s5648_s27, 4  ;;  %p5599_p0 = scmp.ne.s32.totalorder %s6452_s4, %s5598_s0  ;;  %s39_s28 = int_to_ptr.vmem [resolvable:$true] %s38_s28 }
   0x7   :  { %p5602_p1 = scmp.lt.u32.totalorder %s5598_s0, %s6452_s4 }
   0x9   :  { %p5604_p2 = pnand %p5602_p1, %p5599_p0 }
   0xb   :  { %5607 = shalt.err (!%p5604_p2)
}
   0xc   :  { %s5608_s22 = scalar_lea.vmem %s39_s28, 16384  ;;  %p5613_p4 = scmp.lt.s32.totalorder %s39_s28, %s39_s28 }
   0xd   :  { %p5609_p3 = scmp.ne.s32.totalorder %s39_s28, %s5608_s22  ;;  %p5614_p5 = scmp.lt.s32.totalorder %s5608_s22, %s5608_s22 }
   0xf   :  { %p5615_p6 = por %p5614_p5, %p5613_p4 }
  0x11   :  { %p5616_p7 = pnand %p5615_p6, %p5609_p3 }
  0x13   :  { %5619 = shalt.err (!%p5616_p7)
}
  0x14   :  { %s5649_s2 = smov 256   ;;  %s5650_s23 = smov 16  }
  0x15   :  { %44 = dma.hbm_to_vmem [thread:$0]  %s6452_s4, 16384, %s39_s28, [#allocation5], %s5649_s2, %s5649_s2, %s5650_s23  }
  0x16   :  { %5642 = dma.done.wait [#allocation5], 16384  }
  0x17   :  { %5643 = vsyncadd [#allocation5], 4294950912  ;;  %s77_s26 = sld [smem:[#allocation0]]   ;;  %89 = sst [smem:[#allocation9]] %s5649_s2  ;;  %vm243_vm0 = vcmask 261120  }
  0x18   :  { %91 = sst [smem:[#allocation9 + $0x1]] %s5649_s2  ;;  %s5651_s27 = smov 2  }
  0x19   :  { %93 = sst [smem:[#allocation9 + $0x2]] %s5651_s27  ;;  %s5652_s29 = smov 64  }
  0x1a   :  { %95 = sst [smem:[#allocation9 + $0x3]] %s5652_s29  ;;  %s5653_s30 = smov 128  }
  0x1b   :  { %97 = sst [smem:[#allocation9 + $0x4]] %s5653_s30  ;;  %s5654_s0 = smov [#allocation2]  }
  0x1c   :  { %s85_s19 = sshll.u32 %s5654_s0, 4  ;;  %99 = sst [smem:[#allocation9 + $0x5]] %s5651_s27  ;;  %s86_s19 = int_to_ptr.vmem [resolvable:$true] %s85_s19 }
  0x1d   :  { %s4582_s1 = sshll.u32 %s77_s26, 26  ;;  %101 = sst [smem:[#allocation9 + $0x6]] %s5653_s30 }
  0x1e   :  { %s4583_s20 = sadd.s32 134217728, %s4582_s1  ;;  %103 = sst [smem:[#allocation9 + $0x7]] %s5652_s29 }
  0x1f   :  { %s5655_s4 = smov 4   ;;  %s5656_s28 = smov [#allocation3]  }
  0x20   :  { %105 = sst [smem:[#allocation9 + $0x8]] %s5655_s4  ;;  %s5657_s21 = smov [#allocation8]  }
  0x21   :  { %107 = dma.general %s6455_s7, 32768, %s86_s19, %s5656_s28, %s5657_s21, [#allocation9], %s4583_s20, 0  }
  0x22   :  { %s6472_s25 = sld [smem:[#allocation13_spill]]  ;;  %v241_v5 = vld [vmem:[%s6451_s3] sm:$0xff]  ;;  %v4594_v7 = vld [vmem:[%s6451_s3 + $0x30] sm:$0xff]  ;;  %v242_v9 = vld [vmem:[%s6451_s3 + $0x8] sm:$0xff] }
  0x23   :  { %5059 = vmatprep.mubr.msk.f32.mxu0 %vm243_vm0, %v241_v5  ;;  %v5300_v8 = vld [vmem:[#allocation4 + $0x4] ss:$16 sps:$4 sm:$0xff]   ;;  %5092 = vmatprep.mubr.msk.f32.mxu1 %vm243_vm0, %v4594_v7  ;;  %v4595_v11 = vld [vmem:[%s6451_s3 + $0x38] sm:$0xff]  ;;  %v5298_v12 = vld [vmem:[#allocation4] ss:$16 sps:$4 sm:$0xff]  }
  0x24   :  { %v4586_v10 = vld [vmem:[%s6451_s3 + $0x10] sm:$0xff]  ;;  %v4587_v16 = vld [vmem:[%s6451_s3 + $0x18] sm:$0xff]  ;;  %v4590_v17 = vld [vmem:[%s6451_s3 + $0x20] sm:$0xff] }
  0x25   :  { %v5303_v13 = vld [vmem:[#allocation4 + $0x24] ss:$16 sps:$4 sm:$0xff]   ;;  %v5301_v14 = vld [vmem:[#allocation4 + $0x20] ss:$16 sps:$4 sm:$0xff]   ;;  %v4591_v21 = vld [vmem:[%s6451_s3 + $0x28] sm:$0xff] }
  0x26   :  { %v5306_v15 = vld [vmem:[#allocation4 + $0x44] ss:$16 sps:$4 sm:$0xff]   ;;  %v5304_v18 = vld [vmem:[#allocation4 + $0x40] ss:$16 sps:$4 sm:$0xff]  }
  0x27   :  { %v5309_v19 = vld [vmem:[#allocation4 + $0x64] ss:$16 sps:$4 sm:$0xff]   ;;  %v5307_v20 = vld [vmem:[#allocation4 + $0x60] ss:$16 sps:$4 sm:$0xff]  }
  0x28   :  { %v108_v0 = vld [vmem:[%s6472_s25] sm:$0xff]  ;;  %v109_v1 = vld [vmem:[%s6472_s25 + $0x8] sm:$0xff]  ;;  %v110_v2 = vld [vmem:[%s6472_s25 + $0x10] sm:$0xff] }
  0x29   :  { %v5141_v3 = vpack.c.bf16 %v109_v1, %v108_v0  ;;  %v111_v4 = vld [vmem:[%s6472_s25 + $0x18] sm:$0xff]  ;;  %v5312_v22 = vld [vmem:[#allocation4 + $0x84] ss:$16 sps:$4 sm:$0xff]   ;;  %v5310_v23 = vld [vmem:[#allocation4 + $0x80] ss:$16 sps:$4 sm:$0xff]  }
  0x2a   :  { %v5145_v6 = vpack.c.bf16 %v111_v4, %v110_v2  ;;  %v5315_v24 = vld [vmem:[#allocation4 + $0xa4] ss:$16 sps:$4 sm:$0xff]   ;;  %v5313_v25 = vld [vmem:[#allocation4 + $0xa0] ss:$16 sps:$4 sm:$0xff]  }
  0x2b   :  { %5142 = vmatprep.subr.bf16.mxu0 %v5141_v3  ;;  %5166 = vmatprep.subr.bf16.mxu1 %v5141_v3  ;;  %v5318_v26 = vld [vmem:[#allocation4 + $0xc4] ss:$16 sps:$4 sm:$0xff]   ;;  %v5316_v27 = vld [vmem:[#allocation4 + $0xc0] ss:$16 sps:$4 sm:$0xff]  }
  0x2c   :  { %5144 = vmatpush3.bf16.msra.mxu0 %v5141_v3  ;;  %5168 = vmatpush3.bf16.msra.mxu1 %v5141_v3  ;;  %v5321_v28 = vld [vmem:[#allocation4 + $0xe4] ss:$16 sps:$4 sm:$0xff]   ;;  %v5319_v29 = vld [vmem:[#allocation4 + $0xe0] ss:$16 sps:$4 sm:$0xff]  }
  0x2d   :  { %5146 = vmatprep.subr.bf16.mxu0 %v5145_v6  ;;  %5170 = vmatprep.subr.bf16.mxu1 %v5145_v6  ;;  %v5324_v30 = vld [vmem:[#allocation4 + $0x104] ss:$16 sps:$4 sm:$0xff]   ;;  %v5322_v31 = vld [vmem:[#allocation4 + $0x100] ss:$16 sps:$4 sm:$0xff]  }
  0x2e   :  { %v5327_v32 = vld [vmem:[#allocation4 + $0x124] ss:$16 sps:$4 sm:$0xff]   ;;  %v5325_v33 = vld [vmem:[#allocation4 + $0x120] ss:$16 sps:$4 sm:$0xff]  }
  0x2f   :  { %v5330_v34 = vld [vmem:[#allocation4 + $0x144] ss:$16 sps:$4 sm:$0xff]   ;;  %v5328_v35 = vld [vmem:[#allocation4 + $0x140] ss:$16 sps:$4 sm:$0xff]  }
  0x30   :  { %5148 = vmatpush3.bf16.msra.mxu0 %v5145_v6  ;;  %5172 = vmatpush3.bf16.msra.mxu1 %v5145_v6  ;;  %v5333_v36 = vld [vmem:[#allocation4 + $0x164] ss:$16 sps:$4 sm:$0xff]   ;;  %v5331_v37 = vld [vmem:[#allocation4 + $0x160] ss:$16 sps:$4 sm:$0xff]  }
  0x31   :  { %5150 = vmatprep.subr.bf16.mxu0 %v5141_v3  ;;  %1238 = vmatprep.subr.bf16.mxu1 %v5300_v8  ;;  %v5336_v38 = vld [vmem:[#allocation4 + $0x184] ss:$16 sps:$4 sm:$0xff]   ;;  %v5334_v39 = vld [vmem:[#allocation4 + $0x180] ss:$16 sps:$4 sm:$0xff]  }
  0x32   :  { %v5339_v40 = vld [vmem:[#allocation4 + $0x1a4] ss:$16 sps:$4 sm:$0xff]   ;;  %v5337_v41 = vld [vmem:[#allocation4 + $0x1a0] ss:$16 sps:$4 sm:$0xff]  }
  0x33   :  { %5060 = vmatmul.mubr.msk.f32.vlgmr.msra.gmra.mrb[0].mxu0 %vm243_vm0, %v242_v9  ;;  %5093 = vmatmul.mubr.msk.f32.vlgmr.msra.gmra.mrb[0].mxu1 %vm243_vm0, %v4595_v11  ;;  %v5342_v42 = vld [vmem:[#allocation4 + $0x1c4] ss:$16 sps:$4 sm:$0xff]   ;;  %v5340_v43 = vld [vmem:[#allocation4 + $0x1c0] ss:$16 sps:$4 sm:$0xff]  }
  0x34   :  { %5152 = vmatpush3.bf16.msra.mxu0 %v5141_v3  ;;  %5070 = vmatprep.mubr.msk.f32.mxu0 %vm243_vm0, %v4586_v10  ;;  %v5345_v44 = vld [vmem:[#allocation4 + $0x1e4] ss:$16 sps:$4 sm:$0xff]   ;;  %v5343_v45 = vld [vmem:[#allocation4 + $0x1e0] ss:$16 sps:$4 sm:$0xff]  }
  0x35   :  { %5154 = vmatprep.subr.bf16.mxu0 %v5145_v6  ;;  %1239 = vmatpush1.bf16.msra.mxu1 %v5298_v12  ;;  %v5348_v46 = vld [vmem:[#allocation4 + $0x204] ss:$16 sps:$4 sm:$0xff]   ;;  %v5346_v52 = vld [vmem:[#allocation4 + $0x200] ss:$16 sps:$4 sm:$0xff]  }
  0x36   :  { %1240 = vmatprep.subr.bf16.mxu1 %v5303_v13  ;;  %v5351_v54 = vld [vmem:[#allocation4 + $0x224] ss:$16 sps:$4 sm:$0xff]   ;;  %v5349_v55 = vld [vmem:[#allocation4 + $0x220] ss:$16 sps:$4 sm:$0xff]  }
  0x37   :  { %v5354_v56 = vld [vmem:[#allocation4 + $0x244] ss:$16 sps:$4 sm:$0xff]   ;;  %v5352_v57 = vld [vmem:[#allocation4 + $0x240] ss:$16 sps:$4 sm:$0xff]  }
  0x38   :  { %5156 = vmatpush3.bf16.msra.mxu0 %v5145_v6  ;;  %v5357_v59 = vld [vmem:[#allocation4 + $0x264] ss:$16 sps:$4 sm:$0xff]   ;;  %v5355_v61 = vld [vmem:[#allocation4 + $0x260] ss:$16 sps:$4 sm:$0xff]  }
  0x39   :  { %5158 = vmatprep.subr.bf16.mxu0 %v5141_v3  ;;  %1241 = vmatpush1.bf16.msra.mxu1 %v5301_v14  ;;  %v5360_v62 = vld [vmem:[#allocation4 + $0x284] ss:$16 sps:$4 sm:$0xff]   ;;  %v5358_v63 = vld [vmem:[#allocation4 + $0x280] ss:$16 sps:$4 sm:$0xff]  }
  0x3a   :  { %1242 = vmatprep.subr.bf16.mxu1 %v5306_v15  ;;  %v5363_v0 = vld [vmem:[#allocation4 + $0x2a4] ss:$16 sps:$4 sm:$0xff]   ;;  %v5361_v1 = vld [vmem:[#allocation4 + $0x2a0] ss:$16 sps:$4 sm:$0xff]  }
  0x3b   :  { %5071 = vmatmul.mubr.msk.f32.vlgmr.msra.gmra.mrb[2].mxu0 %vm243_vm0, %v4587_v16  ;;  %v5366_v2 = vld [vmem:[#allocation4 + $0x2c4] ss:$16 sps:$4 sm:$0xff]   ;;  %v5367_v5 = vld [vmem:[#allocation4 + $0x2e0] ss:$16 sps:$4 sm:$0xff]  }
  0x3c   :  { %5160 = vmatpush3.bf16.msra.mxu0 %v5141_v3  ;;  %5081 = vmatprep.mubr.msk.f32.mxu0 %vm243_vm0, %v4590_v17  ;;  %v5364_v3 = vld [vmem:[#allocation4 + $0x2c0] ss:$16 sps:$4 sm:$0xff]   ;;  %v5369_v4 = vld [vmem:[#allocation4 + $0x2e4] ss:$16 sps:$4 sm:$0xff]  }
  0x3d   :  { %5162 = vmatprep.subr.bf16.mxu0 %v5145_v6  ;;  %1243 = vmatpush1.bf16.msra.mxu1 %v5304_v18  ;;  %v5370_v7 = vld [vmem:[#allocation4 + $0x300] ss:$16 sps:$4 sm:$0xff]   ;;  %v5375_v8 = vld [vmem:[#allocation4 + $0x324] ss:$16 sps:$4 sm:$0xff]  }
  0x3e   :  { %1244 = vmatprep.subr.bf16.mxu1 %v5309_v19  ;;  %v5373_v9 = vld [vmem:[#allocation4 + $0x320] ss:$16 sps:$4 sm:$0xff]   ;;  %v5378_v10 = vld [vmem:[#allocation4 + $0x344] ss:$16 sps:$4 sm:$0xff]  }
  0x3f   :  { %v5376_v11 = vld [vmem:[#allocation4 + $0x340] ss:$16 sps:$4 sm:$0xff]   ;;  %v5381_v12 = vld [vmem:[#allocation4 + $0x364] ss:$16 sps:$4 sm:$0xff]  }
  0x40   :  { %5164 = vmatpush3.bf16.msra.mxu0 %v5145_v6  ;;  %v5372_v6 = vld [vmem:[#allocation4 + $0x304] ss:$16 sps:$4 sm:$0xff]   ;;  %v5379_v13 = vld [vmem:[#allocation4 + $0x360] ss:$16 sps:$4 sm:$0xff]  }
  0x41   :  { %1245 = vmatpush1.bf16.msra.mxu1 %v5307_v20  ;;  %v5384_v14 = vld [vmem:[#allocation4 + $0x384] ss:$16 sps:$4 sm:$0xff]   ;;  %v5382_v15 = vld [vmem:[#allocation4 + $0x380] ss:$16 sps:$4 sm:$0xff]  }
  0x42   :  { %1246 = vmatprep.subr.bf16.mxu1 %v5312_v22  ;;  %v5387_v16 = vld [vmem:[#allocation4 + $0x3a4] ss:$16 sps:$4 sm:$0xff]   ;;  %v5385_v17 = vld [vmem:[#allocation4 + $0x3a0] ss:$16 sps:$4 sm:$0xff]   ;;  %v5396_v22 = vld [vmem:[#allocation4 + $0xc] ss:$16 sps:$4 sm:$0xff]  }
  0x43   :  { %5082 = vmatmul.mubr.msk.f32.vlgmr.msra.gmra.mrb[4].mxu0 %vm243_vm0, %v4591_v21  ;;  %v5390_v18 = vld [vmem:[#allocation4 + $0x3c4] ss:$16 sps:$4 sm:$0xff]   ;;  %v5388_v19 = vld [vmem:[#allocation4 + $0x3c0] ss:$16 sps:$4 sm:$0xff]  }
  0x44   :  { %v5393_v20 = vld [vmem:[#allocation4 + $0x3e4] ss:$16 sps:$4 sm:$0xff]   ;;  %v5391_v21 = vld [vmem:[#allocation4 + $0x3e0] ss:$16 sps:$4 sm:$0xff]  }
  0x45   :  { %1247 = vmatpush1.bf16.msra.mxu1 %v5310_v23  ;;  %v5394_v23 = vld [vmem:[#allocation4 + $0x8] ss:$16 sps:$4 sm:$0xff]  }
  0x46   :  { %1248 = vmatprep.subr.bf16.mxu1 %v5315_v24  ;;  %v5399_v24 = vld [vmem:[#allocation4 + $0x2c] ss:$16 sps:$4 sm:$0xff]  }
  0x49   :  { %1249 = vmatpush1.bf16.msra.mxu1 %v5313_v25  ;;  %v5397_v25 = vld [vmem:[#allocation4 + $0x28] ss:$16 sps:$4 sm:$0xff]  }
  0x4a   :  { %1250 = vmatprep.subr.bf16.mxu1 %v5318_v26  ;;  %v5402_v26 = vld [vmem:[#allocation4 + $0x4c] ss:$16 sps:$4 sm:$0xff]  }
  0x4d   :  { %1251 = vmatpush1.bf16.msra.mxu1 %v5316_v27  ;;  %v5400_v27 = vld [vmem:[#allocation4 + $0x48] ss:$16 sps:$4 sm:$0xff]  }
  0x4e   :  { %1252 = vmatprep.subr.bf16.mxu1 %v5321_v28  ;;  %v5405_v28 = vld [vmem:[#allocation4 + $0x6c] ss:$16 sps:$4 sm:$0xff]  }
  0x51   :  { %1253 = vmatpush1.bf16.msra.mxu1 %v5319_v29  ;;  %v5403_v29 = vld [vmem:[#allocation4 + $0x68] ss:$16 sps:$4 sm:$0xff]  }
  0x52   :  { %1254 = vmatprep.subr.bf16.mxu1 %v5324_v30  ;;  %v5408_v30 = vld [vmem:[#allocation4 + $0x8c] ss:$16 sps:$4 sm:$0xff]  }
  0x55   :  { %1255 = vmatpush1.bf16.msra.mxu1 %v5322_v31  ;;  %v5406_v31 = vld [vmem:[#allocation4 + $0x88] ss:$16 sps:$4 sm:$0xff]  }
  0x56   :  { %1256 = vmatprep.subr.bf16.mxu1 %v5327_v32  ;;  %v5411_v32 = vld [vmem:[#allocation4 + $0xac] ss:$16 sps:$4 sm:$0xff]  }
  0x59   :  { %1257 = vmatpush1.bf16.msra.mxu1 %v5325_v33  ;;  %v5409_v33 = vld [vmem:[#allocation4 + $0xa8] ss:$16 sps:$4 sm:$0xff]  }
  0x5a   :  { %1258 = vmatprep.subr.bf16.mxu1 %v5330_v34  ;;  %v5414_v34 = vld [vmem:[#allocation4 + $0xcc] ss:$16 sps:$4 sm:$0xff]  }
  0x5d   :  { %1259 = vmatpush1.bf16.msra.mxu1 %v5328_v35  ;;  %v5412_v35 = vld [vmem:[#allocation4 + $0xc8] ss:$16 sps:$4 sm:$0xff]  }
  0x5e   :  { %1260 = vmatprep.subr.bf16.mxu1 %v5333_v36  ;;  %v5417_v36 = vld [vmem:[#allocation4 + $0xec] ss:$16 sps:$4 sm:$0xff]  }
  0x61   :  { %1261 = vmatpush1.bf16.msra.mxu1 %v5331_v37  ;;  %v5415_v37 = vld [vmem:[#allocation4 + $0xe8] ss:$16 sps:$4 sm:$0xff]  }
  0x62   :  { %1262 = vmatprep.subr.bf16.mxu1 %v5336_v38  ;;  %v5420_v38 = vld [vmem:[#allocation4 + $0x10c] ss:$16 sps:$4 sm:$0xff]  }
  0x65   :  { %1263 = vmatpush1.bf16.msra.mxu1 %v5334_v39  ;;  %v5418_v39 = vld [vmem:[#allocation4 + $0x108] ss:$16 sps:$4 sm:$0xff]  }
  0x66   :  { %1264 = vmatprep.subr.bf16.mxu1 %v5339_v40  ;;  %v5423_v40 = vld [vmem:[#allocation4 + $0x12c] ss:$16 sps:$4 sm:$0xff]  }
  0x69   :  { %1265 = vmatpush1.bf16.msra.mxu1 %v5337_v41  ;;  %v5421_v41 = vld [vmem:[#allocation4 + $0x128] ss:$16 sps:$4 sm:$0xff]  }
  0x6a   :  { %1266 = vmatprep.subr.bf16.mxu1 %v5342_v42  ;;  %v5426_v42 = vld [vmem:[#allocation4 + $0x14c] ss:$16 sps:$4 sm:$0xff]  }
  0x6d   :  { %1267 = vmatpush1.bf16.msra.mxu1 %v5340_v43  ;;  %v5424_v43 = vld [vmem:[#allocation4 + $0x148] ss:$16 sps:$4 sm:$0xff]  }
  0x6e   :  { %1268 = vmatprep.subr.bf16.mxu1 %v5345_v44  ;;  %v5429_v44 = vld [vmem:[#allocation4 + $0x16c] ss:$16 sps:$4 sm:$0xff]  }
  0x71   :  { %1269 = vmatpush1.bf16.msra.mxu1 %v5343_v45  ;;  %v5427_v45 = vld [vmem:[#allocation4 + $0x168] ss:$16 sps:$4 sm:$0xff]  }
  0x72   :  { %1283 = vmatprep.subr.bf16.mxu1 %v5348_v46  ;;  %v5432_v46 = vld [vmem:[#allocation4 + $0x18c] ss:$16 sps:$4 sm:$0xff]  }
 0x106   :  { %v5816_v47 = vpop.f32.mrb[0].mxu0  ;;  %v5818_v48 = vpop.f32.mrb[0].mxu1 }
 0x107   :  { %v5820_v49 = vpop.f32.mrb[1].mxu0  ;;  %v5822_v50 = vpop.f32.mrb[1].mxu1 }
 0x10e   :  { %v5824_v51 = vpop.f32.mrb[2].mxu0 }
 0x10f   :  { %v5826_v53 = vpop.f32.mrb[3].mxu0 }
 0x110   :  { %1270 = vmatprep.mubr.f32.mxu1 %v5826_v53 }
 0x111   :  { %1271 = vmatmul.mubr.f32.vlgmr.msra.gmra.mrb[2].mxu1 %v5820_v49 }
 0x112   :  { %1284 = vmatpush1.bf16.msra.mxu1 %v5346_v52  ;;  %1276 = vmatprep.mubr.f32.mxu1 %v5824_v51  ;;  %v5430_v52 = vld [vmem:[#allocation4 + $0x188] ss:$16 sps:$4 sm:$0xff]  }
 0x113   :  { %1285 = vmatprep.subr.bf16.mxu1 %v5351_v54  ;;  %v5433_v54 = vld [vmem:[#allocation4 + $0x1a8] ss:$16 sps:$4 sm:$0xff]  }
 0x115   :  { %1277 = vmatmul.mubr.f32.gmra.mrb[4].mxu1 %v5816_v47 }
 0x116   :  { %1286 = vmatpush1.bf16.msra.mxu1 %v5349_v55  ;;  %v5832_v58 = vpop.f32.mrb[4].mxu0  ;;  %1315 = vmatprep.mubr.f32.mxu1 %v5822_v50  ;;  %v5438_v55 = vld [vmem:[#allocation4 + $0x1cc] ss:$16 sps:$4 sm:$0xff]  }
 0x117   :  { %1287 = vmatprep.subr.bf16.mxu1 %v5354_v56  ;;  %v5835_v60 = vpop.f32.mrb[5].mxu0  ;;  %v5436_v56 = vld [vmem:[#allocation4 + $0x1c8] ss:$16 sps:$4 sm:$0xff]  }
 0x11a   :  { %1288 = vmatpush1.bf16.msra.mxu1 %v5352_v57  ;;  %v5441_v57 = vld [vmem:[#allocation4 + $0x1ec] ss:$16 sps:$4 sm:$0xff]  }
 0x11b   :  { %1289 = vmatprep.subr.bf16.mxu1 %v5357_v59  ;;  %v5439_v59 = vld [vmem:[#allocation4 + $0x1e8] ss:$16 sps:$4 sm:$0xff]  }
 0x11e   :  { %1290 = vmatpush1.bf16.msra.mxu1 %v5355_v61  ;;  %v5444_v61 = vld [vmem:[#allocation4 + $0x20c] ss:$16 sps:$4 sm:$0xff]  }
 0x11f   :  { %1291 = vmatprep.subr.bf16.mxu1 %v5360_v62  ;;  %v5442_v62 = vld [vmem:[#allocation4 + $0x208] ss:$16 sps:$4 sm:$0xff]  }
 0x122   :  { %1292 = vmatpush1.bf16.msra.mxu1 %v5358_v63  ;;  %v5447_v63 = vld [vmem:[#allocation4 + $0x22c] ss:$16 sps:$4 sm:$0xff]  }
 0x123   :  { %1293 = vmatprep.subr.bf16.mxu1 %v5363_v0  ;;  %v5445_v0 = vld [vmem:[#allocation4 + $0x228] ss:$16 sps:$4 sm:$0xff]  }
 0x126   :  { %1294 = vmatpush1.bf16.msra.mxu1 %v5361_v1  ;;  %v5450_v1 = vld [vmem:[#allocation4 + $0x24c] ss:$16 sps:$4 sm:$0xff]  }
 0x127   :  { %1295 = vmatprep.subr.bf16.mxu1 %v5366_v2  ;;  %v5448_v2 = vld [vmem:[#allocation4 + $0x248] ss:$16 sps:$4 sm:$0xff]  }
 0x12a   :  { %1296 = vmatpush1.bf16.msra.mxu1 %v5364_v3  ;;  %v5453_v3 = vld [vmem:[#allocation4 + $0x26c] ss:$16 sps:$4 sm:$0xff]  }
 0x12b   :  { %1297 = vmatprep.subr.bf16.mxu1 %v5369_v4  ;;  %v5451_v4 = vld [vmem:[#allocation4 + $0x268] ss:$16 sps:$4 sm:$0xff]  }
 0x12e   :  { %1298 = vmatpush1.bf16.msra.mxu1 %v5367_v5  ;;  %v5456_v5 = vld [vmem:[#allocation4 + $0x28c] ss:$16 sps:$4 sm:$0xff]  }
 0x12f   :  { %1299 = vmatprep.subr.bf16.mxu1 %v5372_v6  ;;  %v5457_v6 = vld [vmem:[#allocation4 + $0x2a8] ss:$16 sps:$4 sm:$0xff]  }
 0x132   :  { %1300 = vmatpush1.bf16.msra.mxu1 %v5370_v7  ;;  %v5462_v7 = vld [vmem:[#allocation4 + $0x2cc] ss:$16 sps:$4 sm:$0xff]  }
 0x133   :  { %1301 = vmatprep.subr.bf16.mxu1 %v5375_v8  ;;  %v5465_v8 = vld [vmem:[#allocation4 + $0x2ec] ss:$16 sps:$4 sm:$0xff]  }
 0x136   :  { %1302 = vmatpush1.bf16.msra.mxu1 %v5373_v9  ;;  %v5468_v9 = vld [vmem:[#allocation4 + $0x30c] ss:$16 sps:$4 sm:$0xff]  }
 0x137   :  { %1303 = vmatprep.subr.bf16.mxu1 %v5378_v10  ;;  %v5466_v10 = vld [vmem:[#allocation4 + $0x308] ss:$16 sps:$4 sm:$0xff]  }
 0x13a   :  { %1304 = vmatpush1.bf16.msra.mxu1 %v5376_v11  ;;  %v5471_v11 = vld [vmem:[#allocation4 + $0x32c] ss:$16 sps:$4 sm:$0xff]  }
 0x13b   :  { %1305 = vmatprep.subr.bf16.mxu1 %v5381_v12  ;;  %v5469_v12 = vld [vmem:[#allocation4 + $0x328] ss:$16 sps:$4 sm:$0xff]  }
 0x13e   :  { %1306 = vmatpush1.bf16.msra.mxu1 %v5379_v13  ;;  %v5474_v13 = vld [vmem:[#allocation4 + $0x34c] ss:$16 sps:$4 sm:$0xff]  }
 0x13f   :  { %1307 = vmatprep.subr.bf16.mxu1 %v5384_v14  ;;  %v5472_v14 = vld [vmem:[#allocation4 + $0x348] ss:$16 sps:$4 sm:$0xff]  }
 0x142   :  { %1308 = vmatpush1.bf16.msra.mxu1 %v5382_v15  ;;  %v5477_v15 = vld [vmem:[#allocation4 + $0x36c] ss:$16 sps:$4 sm:$0xff]  }
 0x143   :  { %1309 = vmatprep.subr.bf16.mxu1 %v5387_v16  ;;  %v5475_v16 = vld [vmem:[#allocation4 + $0x368] ss:$16 sps:$4 sm:$0xff]  }
 0x146   :  { %1310 = vmatpush1.bf16.msra.mxu1 %v5385_v17  ;;  %v5480_v17 = vld [vmem:[#allocation4 + $0x38c] ss:$16 sps:$4 sm:$0xff]  }
 0x147   :  { %1311 = vmatprep.subr.bf16.mxu1 %v5390_v18  ;;  %v5478_v18 = vld [vmem:[#allocation4 + $0x388] ss:$16 sps:$4 sm:$0xff]  }
 0x14a   :  { %1312 = vmatpush1.bf16.msra.mxu1 %v5388_v19  ;;  %v5483_v19 = vld [vmem:[#allocation4 + $0x3ac] ss:$16 sps:$4 sm:$0xff]  }
 0x14b   :  { %1313 = vmatprep.subr.bf16.mxu1 %v5393_v20  ;;  %v5481_v20 = vld [vmem:[#allocation4 + $0x3a8] ss:$16 sps:$4 sm:$0xff]  }
 0x14e   :  { %1314 = vmatpush1.bf16.msra.mxu1 %v5391_v21  ;;  %v5486_v21 = vld [vmem:[#allocation4 + $0x3cc] ss:$16 sps:$4 sm:$0xff]  }
 0x14f   :  { %1328 = vmatprep.subr.bf16.mxu1 %v5396_v22  ;;  %v5484_v22 = vld [vmem:[#allocation4 + $0x3c8] ss:$16 sps:$4 sm:$0xff]  }
 0x151   :  { %1316 = vmatmul.mubr.f32.vlgmr.msra.gmra.mrb[2].mxu1 %v5835_v60 }
 0x152   :  { %1321 = vmatprep.mubr.f32.mxu1 %v5818_v48  ;;  %1329 = vmatpush1.bf16.msra.mxu1 %v5394_v23  ;;  %v5489_v23 = vld [vmem:[#allocation4 + $0x3ec] ss:$16 sps:$4 sm:$0xff]  }
 0x153   :  { %1330 = vmatprep.subr.bf16.mxu1 %v5399_v24  ;;  %v5487_v24 = vld [vmem:[#allocation4 + $0x3e8] ss:$16 sps:$4 sm:$0xff]  }
 0x155   :  { %1322 = vmatmul.mubr.f32.gmra.mrb[4].mxu1 %v5832_v58 }
 0x156   :  { %1331 = vmatpush1.bf16.msra.mxu1 %v5397_v25  ;;  %1360 = vmatprep.mubr.f32.mxu1 %v5826_v53  ;;  %v5435_v53 = vld [vmem:[#allocation4 + $0x1ac] ss:$16 sps:$4 sm:$0xff]   ;;  %v578_v25 = vlaneseq }
 0x157   :  { %1332 = vmatprep.subr.bf16.mxu1 %v5402_v26 }
 0x158   :  { %v5848_v26 = vshrl.u32 %v578_v25, 7 }
 0x15a   :  { %1333 = vmatpush1.bf16.msra.mxu1 %v5400_v27  ;;  %v580_v27 = vsub.s32 0, %v5848_v26 }
 0x15b   :  { %1334 = vmatprep.subr.bf16.mxu1 %v5405_v28  ;;  %v240_v28 = vld [vmem:[%s6453_s5] sm:$0xf] }
 0x15e   :  { %1335 = vmatpush1.bf16.msra.mxu1 %v5403_v29  ;;  %v584_v29 = vsub.s32 1, %v5848_v26 }
 0x15f   :  { %1336 = vmatprep.subr.bf16.mxu1 %v5408_v30  ;;  %v581_v30 = vrot.slane %v240_v28, %v580_v27 }
 0x162   :  { %1337 = vmatpush1.bf16.msra.mxu1 %v5406_v31 }
 0x163   :  { %1338 = vmatprep.subr.bf16.mxu1 %v5411_v32 }
 0x166   :  { %1339 = vmatpush1.bf16.msra.mxu1 %v5409_v33 }
 0x167   :  { %1340 = vmatprep.subr.bf16.mxu1 %v5414_v34 }
 0x16a   :  { %1341 = vmatpush1.bf16.msra.mxu1 %v5412_v35 }
 0x16b   :  { %1342 = vmatprep.subr.bf16.mxu1 %v5417_v36 }
 0x16e   :  { %1343 = vmatpush1.bf16.msra.mxu1 %v5415_v37 }
 0x16f   :  { %1344 = vmatprep.subr.bf16.mxu1 %v5420_v38 }
 0x172   :  { %1345 = vmatpush1.bf16.msra.mxu1 %v5418_v39 }
 0x173   :  { %1346 = vmatprep.subr.bf16.mxu1 %v5423_v40 }
 0x176   :  { %1347 = vmatpush1.bf16.msra.mxu1 %v5421_v41 }
 0x177   :  { %1348 = vmatprep.subr.bf16.mxu1 %v5426_v42 }
 0x17a   :  { %1349 = vmatpush1.bf16.msra.mxu1 %v5424_v43 }
 0x17b   :  { %1350 = vmatprep.subr.bf16.mxu1 %v5429_v44 }
 0x17e   :  { %1351 = vmatpush1.bf16.msra.mxu1 %v5427_v45  ;;  %v588_v45 = vsub.s32 2, %v5848_v26 }
 0x17f   :  { %1352 = vmatprep.subr.bf16.mxu1 %v5432_v46  ;;  %v592_v46 = vsub.s32 3, %v5848_v26 }
 0x182   :  { %1353 = vmatpush1.bf16.msra.mxu1 %v5430_v52  ;;  %v589_v52 = vrot.slane %v240_v28, %v588_v45 }
 0x183   :  { %1354 = vmatprep.subr.bf16.mxu1 %v5435_v53  ;;  %v593_v53 = vrot.slane %v240_v28, %v592_v46 }
 0x186   :  { %1355 = vmatpush1.bf16.msra.mxu1 %v5433_v54 }
 0x187   :  { %1356 = vmatprep.subr.bf16.mxu1 %v5438_v55 }
 0x18a   :  { %1357 = vmatpush1.bf16.msra.mxu1 %v5436_v56 }
 0x18b   :  { %1358 = vmatprep.subr.bf16.mxu1 %v5441_v57 }
 0x18e   :  { %1359 = vmatpush1.bf16.msra.mxu1 %v5439_v59 }
 0x18f   :  { %1373 = vmatprep.subr.bf16.mxu1 %v5444_v61 }
 0x191   :  { %1361 = vmatmul.mubr.f32.vlgmr.msra.gmra.mrb[6].mxu1 %v5820_v49  ;;  %v5454_v49 = vld [vmem:[#allocation4 + $0x288] ss:$16 sps:$4 sm:$0xff]  }
 0x192   :  { %1366 = vmatprep.mubr.f32.mxu1 %v5824_v51  ;;  %1374 = vmatpush1.bf16.msra.mxu1 %v5442_v62  ;;  %v5459_v51 = vld [vmem:[#allocation4 + $0x2ac] ss:$16 sps:$4 sm:$0xff]  }
 0x193   :  { %1375 = vmatprep.subr.bf16.mxu1 %v5447_v63 }
 0x195   :  { %1367 = vmatmul.mubr.f32.gmra.mrb[8].mxu1 %v5816_v47  ;;  %v5460_v47 = vld [vmem:[#allocation4 + $0x2c8] ss:$16 sps:$4 sm:$0xff]  }
 0x196   :  { %1376 = vmatpush1.bf16.msra.mxu1 %v5445_v0  ;;  %1405 = vmatprep.mubr.f32.mxu1 %v5822_v50  ;;  %v5463_v50 = vld [vmem:[#allocation4 + $0x2e8] ss:$16 sps:$4 sm:$0xff]  }
 0x197   :  { %1377 = vmatprep.subr.bf16.mxu1 %v5450_v1 }
 0x19a   :  { %1378 = vmatpush1.bf16.msra.mxu1 %v5448_v2 }
 0x19b   :  { %1379 = vmatprep.subr.bf16.mxu1 %v5453_v3 }
 0x19e   :  { %1380 = vmatpush1.bf16.msra.mxu1 %v5451_v4 }
 0x19f   :  { %1381 = vmatprep.subr.bf16.mxu1 %v5456_v5 }
 0x1a2   :  { %1382 = vmatpush1.bf16.msra.mxu1 %v5454_v49 }
 0x1a3   :  { %1383 = vmatprep.subr.bf16.mxu1 %v5459_v51 }
 0x1a6   :  { %1384 = vmatpush1.bf16.msra.mxu1 %v5457_v6 }
 0x1a7   :  { %1385 = vmatprep.subr.bf16.mxu1 %v5462_v7 }
 0x1aa   :  { %1386 = vmatpush1.bf16.msra.mxu1 %v5460_v47 }
 0x1ab   :  { %1387 = vmatprep.subr.bf16.mxu1 %v5465_v8 }
 0x1ae   :  { %1388 = vmatpush1.bf16.msra.mxu1 %v5463_v50 }
 0x1af   :  { %1389 = vmatprep.subr.bf16.mxu1 %v5468_v9 }
 0x1b2   :  { %1390 = vmatpush1.bf16.msra.mxu1 %v5466_v10 }
 0x1b3   :  { %1391 = vmatprep.subr.bf16.mxu1 %v5471_v11 }
 0x1b6   :  { %1392 = vmatpush1.bf16.msra.mxu1 %v5469_v12 }
 0x1b7   :  { %1393 = vmatprep.subr.bf16.mxu1 %v5474_v13 }
 0x1ba   :  { %1394 = vmatpush1.bf16.msra.mxu1 %v5472_v14 }
 0x1bb   :  { %1395 = vmatprep.subr.bf16.mxu1 %v5477_v15 }
 0x1be   :  { %1396 = vmatpush1.bf16.msra.mxu1 %v5475_v16 }
 0x1bf   :  { %1397 = vmatprep.subr.bf16.mxu1 %v5480_v17 }
 0x1c2   :  { %1398 = vmatpush1.bf16.msra.mxu1 %v5478_v18 }
 0x1c3   :  { %1399 = vmatprep.subr.bf16.mxu1 %v5483_v19 }
 0x1c6   :  { %1400 = vmatpush1.bf16.msra.mxu1 %v5481_v20 }
 0x1c7   :  { %1401 = vmatprep.subr.bf16.mxu1 %v5486_v21 }
 0x1ca   :  { %1402 = vmatpush1.bf16.msra.mxu1 %v5484_v22 }
 0x1cb   :  { %1403 = vmatprep.subr.bf16.mxu1 %v5489_v23 }
 0x1ce   :  { %1404 = vmatpush1.bf16.msra.mxu1 %v5487_v24 }
 0x1d1   :  { %1406 = vmatmul.mubr.f32.vlgmr.msra.gmra.mrb[6].mxu1 %v5835_v60  ;;  %v585_v60 = vrot.slane %v240_v28, %v584_v29 }
 0x1d2   :  { %1411 = vmatprep.mubr.f32.mxu1 %v5818_v48 }
 0x1d5   :  { %1412 = vmatmul.mubr.f32.gmra.mrb[8].mxu1 %v5832_v58 }
 0x224   :  { %v1317_v48 = vpop.f32.mrb[2].mxu1 }
 0x225   :  { %v5252_v31 = vadd.f32 %v1317_v48, %v581_v30  ;;  %v1319_v58 = vpop.f32.mrb[3].mxu1 }
 0x226   :  { %v5253_v32 = vadd.f32 %v1319_v58, %v585_v60 }
 0x227   :  { %vm1418_vm1 = vcmp.ge.f32.partialorder %v5252_v31, 0.0  ;;  %v1426_v33 = vmul.f32 0.1, %v5252_v31 }
 0x228   :  { %vm1419_vm2 = vcmp.ge.f32.partialorder %v5253_v32, 0.0  ;;  %v1427_v34 = vmul.f32 0.1, %v5253_v32  ;;  %v1323_v35 = vpop.f32.mrb[4].mxu1 }
 0x229   :  { %v1434_v36 = vsel %vm1418_vm1, %v5252_v31, %v1426_v33  ;;  %v5254_v37 = vadd.f32 %v1323_v35, %v581_v30  ;;  %v1325_v38 = vpop.f32.mrb[5].mxu1 }
 0x22a   :  { %v1435_v39 = vsel %vm1419_vm2, %v5253_v32, %v1427_v34  ;;  %v5255_v40 = vadd.f32 %v1325_v38, %v585_v60 }
 0x22b   :  { %vm1422_vm3 = vcmp.ge.f32.partialorder %v5254_v37, 0.0  ;;  %v1430_v41 = vmul.f32 0.1, %v5254_v37 }
 0x22c   :  { %vm1423_vm4 = vcmp.ge.f32.partialorder %v5255_v40, 0.0  ;;  %v1431_v42 = vmul.f32 0.1, %v5255_v40 }
 0x22d   :  { %v1438_v43 = vsel %vm1422_vm3, %v5254_v37, %v1430_v41 }
 0x22e   :  { %v1439_v44 = vsel %vm1423_vm4, %v5255_v40, %v1431_v42 }
 0x2a4   :  { %v1407_v54 = vpop.f32.mrb[6].mxu1 }
 0x2a5   :  { %v5256_v55 = vadd.f32 %v1407_v54, %v589_v52  ;;  %v1409_v56 = vpop.f32.mrb[7].mxu1 }
 0x2a6   :  { %v5257_v57 = vadd.f32 %v1409_v56, %v593_v53 }
 0x2a7   :  { %vm1420_vm5 = vcmp.ge.f32.partialorder %v5256_v55, 0.0  ;;  %v1428_v59 = vmul.f32 0.1, %v5256_v55 }
 0x2a8   :  { %vm1421_vm6 = vcmp.ge.f32.partialorder %v5257_v57, 0.0  ;;  %v1429_v61 = vmul.f32 0.1, %v5257_v57  ;;  %v1413_v62 = vpop.f32.mrb[8].mxu1 }
 0x2a9   :  { %v1436_v63 = vsel %vm1420_vm5, %v5256_v55, %v1428_v59  ;;  %v5258_v0 = vadd.f32 %v1413_v62, %v589_v52  ;;  %v1415_v1 = vpop.f32.mrb[9].mxu1 }
 0x2aa   :  { %v1437_v2 = vsel %vm1421_vm6, %v5257_v57, %v1429_v61  ;;  %v5259_v3 = vadd.f32 %v1415_v1, %v593_v53 }
 0x2ab   :  { %vm1424_vm7 = vcmp.ge.f32.partialorder %v5258_v0, 0.0  ;;  %v1432_v4 = vmul.f32 0.1, %v5258_v0 }
 0x2ac   :  { %vm1425_vm8 = vcmp.ge.f32.partialorder %v5259_v3, 0.0  ;;  %v1433_v5 = vmul.f32 0.1, %v5259_v3 }
 0x2ad   :  { %v1440_v49 = vsel %vm1424_vm7, %v5258_v0, %v1432_v4 }
 0x2ae   :  { %v1441_v51 = vsel %vm1425_vm8, %v5259_v3, %v1433_v5 }
 0x2af   :  { %5644 = dma.done.wait [#allocation3], 32768 }
 0x2b0   :  { %5645 = vsyncadd [#allocation3], 4294934528  ;;  %v5173_v6 = vpack.c.bf16 %v1439_v44, %v1435_v39  ;;  %v5175_v7 = vpack.c.bf16 %v1438_v43, %v1434_v36  ;;  %v5658_v47 = vmov 0.0   ;;  %v5177_v8 = vpack.c.bf16 %v1441_v51, %v1437_v2  ;;  %v1703_v9 = vld [vmem:[%s6454_s6] sm:$0xff]  ;;  %v4728_v10 = vld [vmem:[%s6454_s6 + $0x8] sm:$0xff]  ;;  %s6473_s25 = sld [smem:[#allocation15_spill]] }
 0x2b1   :  { %1772 = vmatprep.mubr.f32.mxu0 %v5658_v47  ;;  %1990 = vmatprep.mubr.f32.mxu1 %v5658_v47  ;;  %v5179_v50 = vpack.c.bf16 %v1440_v49, %v1436_v63  ;;  %vm1704_vm9 = vcmask 130048   ;;  %v4731_v11 = vld [vmem:[%s6454_s6 + $0x10] sm:$0xff]  ;;  %v4734_v12 = vld [vmem:[%s6454_s6 + $0x18] sm:$0xff]  ;;  %v1447_v13 = vld [vmem:[#allocation2 + $0x8] sm:$0xff]  ;;  %vm2750_vm12 = vcmask 64512   ;;  %vm5659_vm13 = vmmov 0  }
 0x2b2   :  { %5174 = vmatprep.subr.bf16.mxu0 %v5173_v6  ;;  %5186 = vmatprep.subr.bf16.mxu1 %v5177_v8  ;;  %v1446_v14 = vld [vmem:[#allocation2] sm:$0xff]  ;;  %v1449_v15 = vld [vmem:[#allocation2 + $0x18] sm:$0xff]  ;;  %v1448_v16 = vld [vmem:[#allocation2 + $0x10] sm:$0xff]  ;;  %vm3668_vm15 = vcmask 1043456   ;;  %vm3664_vm0 = vcmask 31744   ;;  %s6474_s4 = sld [smem:[#allocation14_spill]] }
 0x2b3   :  { %5176 = vmatpush1.bf16.msra.mxu0 %v5175_v7  ;;  %5188 = vmatpush1.bf16.msra.mxu1 %v5179_v50  ;;  %v1451_v17 = vld [vmem:[#allocation2 + $0x28] sm:$0xff]  ;;  %v1450_v18 = vld [vmem:[#allocation2 + $0x20] sm:$0xff]  ;;  %v1453_v19 = vld [vmem:[#allocation2 + $0x38] sm:$0xff]  ;;  %vm4385_vm2 = vcmask 523264   ;;  %vm4358_vm3 = vcmask 123904   ;;  %vm4548_vm4 = vcmask 33792  }
 0x2b4   :  { %5178 = vmatprep.subr.bf16.mxu0 %v5177_v8  ;;  %5194 = vmatprep.subr.bf16.mxu1 %v5177_v8  ;;  %v1452_v20 = vld [vmem:[#allocation2 + $0x30] sm:$0xff]  ;;  %v1455_v21 = vld [vmem:[#allocation2 + $0x48] sm:$0xff]  ;;  %v1454_v22 = vld [vmem:[#allocation2 + $0x40] sm:$0xff] }
 0x2b5   :  { %v1457_v23 = vld [vmem:[#allocation2 + $0x58] sm:$0xff]  ;;  %v1456_v24 = vld [vmem:[#allocation2 + $0x50] sm:$0xff]  ;;  %v1459_v25 = vld [vmem:[#allocation2 + $0x68] sm:$0xff] }
 0x2b6   :  { %4726 = vmatmul.mubr.msk.f32.vlgmr.msra.gmra.mrb[6].mxu0 %vm1704_vm9, %v1703_v9  ;;  %4730 = vmatmul.mubr.msk.f32.vlgmr.msra.gmra.mrb[10].mxu1 %vm1704_vm9, %v4728_v10  ;;  %v1458_v28 = vld [vmem:[#allocation2 + $0x60] sm:$0xff]  ;;  %v1461_v30 = vld [vmem:[#allocation2 + $0x78] sm:$0xff]  ;;  %v1460_v60 = vld [vmem:[#allocation2 + $0x70] sm:$0xff] }
 0x2b7   :  { %5180 = vmatpush1.bf16.msra.mxu0 %v5179_v50  ;;  %1843 = vmatprep.mubr.f32.mxu0 %v5658_v47  ;;  %v1463_v48 = vld [vmem:[#allocation2 + $0x88] sm:$0xff]  ;;  %v1462_v31 = vld [vmem:[#allocation2 + $0x80] sm:$0xff]  ;;  %v1465_v58 = vld [vmem:[#allocation2 + $0x98] sm:$0xff] }
 0x2b8   :  { %5182 = vmatprep.subr.bf16.mxu0 %v5173_v6  ;;  %5196 = vmatpush1.bf16.msra.mxu1 %v5179_v50  ;;  %v1464_v32 = vld [vmem:[#allocation2 + $0x90] sm:$0xff]  ;;  %v1467_v33 = vld [vmem:[#allocation2 + $0xa8] sm:$0xff]  ;;  %v1466_v34 = vld [vmem:[#allocation2 + $0xa0] sm:$0xff] }
 0x2b9   :  { %2137 = vmatprep.mubr.f32.mxu1 %v5658_v47  ;;  %5202 = vmatprep.subr.bf16.mxu1 %v5177_v8  ;;  %v1469_v35 = vld [vmem:[#allocation2 + $0xb8] sm:$0xff]  ;;  %v1468_v36 = vld [vmem:[#allocation2 + $0xb0] sm:$0xff]  ;;  %v1471_v37 = vld [vmem:[#allocation2 + $0xc8] sm:$0xff] }
 0x2ba   :  { %4727 = vmatmul.mubr.msk.f32.vlgmr.msra.gmra.mrb[8].mxu0 %vm1704_vm9, %v1703_v9  ;;  %v1470_v38 = vld [vmem:[#allocation2 + $0xc0] sm:$0xff]  ;;  %v1473_v39 = vld [vmem:[#allocation2 + $0xd8] sm:$0xff]  ;;  %v1472_v40 = vld [vmem:[#allocation2 + $0xd0] sm:$0xff] }
 0x2bb   :  { %5184 = vmatpush1.bf16.msra.mxu0 %v5175_v7  ;;  %1919 = vmatprep.mubr.f32.mxu0 %v5658_v47  ;;  %v1475_v41 = vld [vmem:[#allocation2 + $0xe8] sm:$0xff]  ;;  %v1474_v42 = vld [vmem:[#allocation2 + $0xe0] sm:$0xff]  ;;  %v1477_v43 = vld [vmem:[#allocation2 + $0xf8] sm:$0xff] }
 0x2bc   :  { %5190 = vmatprep.subr.bf16.mxu0 %v5173_v6  ;;  %4733 = vmatmul.mubr.msk.f32.vlgmr.msra.gmra.mrb[12].mxu1 %vm1704_vm9, %v4731_v11  ;;  %v1476_v44 = vld [vmem:[#allocation2 + $0xf0] sm:$0xff]  ;;  %v1479_v45 = vld [vmem:[#allocation2 + $0x108] sm:$0xff]  ;;  %v1478_v53 = vld [vmem:[#allocation2 + $0x100] sm:$0xff] }
 0x2bd   :  { %5204 = vmatpush1.bf16.msra.mxu1 %v5179_v50  ;;  %2284 = vmatprep.mubr.f32.mxu1 %v5658_v47  ;;  %v1481_v54 = vld [vmem:[#allocation2 + $0x118] sm:$0xff]  ;;  %v1480_v56 = vld [vmem:[#allocation2 + $0x110] sm:$0xff]  ;;  %v1483_v59 = vld [vmem:[#allocation2 + $0x128] sm:$0xff] }
 0x2be   :  { %4729 = vmatmul.mubr.msk.f32.vlgmr.msra.gmra.mrb[10].mxu0 %vm1704_vm9, %v4728_v10  ;;  %v1482_v62 = vld [vmem:[#allocation2 + $0x120] sm:$0xff]  ;;  %v1485_v0 = vld [vmem:[#allocation2 + $0x138] sm:$0xff]  ;;  %v1484_v1 = vld [vmem:[#allocation2 + $0x130] sm:$0xff] }
 0x2bf   :  { %5192 = vmatpush1.bf16.msra.mxu0 %v5175_v7  ;;  %2066 = vmatprep.mubr.f32.mxu0 %v5658_v47  ;;  %v1487_v2 = vld [vmem:[#allocation2 + $0x148] sm:$0xff]  ;;  %v1486_v4 = vld [vmem:[#allocation2 + $0x140] sm:$0xff]  ;;  %v1489_v49 = vld [vmem:[#allocation2 + $0x158] sm:$0xff] }
 0x2c0   :  { %5198 = vmatprep.subr.bf16.mxu0 %v5173_v6  ;;  %4736 = vmatmul.mubr.msk.f32.vlgmr.msra.gmra.mrb[14].mxu1 %vm1704_vm9, %v4734_v12  ;;  %v1488_v6 = vld [vmem:[#allocation2 + $0x150] sm:$0xff]  ;;  %v1491_v8 = vld [vmem:[#allocation2 + $0x168] sm:$0xff]  ;;  %v1490_v50 = vld [vmem:[#allocation2 + $0x160] sm:$0xff] }
 0x2c1   :  { %2818 = vmatprep.mubr.f32.mxu1 %v5658_v47  ;;  %v1493_v9 = vld [vmem:[#allocation2 + $0x178] sm:$0xff]  ;;  %v1492_v10 = vld [vmem:[#allocation2 + $0x170] sm:$0xff]  ;;  %v4738_v26 = vld [vmem:[%s6457_s9 + $0x4] sm:$0xf] }
 0x2c2   :  { %4732 = vmatmul.mubr.msk.f32.vlgmr.msra.gmra.mrb[12].mxu0 %vm1704_vm9, %v4731_v11  ;;  %v1495_v11 = vld [vmem:[#allocation2 + $0x188] sm:$0xff] }
 0x2c3   :  { %5200 = vmatpush1.bf16.msra.mxu0 %v5175_v7  ;;  %2213 = vmatprep.mubr.f32.mxu0 %v5658_v47 }
 0x2c4   :  { %2302 = vmatprep.subr.bf16.mxu0 %v1447_v13  ;;  %v1497_v13 = vld [vmem:[#allocation2 + $0x198] sm:$0xff] }
 0x2c6   :  { %4735 = vmatmul.mubr.msk.f32.vlgmr.msra.gmra.mrb[14].mxu0 %vm1704_vm9, %v4734_v12  ;;  %v1494_v12 = vld [vmem:[#allocation2 + $0x180] sm:$0xff] }
 0x2c7   :  { %2303 = vmatpush1.bf16.msra.mxu0 %v1446_v14  ;;  %v1496_v14 = vld [vmem:[#allocation2 + $0x190] sm:$0xff] }
 0x2c8   :  { %2304 = vmatprep.subr.bf16.mxu0 %v1449_v15  ;;  %v1499_v15 = vld [vmem:[#allocation2 + $0x1a8] sm:$0xff] }
 0x2cb   :  { %2305 = vmatpush1.bf16.msra.mxu0 %v1448_v16  ;;  %v1498_v16 = vld [vmem:[#allocation2 + $0x1a0] sm:$0xff] }
 0x2cc   :  { %2306 = vmatprep.subr.bf16.mxu0 %v1451_v17  ;;  %v1501_v17 = vld [vmem:[#allocation2 + $0x1b8] sm:$0xff] }
 0x2cf   :  { %2307 = vmatpush1.bf16.msra.mxu0 %v1450_v18  ;;  %v1500_v18 = vld [vmem:[#allocation2 + $0x1b0] sm:$0xff] }
 0x2d0   :  { %2308 = vmatprep.subr.bf16.mxu0 %v1453_v19  ;;  %v1503_v19 = vld [vmem:[#allocation2 + $0x1c8] sm:$0xff] }
 0x2d3   :  { %2309 = vmatpush1.bf16.msra.mxu0 %v1452_v20  ;;  %v1502_v20 = vld [vmem:[#allocation2 + $0x1c0] sm:$0xff] }
 0x2d4   :  { %2310 = vmatprep.subr.bf16.mxu0 %v1455_v21  ;;  %v1505_v21 = vld [vmem:[#allocation2 + $0x1d8] sm:$0xff] }
 0x2d7   :  { %2311 = vmatpush1.bf16.msra.mxu0 %v1454_v22  ;;  %v1504_v22 = vld [vmem:[#allocation2 + $0x1d0] sm:$0xff] }
 0x2d8   :  { %2312 = vmatprep.subr.bf16.mxu0 %v1457_v23  ;;  %v1507_v23 = vld [vmem:[#allocation2 + $0x1e8] sm:$0xff] }
 0x2db   :  { %2313 = vmatpush1.bf16.msra.mxu0 %v1456_v24  ;;  %v1506_v24 = vld [vmem:[#allocation2 + $0x1e0] sm:$0xff] }
 0x2dc   :  { %2314 = vmatprep.subr.bf16.mxu0 %v1459_v25  ;;  %v1509_v25 = vld [vmem:[#allocation2 + $0x1f8] sm:$0xff] }
 0x2df   :  { %2315 = vmatpush1.bf16.msra.mxu0 %v1458_v28  ;;  %v1508_v28 = vld [vmem:[#allocation2 + $0x1f0] sm:$0xff] }
 0x2e0   :  { %2316 = vmatprep.subr.bf16.mxu0 %v1461_v30 }
 0x2e3   :  { %2317 = vmatpush1.bf16.msra.mxu0 %v1460_v60  ;;  %v1511_v60 = vld [vmem:[#allocation2 + $0x208] sm:$0xff] }
 0x2e4   :  { %2318 = vmatprep.subr.bf16.mxu0 %v1463_v48 }
 0x2e7   :  { %2319 = vmatpush1.bf16.msra.mxu0 %v1462_v31  ;;  %v1510_v31 = vld [vmem:[#allocation2 + $0x200] sm:$0xff] }
 0x2e8   :  { %2320 = vmatprep.subr.bf16.mxu0 %v1465_v58  ;;  %v1513_v58 = vld [vmem:[#allocation2 + $0x218] sm:$0xff] }
 0x2eb   :  { %2321 = vmatpush1.bf16.msra.mxu0 %v1464_v32  ;;  %v1512_v32 = vld [vmem:[#allocation2 + $0x210] sm:$0xff] }
 0x2ec   :  { %2322 = vmatprep.subr.bf16.mxu0 %v1467_v33  ;;  %v1515_v33 = vld [vmem:[#allocation2 + $0x228] sm:$0xff] }
 0x2ef   :  { %2323 = vmatpush1.bf16.msra.mxu0 %v1466_v34  ;;  %v1514_v34 = vld [vmem:[#allocation2 + $0x220] sm:$0xff] }
 0x2f0   :  { %2324 = vmatprep.subr.bf16.mxu0 %v1469_v35  ;;  %v1517_v35 = vld [vmem:[#allocation2 + $0x238] sm:$0xff] }
 0x2f3   :  { %2325 = vmatpush1.bf16.msra.mxu0 %v1468_v36  ;;  %v1516_v36 = vld [vmem:[#allocation2 + $0x230] sm:$0xff] }
 0x2f4   :  { %2326 = vmatprep.subr.bf16.mxu0 %v1471_v37  ;;  %v1519_v37 = vld [vmem:[#allocation2 + $0x248] sm:$0xff] }
 0x2f7   :  { %2327 = vmatpush1.bf16.msra.mxu0 %v1470_v38  ;;  %v1518_v38 = vld [vmem:[#allocation2 + $0x240] sm:$0xff] }
 0x2f8   :  { %2328 = vmatprep.subr.bf16.mxu0 %v1473_v39  ;;  %v1521_v39 = vld [vmem:[#allocation2 + $0x258] sm:$0xff] }
 0x2fb   :  { %2329 = vmatpush1.bf16.msra.mxu0 %v1472_v40  ;;  %v1520_v40 = vld [vmem:[#allocation2 + $0x250] sm:$0xff] }
 0x2fc   :  { %2330 = vmatprep.subr.bf16.mxu0 %v1475_v41  ;;  %v1523_v41 = vld [vmem:[#allocation2 + $0x268] sm:$0xff] }
 0x2ff   :  { %2331 = vmatpush1.bf16.msra.mxu0 %v1474_v42  ;;  %v1522_v42 = vld [vmem:[#allocation2 + $0x260] sm:$0xff] }
 0x300   :  { %2332 = vmatprep.subr.bf16.mxu0 %v1477_v43  ;;  %v1525_v43 = vld [vmem:[#allocation2 + $0x278] sm:$0xff] }
 0x303   :  { %2333 = vmatpush1.bf16.msra.mxu0 %v1476_v44  ;;  %v1524_v44 = vld [vmem:[#allocation2 + $0x270] sm:$0xff] }
 0x304   :  { %2341 = vmatprep.subr.bf16.mxu0 %v1479_v45  ;;  %v1527_v45 = vld [vmem:[#allocation2 + $0x288] sm:$0xff] }
 0x389   :  { %v1774_v46 = vpop.f32.mrb[6].mxu0  ;;  %v5904_v30 = vpop.f32.mrb[10].mxu1 }
 0x38a   :  { %v1776_v52 = vpop.f32.mrb[7].mxu0  ;;  %v5906_v48 = vpop.f32.mrb[11].mxu1 }
 0x38b   :  { %2334 = vmatprep.mubr.f32.mxu0 %v1776_v52  ;;  %v1529_v52 = vld [vmem:[#allocation2 + $0x298] sm:$0xff] }
 0x38c   :  { %2335 = vmatmul.mubr.f32.vlgmr.msra.gmra.mrb[16].mxu0 %v1774_v46  ;;  %v1526_v46 = vld [vmem:[#allocation2 + $0x280] sm:$0xff] }
 0x38d   :  { %2342 = vmatpush1.bf16.msra.mxu0 %v1478_v53  ;;  %v5890_v55 = vpop.f32.mrb[8].mxu0  ;;  %v1528_v53 = vld [vmem:[#allocation2 + $0x290] sm:$0xff] }
 0x38e   :  { %2343 = vmatprep.subr.bf16.mxu0 %v1481_v54  ;;  %v1847_v57 = vpop.f32.mrb[9].mxu0  ;;  %v1531_v54 = vld [vmem:[#allocation2 + $0x2a8] sm:$0xff] }
 0x38f   :  { %2373 = vmatprep.mubr.f32.mxu0 %v1847_v57  ;;  %v1532_v57 = vld [vmem:[#allocation2 + $0x2b0] sm:$0xff] }
 0x391   :  { %2344 = vmatpush1.bf16.msra.mxu0 %v1480_v56  ;;  %v5892_v61 = vpop.f32.mrb[10].mxu0  ;;  %v1533_v56 = vld [vmem:[#allocation2 + $0x2b8] sm:$0xff] }
 0x392   :  { %2345 = vmatprep.subr.bf16.mxu0 %v1483_v59  ;;  %v5894_v63 = vpop.f32.mrb[11].mxu0  ;;  %v1535_v59 = vld [vmem:[#allocation2 + $0x2c8] sm:$0xff] }
 0x395   :  { %2346 = vmatpush1.bf16.msra.mxu0 %v1482_v62  ;;  %v5896_v3 = vpop.f32.mrb[12].mxu0  ;;  %v1534_v62 = vld [vmem:[#allocation2 + $0x2c0] sm:$0xff] }
 0x396   :  { %2347 = vmatprep.subr.bf16.mxu0 %v1485_v0  ;;  %v5898_v5 = vpop.f32.mrb[13].mxu0  ;;  %v1536_v0 = vld [vmem:[#allocation2 + $0x2d0] sm:$0xff] }
 0x399   :  { %2348 = vmatpush1.bf16.msra.mxu0 %v1484_v1  ;;  %v5900_v51 = vpop.f32.mrb[14].mxu0  ;;  %v1539_v1 = vld [vmem:[#allocation2 + $0x2e8] sm:$0xff] }
 0x39a   :  { %2349 = vmatprep.subr.bf16.mxu0 %v1487_v2  ;;  %v5902_v7 = vpop.f32.mrb[15].mxu0  ;;  %v1538_v2 = vld [vmem:[#allocation2 + $0x2e0] sm:$0xff] }
 0x39d   :  { %2350 = vmatpush1.bf16.msra.mxu0 %v1486_v4  ;;  %v1541_v4 = vld [vmem:[#allocation2 + $0x2f8] sm:$0xff] }
 0x39e   :  { %2351 = vmatprep.subr.bf16.mxu0 %v1489_v49  ;;  %v1540_v49 = vld [vmem:[#allocation2 + $0x2f0] sm:$0xff] }
 0x3a1   :  { %2352 = vmatpush1.bf16.msra.mxu0 %v1488_v6  ;;  %v1543_v6 = vld [vmem:[#allocation2 + $0x308] sm:$0xff] }
 0x3a2   :  { %2353 = vmatprep.subr.bf16.mxu0 %v1491_v8  ;;  %v1542_v8 = vld [vmem:[#allocation2 + $0x300] sm:$0xff] }
 0x3a5   :  { %2354 = vmatpush1.bf16.msra.mxu0 %v1490_v50  ;;  %v1545_v50 = vld [vmem:[#allocation2 + $0x318] sm:$0xff] }
 0x3a6   :  { %2355 = vmatprep.subr.bf16.mxu0 %v1493_v9  ;;  %v1544_v9 = vld [vmem:[#allocation2 + $0x310] sm:$0xff] }
 0x3a9   :  { %2356 = vmatpush1.bf16.msra.mxu0 %v1492_v10  ;;  %v1547_v10 = vld [vmem:[#allocation2 + $0x328] sm:$0xff] }
 0x3aa   :  { %2357 = vmatprep.subr.bf16.mxu0 %v1495_v11  ;;  %v1546_v11 = vld [vmem:[#allocation2 + $0x320] sm:$0xff] }
 0x3ad   :  { %2358 = vmatpush1.bf16.msra.mxu0 %v1494_v12  ;;  %v1549_v12 = vld [vmem:[#allocation2 + $0x338] sm:$0xff] }
 0x3ae   :  { %2359 = vmatprep.subr.bf16.mxu0 %v1497_v13  ;;  %v1548_v13 = vld [vmem:[#allocation2 + $0x330] sm:$0xff] }
 0x3b1   :  { %2360 = vmatpush1.bf16.msra.mxu0 %v1496_v14  ;;  %v1551_v14 = vld [vmem:[#allocation2 + $0x348] sm:$0xff] }
 0x3b2   :  { %2361 = vmatprep.subr.bf16.mxu0 %v1499_v15  ;;  %v1550_v15 = vld [vmem:[#allocation2 + $0x340] sm:$0xff] }
 0x3b5   :  { %2362 = vmatpush1.bf16.msra.mxu0 %v1498_v16  ;;  %v1553_v16 = vld [vmem:[#allocation2 + $0x358] sm:$0xff] }
 0x3b6   :  { %2363 = vmatprep.subr.bf16.mxu0 %v1501_v17  ;;  %v1555_v17 = vld [vmem:[#allocation2 + $0x368] sm:$0xff] }
 0x3b9   :  { %2364 = vmatpush1.bf16.msra.mxu0 %v1500_v18  ;;  %v1554_v18 = vld [vmem:[#allocation2 + $0x360] sm:$0xff] }
 0x3ba   :  { %2365 = vmatprep.subr.bf16.mxu0 %v1503_v19  ;;  %v1557_v19 = vld [vmem:[#allocation2 + $0x378] sm:$0xff] }
 0x3bd   :  { %2366 = vmatpush1.bf16.msra.mxu0 %v1502_v20  ;;  %v1556_v20 = vld [vmem:[#allocation2 + $0x370] sm:$0xff] }
 0x3be   :  { %2367 = vmatprep.subr.bf16.mxu0 %v1505_v21  ;;  %v1559_v21 = vld [vmem:[#allocation2 + $0x388] sm:$0xff] }
 0x3c1   :  { %2368 = vmatpush1.bf16.msra.mxu0 %v1504_v22  ;;  %v1558_v22 = vld [vmem:[#allocation2 + $0x380] sm:$0xff] }
 0x3c2   :  { %2369 = vmatprep.subr.bf16.mxu0 %v1507_v23  ;;  %v1561_v23 = vld [vmem:[#allocation2 + $0x398] sm:$0xff] }
 0x3c5   :  { %2370 = vmatpush1.bf16.msra.mxu0 %v1506_v24  ;;  %v1560_v24 = vld [vmem:[#allocation2 + $0x390] sm:$0xff] }
 0x3c6   :  { %2371 = vmatprep.subr.bf16.mxu0 %v1509_v25  ;;  %v1563_v25 = vld [vmem:[#allocation2 + $0x3a8] sm:$0xff] }
 0x3c9   :  { %2372 = vmatpush1.bf16.msra.mxu0 %v1508_v28  ;;  %v1562_v28 = vld [vmem:[#allocation2 + $0x3a0] sm:$0xff] }
 0x3ca   :  { %2380 = vmatprep.subr.bf16.mxu0 %v1511_v60  ;;  %v1565_v60 = vld [vmem:[#allocation2 + $0x3b8] sm:$0xff] }
 0x3cc   :  { %2374 = vmatmul.mubr.f32.vlgmr.msra.gmra.mrb[16].mxu0 %v5890_v55  ;;  %v1530_v55 = vld [vmem:[#allocation2 + $0x2a0] sm:$0xff] }
 0x3cd   :  { %2381 = vmatpush1.bf16.msra.mxu0 %v1510_v31  ;;  %2412 = vmatprep.mubr.f32.mxu0 %v5894_v63  ;;  %v1537_v63 = vld [vmem:[#allocation2 + $0x2d8] sm:$0xff]  ;;  %v1567_v31 = vld [vmem:[#allocation2 + $0x3c8] sm:$0xff] }
 0x3ce   :  { %2382 = vmatprep.subr.bf16.mxu0 %v1513_v58  ;;  %v1566_v58 = vld [vmem:[#allocation2 + $0x3c0] sm:$0xff] }
 0x3d1   :  { %2383 = vmatpush1.bf16.msra.mxu0 %v1512_v32  ;;  %v1569_v32 = vld [vmem:[#allocation2 + $0x3d8] sm:$0xff] }
 0x3d2   :  { %2384 = vmatprep.subr.bf16.mxu0 %v1515_v33  ;;  %v1568_v33 = vld [vmem:[#allocation2 + $0x3d0] sm:$0xff] }
 0x3d5   :  { %2385 = vmatpush1.bf16.msra.mxu0 %v1514_v34  ;;  %v1571_v34 = vld [vmem:[#allocation2 + $0x3e8] sm:$0xff] }
 0x3d6   :  { %2386 = vmatprep.subr.bf16.mxu0 %v1517_v35  ;;  %v1570_v35 = vld [vmem:[#allocation2 + $0x3e0] sm:$0xff] }
 0x3d9   :  { %2387 = vmatpush1.bf16.msra.mxu0 %v1516_v36  ;;  %v1573_v36 = vld [vmem:[#allocation2 + $0x3f8] sm:$0xff] }
 0x3da   :  { %2388 = vmatprep.subr.bf16.mxu0 %v1519_v37  ;;  %v1572_v37 = vld [vmem:[#allocation2 + $0x3f0] sm:$0xff] }
 0x3dd   :  { %2389 = vmatpush1.bf16.msra.mxu0 %v1518_v38  ;;  %v5912_v38 = vpop.f32.mrb[12].mxu1 }
 0x3de   :  { %2390 = vmatprep.subr.bf16.mxu0 %v1521_v39  ;;  %v1575_v39 = vld [vmem:[#allocation2 + $0x408] sm:$0xff] }
 0x3e1   :  { %2391 = vmatpush1.bf16.msra.mxu0 %v1520_v40  ;;  %v5914_v40 = vpop.f32.mrb[13].mxu1 }
 0x3e2   :  { %2392 = vmatprep.subr.bf16.mxu0 %v1523_v41  ;;  %v1574_v41 = vld [vmem:[#allocation2 + $0x400] sm:$0xff] }
 0x3e5   :  { %2393 = vmatpush1.bf16.msra.mxu0 %v1522_v42  ;;  %v1577_v42 = vld [vmem:[#allocation2 + $0x418] sm:$0xff] }
 0x3e6   :  { %2394 = vmatprep.subr.bf16.mxu0 %v1525_v43  ;;  %v1576_v43 = vld [vmem:[#allocation2 + $0x410] sm:$0xff] }
 0x3e9   :  { %2395 = vmatpush1.bf16.msra.mxu0 %v1524_v44  ;;  %v1579_v44 = vld [vmem:[#allocation2 + $0x428] sm:$0xff] }
 0x3ea   :  { %2396 = vmatprep.subr.bf16.mxu0 %v1527_v45  ;;  %v1578_v45 = vld [vmem:[#allocation2 + $0x420] sm:$0xff] }
 0x3ed   :  { %2397 = vmatpush1.bf16.msra.mxu0 %v1526_v46  ;;  %v1581_v46 = vld [vmem:[#allocation2 + $0x438] sm:$0xff] }
 0x3ee   :  { %2398 = vmatprep.subr.bf16.mxu0 %v1529_v52  ;;  %v1580_v52 = vld [vmem:[#allocation2 + $0x430] sm:$0xff] }
 0x3f1   :  { %2399 = vmatpush1.bf16.msra.mxu0 %v1528_v53  ;;  %v1583_v53 = vld [vmem:[#allocation2 + $0x448] sm:$0xff] }
 0x3f2   :  { %2400 = vmatprep.subr.bf16.mxu0 %v1531_v54  ;;  %v1582_v54 = vld [vmem:[#allocation2 + $0x440] sm:$0xff] }
 0x3f5   :  { %2401 = vmatpush1.bf16.msra.mxu0 %v1530_v55  ;;  %v1585_v55 = vld [vmem:[#allocation2 + $0x458] sm:$0xff] }
 0x3f6   :  { %2402 = vmatprep.subr.bf16.mxu0 %v1533_v56  ;;  %v1587_v56 = vld [vmem:[#allocation2 + $0x468] sm:$0xff] }
 0x3f9   :  { %2403 = vmatpush1.bf16.msra.mxu0 %v1532_v57  ;;  %v1589_v57 = vld [vmem:[#allocation2 + $0x478] sm:$0xff] }
 0x3fa   :  { %2404 = vmatprep.subr.bf16.mxu0 %v1535_v59  ;;  %v1588_v59 = vld [vmem:[#allocation2 + $0x470] sm:$0xff] }
 0x3fd   :  { %2405 = vmatpush1.bf16.msra.mxu0 %v1534_v62  ;;  %v1591_v62 = vld [vmem:[#allocation2 + $0x488] sm:$0xff] }
 0x3fe   :  { %2406 = vmatprep.subr.bf16.mxu0 %v1537_v63  ;;  %v1590_v63 = vld [vmem:[#allocation2 + $0x480] sm:$0xff] }
 0x401   :  { %2407 = vmatpush1.bf16.msra.mxu0 %v1536_v0  ;;  %v1593_v0 = vld [vmem:[#allocation2 + $0x498] sm:$0xff] }
 0x402   :  { %2408 = vmatprep.subr.bf16.mxu0 %v1539_v1  ;;  %v1592_v1 = vld [vmem:[#allocation2 + $0x490] sm:$0xff] }
 0x405   :  { %2409 = vmatpush1.bf16.msra.mxu0 %v1538_v2  ;;  %v1595_v2 = vld [vmem:[#allocation2 + $0x4a8] sm:$0xff] }
 0x406   :  { %2410 = vmatprep.subr.bf16.mxu0 %v1541_v4  ;;  %v1594_v4 = vld [vmem:[#allocation2 + $0x4a0] sm:$0xff] }
 0x409   :  { %2411 = vmatpush1.bf16.msra.mxu0 %v1540_v49  ;;  %v1597_v49 = vld [vmem:[#allocation2 + $0x4b8] sm:$0xff] }
 0x40a   :  { %2419 = vmatprep.subr.bf16.mxu0 %v1543_v6  ;;  %v1596_v6 = vld [vmem:[#allocation2 + $0x4b0] sm:$0xff] }
 0x40c   :  { %2413 = vmatmul.mubr.f32.vlgmr.msra.gmra.mrb[16].mxu0 %v5892_v61  ;;  %v1552_v61 = vld [vmem:[#allocation2 + $0x350] sm:$0xff] }
 0x40d   :  { %2420 = vmatpush1.bf16.msra.mxu0 %v1542_v8  ;;  %2451 = vmatprep.mubr.f32.mxu0 %v5906_v48  ;;  %v1564_v48 = vld [vmem:[#allocation2 + $0x3b0] sm:$0xff]  ;;  %v1599_v8 = vld [vmem:[#allocation2 + $0x4c8] sm:$0xff] }
 0x40e   :  { %2421 = vmatprep.subr.bf16.mxu0 %v1545_v50  ;;  %v1598_v50 = vld [vmem:[#allocation2 + $0x4c0] sm:$0xff] }
 0x411   :  { %2422 = vmatpush1.bf16.msra.mxu0 %v1544_v9  ;;  %v1601_v9 = vld [vmem:[#allocation2 + $0x4d8] sm:$0xff] }
 0x412   :  { %2423 = vmatprep.subr.bf16.mxu0 %v1547_v10  ;;  %v1600_v10 = vld [vmem:[#allocation2 + $0x4d0] sm:$0xff] }
 0x415   :  { %2424 = vmatpush1.bf16.msra.mxu0 %v1546_v11  ;;  %v1603_v11 = vld [vmem:[#allocation2 + $0x4e8] sm:$0xff] }
 0x416   :  { %2425 = vmatprep.subr.bf16.mxu0 %v1549_v12  ;;  %v1602_v12 = vld [vmem:[#allocation2 + $0x4e0] sm:$0xff] }
 0x419   :  { %2426 = vmatpush1.bf16.msra.mxu0 %v1548_v13  ;;  %v1605_v13 = vld [vmem:[#allocation2 + $0x4f8] sm:$0xff] }
 0x41a   :  { %2427 = vmatprep.subr.bf16.mxu0 %v1551_v14  ;;  %v1604_v14 = vld [vmem:[#allocation2 + $0x4f0] sm:$0xff] }
 0x41d   :  { %2428 = vmatpush1.bf16.msra.mxu0 %v1550_v15  ;;  %v1607_v15 = vld [vmem:[#allocation2 + $0x508] sm:$0xff] }
 0x41e   :  { %2429 = vmatprep.subr.bf16.mxu0 %v1553_v16  ;;  %v1606_v16 = vld [vmem:[#allocation2 + $0x500] sm:$0xff] }
 0x421   :  { %2430 = vmatpush1.bf16.msra.mxu0 %v1552_v61  ;;  %v1609_v61 = vld [vmem:[#allocation2 + $0x518] sm:$0xff] }
 0x422   :  { %2431 = vmatprep.subr.bf16.mxu0 %v1555_v17  ;;  %v1608_v17 = vld [vmem:[#allocation2 + $0x510] sm:$0xff] }
 0x425   :  { %2432 = vmatpush1.bf16.msra.mxu0 %v1554_v18  ;;  %v1611_v18 = vld [vmem:[#allocation2 + $0x528] sm:$0xff] }
 0x426   :  { %2433 = vmatprep.subr.bf16.mxu0 %v1557_v19  ;;  %v1610_v19 = vld [vmem:[#allocation2 + $0x520] sm:$0xff] }
 0x429   :  { %2434 = vmatpush1.bf16.msra.mxu0 %v1556_v20  ;;  %v1613_v20 = vld [vmem:[#allocation2 + $0x538] sm:$0xff] }
 0x42a   :  { %2435 = vmatprep.subr.bf16.mxu0 %v1559_v21  ;;  %v1612_v21 = vld [vmem:[#allocation2 + $0x530] sm:$0xff] }
 0x42d   :  { %2436 = vmatpush1.bf16.msra.mxu0 %v1558_v22  ;;  %v1615_v22 = vld [vmem:[#allocation2 + $0x548] sm:$0xff] }
 0x42e   :  { %2437 = vmatprep.subr.bf16.mxu0 %v1561_v23  ;;  %v1614_v23 = vld [vmem:[#allocation2 + $0x540] sm:$0xff] }
 0x431   :  { %2438 = vmatpush1.bf16.msra.mxu0 %v1560_v24  ;;  %v1617_v24 = vld [vmem:[#allocation2 + $0x558] sm:$0xff] }
 0x432   :  { %2439 = vmatprep.subr.bf16.mxu0 %v1563_v25  ;;  %v1619_v25 = vld [vmem:[#allocation2 + $0x568] sm:$0xff] }
 0x435   :  { %2440 = vmatpush1.bf16.msra.mxu0 %v1562_v28  ;;  %v1618_v28 = vld [vmem:[#allocation2 + $0x560] sm:$0xff] }
 0x436   :  { %2441 = vmatprep.subr.bf16.mxu0 %v1565_v60  ;;  %v1621_v60 = vld [vmem:[#allocation2 + $0x578] sm:$0xff] }
 0x439   :  { %2442 = vmatpush1.bf16.msra.mxu0 %v1564_v48  ;;  %v1620_v48 = vld [vmem:[#allocation2 + $0x570] sm:$0xff] }
 0x43a   :  { %2443 = vmatprep.subr.bf16.mxu0 %v1567_v31  ;;  %v1623_v31 = vld [vmem:[#allocation2 + $0x588] sm:$0xff] }
 0x43d   :  { %2444 = vmatpush1.bf16.msra.mxu0 %v1566_v58  ;;  %v1622_v58 = vld [vmem:[#allocation2 + $0x580] sm:$0xff] }
 0x43e   :  { %2445 = vmatprep.subr.bf16.mxu0 %v1569_v32  ;;  %v1625_v32 = vld [vmem:[#allocation2 + $0x598] sm:$0xff] }
 0x441   :  { %2446 = vmatpush1.bf16.msra.mxu0 %v1568_v33  ;;  %v1624_v33 = vld [vmem:[#allocation2 + $0x590] sm:$0xff] }
 0x442   :  { %2447 = vmatprep.subr.bf16.mxu0 %v1571_v34  ;;  %v1627_v34 = vld [vmem:[#allocation2 + $0x5a8] sm:$0xff] }
 0x445   :  { %2448 = vmatpush1.bf16.msra.mxu0 %v1570_v35  ;;  %v1626_v35 = vld [vmem:[#allocation2 + $0x5a0] sm:$0xff] }
 0x446   :  { %2449 = vmatprep.subr.bf16.mxu0 %v1573_v36  ;;  %v1629_v36 = vld [vmem:[#allocation2 + $0x5b8] sm:$0xff] }
 0x449   :  { %2450 = vmatpush1.bf16.msra.mxu0 %v1572_v37  ;;  %v1628_v37 = vld [vmem:[#allocation2 + $0x5b0] sm:$0xff] }
 0x44a   :  { %2458 = vmatprep.subr.bf16.mxu0 %v1575_v39  ;;  %v1631_v39 = vld [vmem:[#allocation2 + $0x5c8] sm:$0xff] }
 0x44c   :  { %2452 = vmatmul.mubr.f32.vlgmr.msra.gmra.mrb[16].mxu0 %v5904_v30  ;;  %v1584_v30 = vld [vmem:[#allocation2 + $0x450] sm:$0xff] }
 0x44d   :  { %2459 = vmatpush1.bf16.msra.mxu0 %v1574_v41  ;;  %2490 = vmatprep.mubr.f32.mxu0 %v5898_v5  ;;  %v1586_v5 = vld [vmem:[#allocation2 + $0x460] sm:$0xff]  ;;  %v1633_v41 = vld [vmem:[#allocation2 + $0x5d8] sm:$0xff] }
 0x44e   :  { %2460 = vmatprep.subr.bf16.mxu0 %v1577_v42  ;;  %v1632_v42 = vld [vmem:[#allocation2 + $0x5d0] sm:$0xff] }
 0x451   :  { %2461 = vmatpush1.bf16.msra.mxu0 %v1576_v43  ;;  %v1635_v43 = vld [vmem:[#allocation2 + $0x5e8] sm:$0xff] }
 0x452   :  { %2462 = vmatprep.subr.bf16.mxu0 %v1579_v44  ;;  %v1634_v44 = vld [vmem:[#allocation2 + $0x5e0] sm:$0xff] }
 0x455   :  { %2463 = vmatpush1.bf16.msra.mxu0 %v1578_v45  ;;  %v1637_v45 = vld [vmem:[#allocation2 + $0x5f8] sm:$0xff] }
 0x456   :  { %2464 = vmatprep.subr.bf16.mxu0 %v1581_v46  ;;  %v5920_v46 = vpop.f32.mrb[14].mxu1 }
 0x459   :  { %2465 = vmatpush1.bf16.msra.mxu0 %v1580_v52  ;;  %v1636_v52 = vld [vmem:[#allocation2 + $0x5f0] sm:$0xff] }
 0x45a   :  { %2466 = vmatprep.subr.bf16.mxu0 %v1583_v53  ;;  %v5922_v53 = vpop.f32.mrb[15].mxu1 }
 0x45d   :  { %2467 = vmatpush1.bf16.msra.mxu0 %v1582_v54  ;;  %v1639_v54 = vld [vmem:[#allocation2 + $0x608] sm:$0xff] }
 0x45e   :  { %2468 = vmatprep.subr.bf16.mxu0 %v1585_v55  ;;  %v1638_v55 = vld [vmem:[#allocation2 + $0x600] sm:$0xff] }
 0x461   :  { %2469 = vmatpush1.bf16.msra.mxu0 %v1584_v30  ;;  %v1641_v30 = vld [vmem:[#allocation2 + $0x618] sm:$0xff] }
 0x462   :  { %2470 = vmatprep.subr.bf16.mxu0 %v1587_v56  ;;  %v1640_v56 = vld [vmem:[#allocation2 + $0x610] sm:$0xff] }
 0x465   :  { %2471 = vmatpush1.bf16.msra.mxu0 %v1586_v5  ;;  %v1643_v5 = vld [vmem:[#allocation2 + $0x628] sm:$0xff] }
 0x466   :  { %2472 = vmatprep.subr.bf16.mxu0 %v1589_v57  ;;  %v1642_v57 = vld [vmem:[#allocation2 + $0x620] sm:$0xff] }
 0x469   :  { %2473 = vmatpush1.bf16.msra.mxu0 %v1588_v59  ;;  %v1645_v59 = vld [vmem:[#allocation2 + $0x638] sm:$0xff] }
 0x46a   :  { %2474 = vmatprep.subr.bf16.mxu0 %v1591_v62  ;;  %v1644_v62 = vld [vmem:[#allocation2 + $0x630] sm:$0xff] }
 0x46d   :  { %2475 = vmatpush1.bf16.msra.mxu0 %v1590_v63  ;;  %v1647_v63 = vld [vmem:[#allocation2 + $0x648] sm:$0xff] }
 0x46e   :  { %2476 = vmatprep.subr.bf16.mxu0 %v1593_v0  ;;  %v1646_v0 = vld [vmem:[#allocation2 + $0x640] sm:$0xff] }
 0x471   :  { %2477 = vmatpush1.bf16.msra.mxu0 %v1592_v1  ;;  %v1649_v1 = vld [vmem:[#allocation2 + $0x658] sm:$0xff] }
 0x472   :  { %2478 = vmatprep.subr.bf16.mxu0 %v1595_v2  ;;  %v1651_v2 = vld [vmem:[#allocation2 + $0x668] sm:$0xff] }
 0x475   :  { %2479 = vmatpush1.bf16.msra.mxu0 %v1594_v4  ;;  %v1653_v4 = vld [vmem:[#allocation2 + $0x678] sm:$0xff] }
 0x476   :  { %2480 = vmatprep.subr.bf16.mxu0 %v1597_v49  ;;  %v1652_v49 = vld [vmem:[#allocation2 + $0x670] sm:$0xff] }
 0x479   :  { %2481 = vmatpush1.bf16.msra.mxu0 %v1596_v6  ;;  %v1655_v6 = vld [vmem:[#allocation2 + $0x688] sm:$0xff] }
 0x47a   :  { %2482 = vmatprep.subr.bf16.mxu0 %v1599_v8  ;;  %v1654_v8 = vld [vmem:[#allocation2 + $0x680] sm:$0xff] }
 0x47d   :  { %2483 = vmatpush1.bf16.msra.mxu0 %v1598_v50  ;;  %v1657_v50 = vld [vmem:[#allocation2 + $0x698] sm:$0xff] }
 0x47e   :  { %2484 = vmatprep.subr.bf16.mxu0 %v1601_v9  ;;  %v1656_v9 = vld [vmem:[#allocation2 + $0x690] sm:$0xff] }
 0x481   :  { %2485 = vmatpush1.bf16.msra.mxu0 %v1600_v10  ;;  %v1659_v10 = vld [vmem:[#allocation2 + $0x6a8] sm:$0xff] }
 0x482   :  { %2486 = vmatprep.subr.bf16.mxu0 %v1603_v11  ;;  %v1658_v11 = vld [vmem:[#allocation2 + $0x6a0] sm:$0xff] }
 0x485   :  { %2487 = vmatpush1.bf16.msra.mxu0 %v1602_v12  ;;  %v1661_v12 = vld [vmem:[#allocation2 + $0x6b8] sm:$0xff] }
 0x486   :  { %2488 = vmatprep.subr.bf16.mxu0 %v1605_v13  ;;  %v1660_v13 = vld [vmem:[#allocation2 + $0x6b0] sm:$0xff] }
 0x489   :  { %2489 = vmatpush1.bf16.msra.mxu0 %v1604_v14  ;;  %v1663_v14 = vld [vmem:[#allocation2 + $0x6c8] sm:$0xff] }
 0x48a   :  { %2497 = vmatprep.subr.bf16.mxu0 %v1607_v15  ;;  %v1662_v15 = vld [vmem:[#allocation2 + $0x6c0] sm:$0xff] }
 0x48c   :  { %2491 = vmatmul.mubr.f32.vlgmr.msra.gmra.mrb[16].mxu0 %v5896_v3  ;;  %v1616_v3 = vld [vmem:[#allocation2 + $0x550] sm:$0xff] }
 0x48d   :  { %2498 = vmatpush1.bf16.msra.mxu0 %v1606_v16  ;;  %2529 = vmatprep.mubr.f32.mxu0 %v5914_v40  ;;  %v1630_v40 = vld [vmem:[#allocation2 + $0x5c0] sm:$0xff]  ;;  %v1665_v16 = vld [vmem:[#allocation2 + $0x6d8] sm:$0xff] }
 0x48e   :  { %2499 = vmatprep.subr.bf16.mxu0 %v1609_v61  ;;  %v1664_v61 = vld [vmem:[#allocation2 + $0x6d0] sm:$0xff] }
 0x491   :  { %2500 = vmatpush1.bf16.msra.mxu0 %v1608_v17  ;;  %v1667_v17 = vld [vmem:[#allocation2 + $0x6e8] sm:$0xff] }
 0x492   :  { %2501 = vmatprep.subr.bf16.mxu0 %v1611_v18  ;;  %v1666_v18 = vld [vmem:[#allocation2 + $0x6e0] sm:$0xff] }
 0x495   :  { %2502 = vmatpush1.bf16.msra.mxu0 %v1610_v19  ;;  %v1669_v19 = vld [vmem:[#allocation2 + $0x6f8] sm:$0xff] }
 0x496   :  { %2503 = vmatprep.subr.bf16.mxu0 %v1613_v20  ;;  %v1668_v20 = vld [vmem:[#allocation2 + $0x6f0] sm:$0xff] }
 0x499   :  { %2504 = vmatpush1.bf16.msra.mxu0 %v1612_v21  ;;  %v1671_v21 = vld [vmem:[#allocation2 + $0x708] sm:$0xff] }
 0x49a   :  { %2505 = vmatprep.subr.bf16.mxu0 %v1615_v22  ;;  %v1670_v22 = vld [vmem:[#allocation2 + $0x700] sm:$0xff] }
 0x49d   :  { %2506 = vmatpush1.bf16.msra.mxu0 %v1614_v23  ;;  %v1673_v23 = vld [vmem:[#allocation2 + $0x718] sm:$0xff] }
 0x49e   :  { %2507 = vmatprep.subr.bf16.mxu0 %v1617_v24  ;;  %v1672_v24 = vld [vmem:[#allocation2 + $0x710] sm:$0xff] }
 0x4a1   :  { %2508 = vmatpush1.bf16.msra.mxu0 %v1616_v3  ;;  %v1675_v3 = vld [vmem:[#allocation2 + $0x728] sm:$0xff] }
 0x4a2   :  { %2509 = vmatprep.subr.bf16.mxu0 %v1619_v25  ;;  %v1674_v25 = vld [vmem:[#allocation2 + $0x720] sm:$0xff] }
 0x4a5   :  { %2510 = vmatpush1.bf16.msra.mxu0 %v1618_v28  ;;  %v1677_v28 = vld [vmem:[#allocation2 + $0x738] sm:$0xff] }
 0x4a6   :  { %2511 = vmatprep.subr.bf16.mxu0 %v1621_v60  ;;  %v1676_v60 = vld [vmem:[#allocation2 + $0x730] sm:$0xff] }
 0x4a9   :  { %2512 = vmatpush1.bf16.msra.mxu0 %v1620_v48  ;;  %v1679_v48 = vld [vmem:[#allocation2 + $0x748] sm:$0xff] }
 0x4aa   :  { %2513 = vmatprep.subr.bf16.mxu0 %v1623_v31  ;;  %v1678_v31 = vld [vmem:[#allocation2 + $0x740] sm:$0xff] }
 0x4ad   :  { %2514 = vmatpush1.bf16.msra.mxu0 %v1622_v58  ;;  %v1681_v58 = vld [vmem:[#allocation2 + $0x758] sm:$0xff] }
 0x4ae   :  { %2515 = vmatprep.subr.bf16.mxu0 %v1625_v32  ;;  %v1683_v32 = vld [vmem:[#allocation2 + $0x768] sm:$0xff] }
 0x4b1   :  { %2516 = vmatpush1.bf16.msra.mxu0 %v1624_v33  ;;  %v1682_v33 = vld [vmem:[#allocation2 + $0x760] sm:$0xff] }
 0x4b2   :  { %2517 = vmatprep.subr.bf16.mxu0 %v1627_v34  ;;  %v1685_v34 = vld [vmem:[#allocation2 + $0x778] sm:$0xff] }
 0x4b5   :  { %2518 = vmatpush1.bf16.msra.mxu0 %v1626_v35  ;;  %v1684_v35 = vld [vmem:[#allocation2 + $0x770] sm:$0xff] }
 0x4b6   :  { %2519 = vmatprep.subr.bf16.mxu0 %v1629_v36  ;;  %v1687_v36 = vld [vmem:[#allocation2 + $0x788] sm:$0xff] }
 0x4b9   :  { %2520 = vmatpush1.bf16.msra.mxu0 %v1628_v37  ;;  %v1686_v37 = vld [vmem:[#allocation2 + $0x780] sm:$0xff] }
 0x4ba   :  { %2521 = vmatprep.subr.bf16.mxu0 %v1631_v39  ;;  %v1689_v39 = vld [vmem:[#allocation2 + $0x798] sm:$0xff] }
 0x4bd   :  { %2522 = vmatpush1.bf16.msra.mxu0 %v1630_v40  ;;  %v1688_v40 = vld [vmem:[#allocation2 + $0x790] sm:$0xff] }
 0x4be   :  { %2523 = vmatprep.subr.bf16.mxu0 %v1633_v41  ;;  %v1691_v41 = vld [vmem:[#allocation2 + $0x7a8] sm:$0xff] }
 0x4c1   :  { %2524 = vmatpush1.bf16.msra.mxu0 %v1632_v42  ;;  %v1690_v42 = vld [vmem:[#allocation2 + $0x7a0] sm:$0xff] }
 0x4c2   :  { %2525 = vmatprep.subr.bf16.mxu0 %v1635_v43  ;;  %v1693_v43 = vld [vmem:[#allocation2 + $0x7b8] sm:$0xff] }
 0x4c5   :  { %2526 = vmatpush1.bf16.msra.mxu0 %v1634_v44  ;;  %v1692_v44 = vld [vmem:[#allocation2 + $0x7b0] sm:$0xff] }
 0x4c6   :  { %2527 = vmatprep.subr.bf16.mxu0 %v1637_v45  ;;  %v1695_v45 = vld [vmem:[#allocation2 + $0x7c8] sm:$0xff] }
 0x4c9   :  { %2528 = vmatpush1.bf16.msra.mxu0 %v1636_v52  ;;  %v1694_v52 = vld [vmem:[#allocation2 + $0x7c0] sm:$0xff] }
 0x4ca   :  { %2536 = vmatprep.subr.bf16.mxu0 %v1639_v54  ;;  %v1696_v54 = vld [vmem:[#allocation2 + $0x7d0] sm:$0xff] }
 0x4cc   :  { %2530 = vmatmul.mubr.f32.vlgmr.msra.gmra.mrb[16].mxu0 %v5912_v38  ;;  %v1648_v38 = vld [vmem:[#allocation2 + $0x650] sm:$0xff] }
 0x4cd   :  { %2537 = vmatpush1.bf16.msra.mxu0 %v1638_v55  ;;  %2568 = vmatprep.mubr.f32.mxu0 %v5902_v7  ;;  %v1650_v7 = vld [vmem:[#allocation2 + $0x660] sm:$0xff]  ;;  %v1699_v55 = vld [vmem:[#allocation2 + $0x7e8] sm:$0xff] }
 0x4ce   :  { %2538 = vmatprep.subr.bf16.mxu0 %v1641_v30  ;;  %v1698_v30 = vld [vmem:[#allocation2 + $0x7e0] sm:$0xff] }
 0x4d1   :  { %2539 = vmatpush1.bf16.msra.mxu0 %v1640_v56  ;;  %v1701_v56 = vld [vmem:[#allocation2 + $0x7f8] sm:$0xff] }
 0x4d2   :  { %2540 = vmatprep.subr.bf16.mxu0 %v1643_v5  ;;  %v1700_v5 = vld [vmem:[#allocation2 + $0x7f0] sm:$0xff] }
 0x4d5   :  { %2541 = vmatpush1.bf16.msra.mxu0 %v1642_v57  ;;  %v1702_v57 = vld [vmem:[%s6456_s8] sm:$0x3] }
 0x4d6   :  { %2542 = vmatprep.subr.bf16.mxu0 %v1645_v59  ;;  %v2295_v59 = vrot.slane %v1702_v57, %v580_v27  ;;  %v4740_v27 = vld [vmem:[%s6457_s9 + $0x8] sm:$0xf] }
 0x4d9   :  { %2543 = vmatpush1.bf16.msra.mxu0 %v1644_v62  ;;  %v2299_v62 = vrot.slane %v1702_v57, %v584_v29  ;;  %v5490_v29 = vld [vmem:[%s6458_s10 + $0x40] sm:$0xff]  }
 0x4da   :  { %2544 = vmatprep.subr.bf16.mxu0 %v1647_v63  ;;  %v5530_v57 = vld [vmem:[%s6458_s10 + $0x160] sm:$0xff]  }
 0x4dd   :  { %2545 = vmatpush1.bf16.msra.mxu0 %v1646_v0 }
 0x4de   :  { %2546 = vmatprep.subr.bf16.mxu0 %v1649_v1 }
 0x4e1   :  { %2547 = vmatpush1.bf16.msra.mxu0 %v1648_v38 }
 0x4e2   :  { %2548 = vmatprep.subr.bf16.mxu0 %v1651_v2 }
 0x4e5   :  { %2549 = vmatpush1.bf16.msra.mxu0 %v1650_v7 }
 0x4e6   :  { %2550 = vmatprep.subr.bf16.mxu0 %v1653_v4 }
 0x4e9   :  { %2551 = vmatpush1.bf16.msra.mxu0 %v1652_v49 }
 0x4ea   :  { %2552 = vmatprep.subr.bf16.mxu0 %v1655_v6  ;;  %v4742_v6 = vld [vmem:[%s6457_s9 + $0xc] sm:$0xf] }
 0x4ed   :  { %2553 = vmatpush1.bf16.msra.mxu0 %v1654_v8  ;;  %v5491_v8 = vld [vmem:[%s6458_s10] sm:$0xff]  }
 0x4ee   :  { %2554 = vmatprep.subr.bf16.mxu0 %v1657_v50  ;;  %v5492_v50 = vld [vmem:[%s6458_s10 + $0x48] sm:$0xff]  }
 0x4f1   :  { %2555 = vmatpush1.bf16.msra.mxu0 %v1656_v9  ;;  %v5493_v9 = vld [vmem:[%s6458_s10 + $0x8] sm:$0xff]  }
 0x4f2   :  { %2556 = vmatprep.subr.bf16.mxu0 %v1659_v10  ;;  %v5494_v10 = vld [vmem:[%s6458_s10 + $0x50] sm:$0xff]  }
 0x4f5   :  { %2557 = vmatpush1.bf16.msra.mxu0 %v1658_v11  ;;  %v5495_v11 = vld [vmem:[%s6458_s10 + $0x10] sm:$0xff]  }
 0x4f6   :  { %2558 = vmatprep.subr.bf16.mxu0 %v1661_v12  ;;  %v5496_v12 = vld [vmem:[%s6458_s10 + $0x58] sm:$0xff]  }
 0x4f9   :  { %2559 = vmatpush1.bf16.msra.mxu0 %v1660_v13  ;;  %v5497_v13 = vld [vmem:[%s6458_s10 + $0x18] sm:$0xff]  }
 0x4fa   :  { %2560 = vmatprep.subr.bf16.mxu0 %v1663_v14  ;;  %v5498_v14 = vld [vmem:[%s6458_s10 + $0x60] sm:$0xff]  }
 0x4fd   :  { %2561 = vmatpush1.bf16.msra.mxu0 %v1662_v15  ;;  %v5499_v15 = vld [vmem:[%s6458_s10 + $0x20] sm:$0xff]  }
 0x4fe   :  { %2562 = vmatprep.subr.bf16.mxu0 %v1665_v16  ;;  %v5500_v16 = vld [vmem:[%s6458_s10 + $0x68] sm:$0xff]  }
 0x501   :  { %2563 = vmatpush1.bf16.msra.mxu0 %v1664_v61  ;;  %v5501_v61 = vld [vmem:[%s6458_s10 + $0x28] sm:$0xff]  }
 0x502   :  { %2564 = vmatprep.subr.bf16.mxu0 %v1667_v17  ;;  %v5502_v17 = vld [vmem:[%s6458_s10 + $0x70] sm:$0xff]  }
 0x505   :  { %2565 = vmatpush1.bf16.msra.mxu0 %v1666_v18  ;;  %v5503_v18 = vld [vmem:[%s6458_s10 + $0x30] sm:$0xff]  }
 0x506   :  { %2566 = vmatprep.subr.bf16.mxu0 %v1669_v19  ;;  %v5504_v19 = vld [vmem:[%s6458_s10 + $0x78] sm:$0xff]  }
 0x509   :  { %2567 = vmatpush1.bf16.msra.mxu0 %v1668_v20  ;;  %v5505_v20 = vld [vmem:[%s6458_s10 + $0x38] sm:$0xff]  }
 0x50a   :  { %2575 = vmatprep.subr.bf16.mxu0 %v1671_v21  ;;  %v5506_v21 = vld [vmem:[%s6458_s10 + $0xc0] sm:$0xff]  }
 0x50c   :  { %2569 = vmatmul.mubr.f32.vlgmr.msra.gmra.mrb[16].mxu0 %v5900_v51  ;;  %v1680_v51 = vld [vmem:[#allocation2 + $0x750] sm:$0xff] }
 0x50d   :  { %2576 = vmatpush1.bf16.msra.mxu0 %v1670_v22  ;;  %2607 = vmatprep.mubr.f32.mxu0 %v5922_v53  ;;  %v1697_v53 = vld [vmem:[#allocation2 + $0x7d8] sm:$0xff] }
 0x50e   :  { %2577 = vmatprep.subr.bf16.mxu0 %v1673_v23  ;;  %v5507_v23 = vld [vmem:[%s6458_s10 + $0x80] sm:$0xff]  }
 0x511   :  { %2578 = vmatpush1.bf16.msra.mxu0 %v1672_v24 }
 0x512   :  { %2579 = vmatprep.subr.bf16.mxu0 %v1675_v3  ;;  %v5508_v3 = vld [vmem:[%s6458_s10 + $0xc8] sm:$0xff]  }
 0x515   :  { %2580 = vmatpush1.bf16.msra.mxu0 %v1674_v25  ;;  %v5509_v25 = vld [vmem:[%s6458_s10 + $0x88] sm:$0xff]  }
 0x516   :  { %2581 = vmatprep.subr.bf16.mxu0 %v1677_v28 }
 0x519   :  { %2582 = vmatpush1.bf16.msra.mxu0 %v1676_v60  ;;  %v5510_v60 = vld [vmem:[%s6458_s10 + $0xd0] sm:$0xff]  }
 0x51a   :  { %2583 = vmatprep.subr.bf16.mxu0 %v1679_v48 }
 0x51d   :  { %2584 = vmatpush1.bf16.msra.mxu0 %v1678_v31  ;;  %v5511_v31 = vld [vmem:[%s6458_s10 + $0x90] sm:$0xff]  }
 0x51e   :  { %2585 = vmatprep.subr.bf16.mxu0 %v1681_v58 }
 0x521   :  { %2586 = vmatpush1.bf16.msra.mxu0 %v1680_v51  ;;  %v5512_v51 = vld [vmem:[%s6458_s10 + $0xd8] sm:$0xff]  }
 0x522   :  { %2587 = vmatprep.subr.bf16.mxu0 %v1683_v32 }
 0x525   :  { %2588 = vmatpush1.bf16.msra.mxu0 %v1682_v33  ;;  %v5513_v33 = vld [vmem:[%s6458_s10 + $0x98] sm:$0xff]  }
 0x526   :  { %2589 = vmatprep.subr.bf16.mxu0 %v1685_v34 }
 0x529   :  { %2590 = vmatpush1.bf16.msra.mxu0 %v1684_v35  ;;  %v5514_v35 = vld [vmem:[%s6458_s10 + $0xe0] sm:$0xff]  }
 0x52a   :  { %2591 = vmatprep.subr.bf16.mxu0 %v1687_v36 }
 0x52d   :  { %2592 = vmatpush1.bf16.msra.mxu0 %v1686_v37  ;;  %v5515_v37 = vld [vmem:[%s6458_s10 + $0xa0] sm:$0xff]  }
 0x52e   :  { %2593 = vmatprep.subr.bf16.mxu0 %v1689_v39  ;;  %v5516_v39 = vld [vmem:[%s6458_s10 + $0xe8] sm:$0xff]  }
 0x531   :  { %2594 = vmatpush1.bf16.msra.mxu0 %v1688_v40  ;;  %v5517_v40 = vld [vmem:[%s6458_s10 + $0xa8] sm:$0xff]  }
 0x532   :  { %2595 = vmatprep.subr.bf16.mxu0 %v1691_v41  ;;  %v5518_v41 = vld [vmem:[%s6458_s10 + $0xf0] sm:$0xff]  }
 0x535   :  { %2596 = vmatpush1.bf16.msra.mxu0 %v1690_v42  ;;  %v5519_v42 = vld [vmem:[%s6458_s10 + $0xb0] sm:$0xff]  }
 0x536   :  { %2597 = vmatprep.subr.bf16.mxu0 %v1693_v43  ;;  %v5520_v43 = vld [vmem:[%s6458_s10 + $0xf8] sm:$0xff]  }
 0x539   :  { %2598 = vmatpush1.bf16.msra.mxu0 %v1692_v44  ;;  %v5521_v44 = vld [vmem:[%s6458_s10 + $0xb8] sm:$0xff]  }
 0x53a   :  { %2599 = vmatprep.subr.bf16.mxu0 %v1695_v45  ;;  %v5522_v45 = vld [vmem:[%s6458_s10 + $0x140] sm:$0xff]  }
 0x53d   :  { %2600 = vmatpush1.bf16.msra.mxu0 %v1694_v52  ;;  %v5523_v52 = vld [vmem:[%s6458_s10 + $0x100] sm:$0xff]  }
 0x53e   :  { %2601 = vmatprep.subr.bf16.mxu0 %v1697_v53  ;;  %v5524_v53 = vld [vmem:[%s6458_s10 + $0x148] sm:$0xff]  }
 0x541   :  { %2602 = vmatpush1.bf16.msra.mxu0 %v1696_v54  ;;  %v5525_v54 = vld [vmem:[%s6458_s10 + $0x108] sm:$0xff]  }
 0x542   :  { %2603 = vmatprep.subr.bf16.mxu0 %v1699_v55  ;;  %v5526_v55 = vld [vmem:[%s6458_s10 + $0x150] sm:$0xff]  }
 0x545   :  { %2604 = vmatpush1.bf16.msra.mxu0 %v1698_v30  ;;  %v5527_v30 = vld [vmem:[%s6458_s10 + $0x110] sm:$0xff]  }
 0x546   :  { %2605 = vmatprep.subr.bf16.mxu0 %v1701_v56  ;;  %v5528_v56 = vld [vmem:[%s6458_s10 + $0x158] sm:$0xff]  }
 0x549   :  { %2606 = vmatpush1.bf16.msra.mxu0 %v1700_v5  ;;  %v5529_v5 = vld [vmem:[%s6458_s10 + $0x118] sm:$0xff]  }
 0x54c   :  { %2608 = vmatmul.mubr.f32.vlgmr.msra.gmra.mrb[16].mxu0 %v5920_v46  ;;  %v2749_v46 = vld [vmem:[%s6457_s9] sm:$0xf] }
 0x61f   :  { %v2609_v63 = vpop.f32.mrb[16].mxu0 }
 0x620   :  { %v5260_v0 = vadd.f32 %v2609_v63, %v2295_v59  ;;  %v2611_v1 = vpop.f32.mrb[17].mxu0  ;;  %v5531_v59 = vld [vmem:[%s6458_s10 + $0x120] sm:$0xff]   ;;  %v5533_v63 = vld [vmem:[%s6458_s10 + $0x128] sm:$0xff]  }
 0x621   :  { %v5261_v38 = vadd.f32 %v2611_v1, %v2299_v62  ;;  %v5532_v62 = vld [vmem:[%s6458_s10 + $0x168] sm:$0xff]   ;;  %v5535_v1 = vld [vmem:[%s6458_s10 + $0x130] sm:$0xff]  }
 0x622   :  { %v2616_v2 = vmul.f32 0.1, %v5260_v0  ;;  %vm2614_vm10 = vcmp.ge.f32.partialorder %v5260_v0, 0.0 }
 0x623   :  { %vm2615_vm11 = vcmp.ge.f32.partialorder %v5261_v38, 0.0  ;;  %v2617_v7 = vmul.f32 0.1, %v5261_v38 }
 0x624   :  { %v2618_v49 = vsel %vm2614_vm10, %v5260_v0, %v2616_v2  ;;  %v5534_v0 = vld [vmem:[%s6458_s10 + $0x170] sm:$0xff]   ;;  %v5537_v2 = vld [vmem:[%s6458_s10 + $0x138] sm:$0xff]  }
 0x625   :  { %v2619_v4 = vsel %vm2615_vm11, %v5261_v38, %v2617_v7  ;;  %v5536_v38 = vld [vmem:[%s6458_s10 + $0x178] sm:$0xff]   ;;  %v5538_v7 = vld [vmem:[%s6458_s10 + $0x1c0] sm:$0xff]  }
 0x626   :  { %2754 = vmatprep.subr.mxu1 %v2619_v4 }
 0x627   :  { %2755 = vmatpush1.msra.mxu1 %v2618_v49 }
 0x628   :  { %4737 = vmatmul.mubr.msk.f32.vlgmr.msra.gmra.mrb[16].mxu1 %vm2750_vm12, %v2749_v46  ;;  %2830 = vmatprep.subr.mxu1 %v2619_v4  ;;  %v5540_v46 = vld [vmem:[%s6458_s10 + $0x1c8] sm:$0xff]  }
 0x629   :  { %2831 = vmatpush1.msra.mxu1 %v2618_v49  ;;  %2894 = vmatprep.mubr.f32.mxu1 %v5658_v47 }
 0x62a   :  { %2906 = vmatprep.subr.mxu1 %v2619_v4 }
 0x62c   :  { %4739 = vmatmul.mubr.msk.f32.vlgmr.msra.gmra.mrb[18].mxu1 %vm2750_vm12, %v4738_v26  ;;  %v5542_v26 = vld [vmem:[%s6458_s10 + $0x1d0] sm:$0xff]  }
 0x62d   :  { %2907 = vmatpush1.msra.mxu1 %v2618_v49  ;;  %2970 = vmatprep.mubr.f32.mxu1 %v5658_v47 }
 0x62e   :  { %2982 = vmatprep.subr.mxu1 %v2619_v4  ;;  %v5539_v4 = vld [vmem:[%s6458_s10 + $0x180] sm:$0xff]  }
 0x630   :  { %4741 = vmatmul.mubr.msk.f32.vlgmr.msra.gmra.mrb[20].mxu1 %vm2750_vm12, %v4740_v27  ;;  %v5543_v27 = vld [vmem:[%s6458_s10 + $0x190] sm:$0xff]  }
 0x631   :  { %2983 = vmatpush1.msra.mxu1 %v2618_v49  ;;  %3046 = vmatprep.mubr.f32.mxu1 %v5658_v47  ;;  %v5541_v49 = vld [vmem:[%s6458_s10 + $0x188] sm:$0xff]  }
 0x632   :  { %4882 = vmatprep.subr.bf16.mxu1 %v5490_v29  ;;  %v5544_v29 = vld [vmem:[%s6458_s10 + $0x1d8] sm:$0xff]  }
 0x634   :  { %4743 = vmatmul.mubr.msk.f32.vlgmr.msra.gmra.mrb[22].mxu1 %vm2750_vm12, %v4742_v6  ;;  %v5545_v6 = vld [vmem:[%s6458_s10 + $0x198] sm:$0xff]  }
 0x635   :  { %4883 = vmatpush3.bf16.msra.mxu1 %v5491_v8  ;;  %v5546_v8 = vld [vmem:[%s6458_s10 + $0x1e0] sm:$0xff]  }
 0x636   :  { %4884 = vmatprep.subr.bf16.mxu1 %v5492_v50  ;;  %v5547_v50 = vld [vmem:[%s6458_s10 + $0x1a0] sm:$0xff]  }
 0x639   :  { %4885 = vmatpush3.bf16.msra.mxu1 %v5493_v9  ;;  %v5548_v9 = vld [vmem:[%s6458_s10 + $0x1e8] sm:$0xff]  }
 0x63a   :  { %4886 = vmatprep.subr.bf16.mxu1 %v5494_v10  ;;  %v5549_v10 = vld [vmem:[%s6458_s10 + $0x1a8] sm:$0xff]  }
 0x63d   :  { %4887 = vmatpush3.bf16.msra.mxu1 %v5495_v11  ;;  %v5550_v11 = vld [vmem:[%s6458_s10 + $0x1f0] sm:$0xff]  }
 0x63e   :  { %4888 = vmatprep.subr.bf16.mxu1 %v5496_v12  ;;  %v5551_v12 = vld [vmem:[%s6458_s10 + $0x1b0] sm:$0xff]  }
 0x641   :  { %4889 = vmatpush3.bf16.msra.mxu1 %v5497_v13  ;;  %v5552_v13 = vld [vmem:[%s6458_s10 + $0x1f8] sm:$0xff]  }
 0x642   :  { %4890 = vmatprep.subr.bf16.mxu1 %v5498_v14  ;;  %v5553_v14 = vld [vmem:[%s6458_s10 + $0x1b8] sm:$0xff]  }
 0x645   :  { %4891 = vmatpush3.bf16.msra.mxu1 %v5499_v15 }
 0x646   :  { %4892 = vmatprep.subr.bf16.mxu1 %v5500_v16 }
 0x649   :  { %4893 = vmatpush3.bf16.msra.mxu1 %v5501_v61 }
 0x64a   :  { %4894 = vmatprep.subr.bf16.mxu1 %v5502_v17  ;;  %v4744_v17 = vld [vmem:[%s6459_s11] ss:$0 sm:$0xff] }
 0x64d   :  { %4895 = vmatpush3.bf16.msra.mxu1 %v5503_v18 }
 0x64e   :  { %4896 = vmatprep.subr.bf16.mxu1 %v5504_v19 }
 0x651   :  { %4897 = vmatpush3.bf16.msra.mxu1 %v5505_v20 }
 0x652   :  { %4901 = vmatprep.subr.bf16.mxu1 %v5506_v21 }
 0x6fb   :  { %v2820_v22 = vpop.f32.mrb[16].mxu1 }
 0x6fc   :  { %v2822_v24 = vpop.f32.mrb[17].mxu1 }
 0x6fd   :  { %3475 = vmatprep.mubr.f32.mxu1 %v2822_v24 }
 0x6fe   :  { %3476 = vmatmul.mubr.f32.vlgmr.msra.gmra.mrb[24].mxu1 %v2820_v22 }
 0x6ff   :  { %4902 = vmatpush3.bf16.msra.mxu1 %v5507_v23  ;;  %v2896_v28 = vpop.f32.mrb[18].mxu1 }
 0x700   :  { %4903 = vmatprep.subr.bf16.mxu1 %v5508_v3  ;;  %v2898_v48 = vpop.f32.mrb[19].mxu1 }
 0x701   :  { %3513 = vmatprep.mubr.f32.mxu1 %v2898_v48 }
 0x703   :  { %4904 = vmatpush3.bf16.msra.mxu1 %v5509_v25  ;;  %v6021_v58 = vpop.f32.mrb[20].mxu1 }
 0x704   :  { %4905 = vmatprep.subr.bf16.mxu1 %v5510_v60  ;;  %v2974_v32 = vpop.f32.mrb[21].mxu1 }
 0x707   :  { %4906 = vmatpush3.bf16.msra.mxu1 %v5511_v31  ;;  %v6029_v34 = vpop.f32.mrb[22].mxu1 }
 0x708   :  { %4907 = vmatprep.subr.bf16.mxu1 %v5512_v51  ;;  %v3050_v36 = vpop.f32.mrb[23].mxu1  ;;  %v3663_v51 = vld [vmem:[%s6460_s12] sm:$0x3] }
 0x70b   :  { %4908 = vmatpush3.bf16.msra.mxu1 %v5513_v33  ;;  %v4811_v33 = vld [vmem:[%s6460_s12 + $0x2] sm:$0x3] }
 0x70c   :  { %4909 = vmatprep.subr.bf16.mxu1 %v5514_v35  ;;  %v5554_v35 = vld [vmem:[%s6461_s13 + $0x40] sm:$0xff]  }
 0x70f   :  { %4910 = vmatpush3.bf16.msra.mxu1 %v5515_v37  ;;  %v5555_v37 = vld [vmem:[%s6461_s13] sm:$0xff]  }
 0x710   :  { %4911 = vmatprep.subr.bf16.mxu1 %v5516_v39  ;;  %v5556_v39 = vld [vmem:[%s6461_s13 + $0x48] sm:$0xff]  }
 0x713   :  { %4912 = vmatpush3.bf16.msra.mxu1 %v5517_v40  ;;  %v5557_v40 = vld [vmem:[%s6461_s13 + $0x8] sm:$0xff]  }
 0x714   :  { %4913 = vmatprep.subr.bf16.mxu1 %v5518_v41  ;;  %v5558_v41 = vld [vmem:[%s6461_s13 + $0x50] sm:$0xff]  }
 0x717   :  { %4914 = vmatpush3.bf16.msra.mxu1 %v5519_v42  ;;  %v5559_v42 = vld [vmem:[%s6461_s13 + $0x10] sm:$0xff]  }
 0x718   :  { %4915 = vmatprep.subr.bf16.mxu1 %v5520_v43  ;;  %v5560_v43 = vld [vmem:[%s6461_s13 + $0x58] sm:$0xff]  }
 0x71b   :  { %4916 = vmatpush3.bf16.msra.mxu1 %v5521_v44  ;;  %v5561_v44 = vld [vmem:[%s6461_s13 + $0x18] sm:$0xff]  }
 0x71c   :  { %4920 = vmatprep.subr.bf16.mxu1 %v5522_v45  ;;  %v5562_v45 = vld [vmem:[%s6461_s13 + $0x60] sm:$0xff]  }
 0x71e   :  { %3514 = vmatmul.mubr.f32.vlgmr.msra.gmra.mrb[26].mxu1 %v2896_v28 }
 0x71f   :  { %4921 = vmatpush3.bf16.msra.mxu1 %v5523_v52  ;;  %3551 = vmatprep.mubr.f32.mxu1 %v2974_v32  ;;  %v5563_v52 = vld [vmem:[%s6461_s13 + $0x20] sm:$0xff]  }
 0x720   :  { %4922 = vmatprep.subr.bf16.mxu1 %v5524_v53  ;;  %v5564_v53 = vld [vmem:[%s6461_s13 + $0x68] sm:$0xff]  }
 0x723   :  { %4923 = vmatpush3.bf16.msra.mxu1 %v5525_v54  ;;  %v5565_v54 = vld [vmem:[%s6461_s13 + $0x28] sm:$0xff]  }
 0x724   :  { %4924 = vmatprep.subr.bf16.mxu1 %v5526_v55  ;;  %v5566_v55 = vld [vmem:[%s6461_s13 + $0x70] sm:$0xff]  }
 0x727   :  { %4925 = vmatpush3.bf16.msra.mxu1 %v5527_v30  ;;  %v5567_v30 = vld [vmem:[%s6461_s13 + $0x30] sm:$0xff]  }
 0x728   :  { %4926 = vmatprep.subr.bf16.mxu1 %v5528_v56  ;;  %v5568_v56 = vld [vmem:[%s6461_s13 + $0x78] sm:$0xff]  }
 0x72b   :  { %4927 = vmatpush3.bf16.msra.mxu1 %v5529_v5  ;;  %v5569_v5 = vld [vmem:[%s6461_s13 + $0x38] sm:$0xff]  }
 0x72c   :  { %4928 = vmatprep.subr.bf16.mxu1 %v5530_v57  ;;  %v5570_v57 = vld [vmem:[%s6461_s13 + $0xc0] sm:$0xff]  }
 0x72f   :  { %4929 = vmatpush3.bf16.msra.mxu1 %v5531_v59 }
 0x730   :  { %4930 = vmatprep.subr.bf16.mxu1 %v5532_v62 }
 0x733   :  { %4931 = vmatpush3.bf16.msra.mxu1 %v5533_v63  ;;  %v5571_v63 = vld [vmem:[%s6461_s13 + $0x80] sm:$0xff]  }
 0x734   :  { %4932 = vmatprep.subr.bf16.mxu1 %v5534_v0 }
 0x737   :  { %4933 = vmatpush3.bf16.msra.mxu1 %v5535_v1  ;;  %v5572_v1 = vld [vmem:[%s6461_s13 + $0xc8] sm:$0xff]  }
 0x738   :  { %4934 = vmatprep.subr.bf16.mxu1 %v5536_v38 }
 0x73b   :  { %4935 = vmatpush3.bf16.msra.mxu1 %v5537_v2  ;;  %v5573_v2 = vld [vmem:[%s6461_s13 + $0x88] sm:$0xff]  }
 0x73c   :  { %4939 = vmatprep.subr.bf16.mxu1 %v5538_v7  ;;  %v5574_v7 = vld [vmem:[%s6461_s13 + $0xd0] sm:$0xff]  }
 0x73e   :  { %3552 = vmatmul.mubr.f32.vlgmr.msra.gmra.mrb[28].mxu1 %v6021_v58 }
 0x73f   :  { %4940 = vmatpush3.bf16.msra.mxu1 %v5539_v4  ;;  %3589 = vmatprep.mubr.f32.mxu1 %v3050_v36  ;;  %v4817_v36 = vld [vmem:[%s6460_s12 + $0x6] sm:$0x3] }
 0x740   :  { %4941 = vmatprep.subr.bf16.mxu1 %v5540_v46 }
 0x743   :  { %4942 = vmatpush3.bf16.msra.mxu1 %v5541_v49  ;;  %v5575_v49 = vld [vmem:[%s6461_s13 + $0x90] sm:$0xff]  }
 0x744   :  { %4943 = vmatprep.subr.bf16.mxu1 %v5542_v26  ;;  %v5576_v26 = vld [vmem:[%s6461_s13 + $0xd8] sm:$0xff]  }
 0x747   :  { %4944 = vmatpush3.bf16.msra.mxu1 %v5543_v27 }
 0x748   :  { %4945 = vmatprep.subr.bf16.mxu1 %v5544_v29 }
 0x74b   :  { %4946 = vmatpush3.bf16.msra.mxu1 %v5545_v6  ;;  %v5577_v6 = vld [vmem:[%s6461_s13 + $0x98] sm:$0xff]  }
 0x74c   :  { %4947 = vmatprep.subr.bf16.mxu1 %v5546_v8  ;;  %v5578_v8 = vld [vmem:[%s6461_s13 + $0xe0] sm:$0xff]  }
 0x74f   :  { %4948 = vmatpush3.bf16.msra.mxu1 %v5547_v50  ;;  %v5579_v50 = vld [vmem:[%s6461_s13 + $0xa0] sm:$0xff]  }
 0x750   :  { %4949 = vmatprep.subr.bf16.mxu1 %v5548_v9  ;;  %v5580_v9 = vld [vmem:[%s6461_s13 + $0xe8] sm:$0xff]  }
 0x753   :  { %4950 = vmatpush3.bf16.msra.mxu1 %v5549_v10  ;;  %v5581_v10 = vld [vmem:[%s6461_s13 + $0xa8] sm:$0xff]  }
 0x754   :  { %4951 = vmatprep.subr.bf16.mxu1 %v5550_v11  ;;  %v5582_v11 = vld [vmem:[%s6461_s13 + $0xf0] sm:$0xff]  }
 0x757   :  { %4952 = vmatpush3.bf16.msra.mxu1 %v5551_v12  ;;  %v5583_v12 = vld [vmem:[%s6461_s13 + $0xb0] sm:$0xff]  }
 0x758   :  { %4953 = vmatprep.subr.bf16.mxu1 %v5552_v13  ;;  %v5584_v13 = vld [vmem:[%s6461_s13 + $0xf8] sm:$0xff]  }
 0x75b   :  { %4954 = vmatpush3.bf16.msra.mxu1 %v5553_v14  ;;  %v4261_v14 = vld [vmem:[%s6473_s25 + $0x80] sm:$0xff] }
 0x75c   :  { %5095 = vmatprep.subr.mxu1 %v5658_v47 }
 0x75e   :  { %3590 = vmatmul.mubr.f32.vlgmr.msra.gmra.mrb[30].mxu1 %v6029_v34  ;;  %v4814_v34 = vld [vmem:[%s6460_s12 + $0x4] sm:$0x3] }
 0x75f   :  { %5097 = vmatprep.mubr.msk.f32.mxu1 %vm5659_vm13, %v5658_v47 }
 0x7d1   :  { %v4898_v15 = vpop.f32.mrb[24].mxu1 }
 0x7d2   :  { %v4899_v16 = vpop.f32.mrb[25].mxu1 }
 0x7d3   :  { %v4900_v61 = vadd.f32 %v4899_v16, %v4898_v15  ;;  %v4262_v15 = vld [vmem:[%s6473_s25 + $0x88] sm:$0xff]  ;;  %v5585_v16 = vld [vmem:[%s6461_s13 + $0xb8] sm:$0xff]  }
 0x7d5   :  { %v3478_v20 = vadd.f32 %v4900_v61, %v4744_v17  ;;  %v5205_v61 = vpack.c.bf16 %v4262_v15, %v4261_v14  ;;  %v4245_v17 = vld [vmem:[%s6473_s25] sm:$0xff] }
 0x7f1   :  { %v4917_v18 = vpop.f32.mrb[26].mxu1 }
 0x7f2   :  { %v4918_v19 = vpop.f32.mrb[27].mxu1 }
 0x7f3   :  { %v4919_v21 = vadd.f32 %v4918_v19, %v4917_v18  ;;  %v4246_v18 = vld [vmem:[%s6473_s25 + $0x8] sm:$0xff]  ;;  %v6299_v19 = vld.sshfl [vmem:[%s6474_s4] sm:$0x33 pattern:$0x76325410] }
 0x7f5   :  { %v3516_v22 = vadd.f32 %v4919_v21, %v3478_v20  ;;  %v4263_v20 = vld [vmem:[%s6473_s25 + $0x90] sm:$0xff]  ;;  %v4264_v21 = vld [vmem:[%s6473_s25 + $0x98] sm:$0xff] }
 0x811   :  { %v4936_v23 = vpop.f32.mrb[28].mxu1 }
 0x812   :  { %v4937_v24 = vpop.f32.mrb[29].mxu1 }
 0x813   :  { %v4938_v3 = vadd.f32 %v4937_v24, %v4936_v23  ;;  %v4285_v23 = vcombine.high %v6299_v19, %v6299_v19  ;;  %v5209_v24 = vpack.c.bf16 %v4264_v21, %v4263_v20 }
 0x815   :  { %v3554_v25 = vadd.f32 %v4938_v3, %v3516_v22  ;;  %v5207_v22 = vpack.c.bf16 %v4246_v18, %v4245_v17  ;;  %v4247_v3 = vld [vmem:[%s6473_s25 + $0x10] sm:$0xff]  ;;  %v4820_v17 = vld [vmem:[%s6462_s14] ss:$0 sm:$0xff] }
 0x831   :  { %v4955_v28 = vpop.f32.mrb[30].mxu1 }
 0x832   :  { %v4956_v60 = vpop.f32.mrb[31].mxu1 }
 0x833   :  { %v4957_v48 = vadd.f32 %v4956_v60, %v4955_v28  ;;  %v4265_v28 = vld [vmem:[%s6473_s25 + $0xa0] sm:$0xff]  ;;  %v4266_v60 = vld [vmem:[%s6473_s25 + $0xa8] sm:$0xff] }
 0x835   :  { %v3592_v31 = vadd.f32 %v4957_v48, %v3554_v25  ;;  %v4248_v25 = vld [vmem:[%s6473_s25 + $0x18] sm:$0xff] }
 0x836   :  { %v5211_v48 = vpack.c.bf16 %v4248_v25, %v4247_v3 }
 0x837   :  { %vm3595_vm14 = vcmp.ge.f32.partialorder %v3592_v31, 0.0  ;;  %v3596_v58 = vmul.f32 0.1, %v3592_v31 }
 0x839   :  { %v3597_v32 = vsel %vm3595_vm14, %v3592_v31, %v3596_v58  ;;  %v5213_v31 = vpack.c.bf16 %v4266_v60, %v4265_v28  ;;  %v4249_v58 = vld [vmem:[%s6473_s25 + $0x20] sm:$0xff] }
 0x83a   :  { %5096 = vmatpush3.msk.msra.mxu1 %vm3668_vm15, %v3597_v32 }
 0x83b   :  { %5098 = vmatmul.mubr.msk.f32.vlgmr.msra.gmra.mrb[32].mxu1 %vm3664_vm0, %v3663_v51  ;;  %5100 = vmatprep.subr.mxu1 %v5658_v47  ;;  %v4250_v51 = vld [vmem:[%s6473_s25 + $0x28] sm:$0xff] }
 0x83c   :  { %5101 = vmatpush3.msk.msra.mxu1 %vm3668_vm15, %v3597_v32  ;;  %5102 = vmatprep.mubr.msk.f32.mxu1 %vm5659_vm13, %v5658_v47 }
 0x83d   :  { %5105 = vmatprep.subr.mxu1 %v5658_v47 }
 0x83f   :  { %5103 = vmatmul.mubr.msk.f32.vlgmr.msra.gmra.mrb[34].mxu1 %vm3664_vm0, %v4811_v33  ;;  %v4268_v33 = vld [vmem:[%s6473_s25 + $0xb8] sm:$0xff] }
 0x840   :  { %5106 = vmatpush3.msk.msra.mxu1 %vm3668_vm15, %v3597_v32  ;;  %5107 = vmatprep.mubr.msk.f32.mxu1 %vm5659_vm13, %v5658_v47 }
 0x841   :  { %5110 = vmatprep.subr.mxu1 %v5658_v47 }
 0x843   :  { %5108 = vmatmul.mubr.msk.f32.vlgmr.msra.gmra.mrb[36].mxu1 %vm3664_vm0, %v4814_v34  ;;  %v5215_v34 = vpack.c.bf16 %v4250_v51, %v4249_v58 }
 0x844   :  { %5111 = vmatpush3.msk.msra.mxu1 %vm3668_vm15, %v3597_v32  ;;  %5112 = vmatprep.mubr.msk.f32.mxu1 %vm5659_vm13, %v5658_v47  ;;  %v4267_v32 = vld [vmem:[%s6473_s25 + $0xb0] sm:$0xff] }
 0x845   :  { %4966 = vmatprep.subr.bf16.mxu1 %v5554_v35  ;;  %v5217_v35 = vpack.c.bf16 %v4268_v33, %v4267_v32  ;;  %v4854_v33 = vld [vmem:[%s6464_s16] ss:$0 sm:$0xff] }
 0x847   :  { %5113 = vmatmul.mubr.msk.f32.vlgmr.msra.gmra.mrb[38].mxu1 %vm3664_vm0, %v4817_v36  ;;  %v4251_v36 = vld [vmem:[%s6473_s25 + $0x30] sm:$0xff] }
 0x848   :  { %4967 = vmatpush3.bf16.msra.mxu1 %v5555_v37  ;;  %v4252_v37 = vld [vmem:[%s6473_s25 + $0x38] sm:$0xff] }
 0x849   :  { %4968 = vmatprep.subr.bf16.mxu1 %v5556_v39  ;;  %v4269_v39 = vld [vmem:[%s6473_s25 + $0xc0] sm:$0xff] }
 0x84c   :  { %4969 = vmatpush3.bf16.msra.mxu1 %v5557_v40  ;;  %v4270_v40 = vld [vmem:[%s6473_s25 + $0xc8] sm:$0xff] }
 0x84d   :  { %4970 = vmatprep.subr.bf16.mxu1 %v5558_v41  ;;  %v5219_v41 = vpack.c.bf16 %v4252_v37, %v4251_v36 }
 0x850   :  { %4971 = vmatpush3.bf16.msra.mxu1 %v5559_v42  ;;  %v5221_v42 = vpack.c.bf16 %v4270_v40, %v4269_v39 }
 0x851   :  { %4972 = vmatprep.subr.bf16.mxu1 %v5560_v43  ;;  %v4253_v43 = vld [vmem:[%s6473_s25 + $0x40] sm:$0xff] }
 0x854   :  { %4973 = vmatpush3.bf16.msra.mxu1 %v5561_v44  ;;  %v4254_v44 = vld [vmem:[%s6473_s25 + $0x48] sm:$0xff] }
 0x855   :  { %4974 = vmatprep.subr.bf16.mxu1 %v5562_v45  ;;  %v4271_v45 = vld [vmem:[%s6473_s25 + $0xd0] sm:$0xff] }
 0x858   :  { %4975 = vmatpush3.bf16.msra.mxu1 %v5563_v52  ;;  %v4272_v52 = vld [vmem:[%s6473_s25 + $0xd8] sm:$0xff] }
 0x859   :  { %4976 = vmatprep.subr.bf16.mxu1 %v5564_v53  ;;  %v5223_v53 = vpack.c.bf16 %v4254_v44, %v4253_v43  ;;  %v4473_v43 = vld [vmem:[%s6465_s17] sm:$0xff]  ;;  %v4474_v44 = vld [vmem:[%s6465_s17 + $0x8] sm:$0xff]  ;;  %s5661_s17 = smov [#allocation7]  }
 0x85a   :  { %s4567_s19 = sshll.u32 %s5661_s17, 4  ;;  %s4568_s19 = int_to_ptr.vmem [resolvable:$true] %s4567_s19 }
 0x85b   :  { %s5620_s13 = scalar_lea.vmem %s4568_s19, 32  ;;  %p5625_p9 = scmp.lt.s32.totalorder %s4568_s19, %s4568_s19 }
 0x85c   :  { %4977 = vmatpush3.bf16.msra.mxu1 %v5565_v54  ;;  %v5225_v54 = vpack.c.bf16 %v4272_v52, %v4271_v45  ;;  %v5250_v45 = vpack.c.bf16 %v4474_v44, %v4473_v43  ;;  %p5621_p8 = scmp.ne.s32.totalorder %s4568_s19, %s5620_s13  ;;  %p5626_p10 = scmp.lt.s32.totalorder %s5620_s13, %s5620_s13 }
 0x85d   :  { %4978 = vmatprep.subr.bf16.mxu1 %v5566_v55  ;;  %v4255_v55 = vld [vmem:[%s6473_s25 + $0x50] sm:$0xff] }
 0x85e   :  { %p5627_p11 = por %p5626_p10, %p5625_p9 }
 0x860   :  { %4979 = vmatpush3.bf16.msra.mxu1 %v5567_v30  ;;  %v4256_v30 = vld [vmem:[%s6473_s25 + $0x58] sm:$0xff]  ;;  %p5628_p12 = pnand %p5627_p11, %p5621_p8 }
 0x861   :  { %4980 = vmatprep.subr.bf16.mxu1 %v5568_v56  ;;  %v4273_v56 = vld [vmem:[%s6473_s25 + $0xe0] sm:$0xff] }
 0x864   :  { %4981 = vmatpush3.bf16.msra.mxu1 %v5569_v5  ;;  %v4274_v5 = vld [vmem:[%s6473_s25 + $0xe8] sm:$0xff] }
 0x865   :  { %4985 = vmatprep.subr.bf16.mxu1 %v5570_v57  ;;  %v5227_v57 = vpack.c.bf16 %v4256_v30, %v4255_v55 }
 0x90e   :  { %v3738_v59 = vpop.f32.mrb[32].mxu1 }
 0x90f   :  { %v5099_v62 = vpop.f32.mrb[33].mxu1 }
 0x910   :  { %v4257_v62 = vld [vmem:[%s6473_s25 + $0x60] sm:$0xff] }
 0x912   :  { %v3813_v0 = vpop.f32.mrb[34].mxu1 }
 0x913   :  { %4197 = vmatprep.mubr.f32.mxu1 %v3813_v0  ;;  %v5104_v38 = vpop.f32.mrb[35].mxu1  ;;  %v4275_v0 = vld [vmem:[%s6473_s25 + $0xf0] sm:$0xff] }
 0x914   :  { %4198 = vmatmul.mubr.f32.vlgmr.msra.gmra.mrb[40].mxu1 %v3738_v59  ;;  %v5229_v59 = vpack.c.bf16 %v4274_v5, %v4273_v56 }
 0x915   :  { %4986 = vmatpush3.bf16.msra.mxu1 %v5571_v63  ;;  %v4258_v63 = vld [vmem:[%s6473_s25 + $0x68] sm:$0xff] }
 0x916   :  { %4987 = vmatprep.subr.bf16.mxu1 %v5572_v1  ;;  %v3888_v4 = vpop.f32.mrb[36].mxu1  ;;  %v4276_v1 = vld [vmem:[%s6473_s25 + $0xf8] sm:$0xff]  ;;  %v5231_v38 = vpack.c.bf16 %v4258_v63, %v4257_v62 }
 0x917   :  { %v5109_v46 = vpop.f32.mrb[37].mxu1 }
 0x919   :  { %4988 = vmatpush3.bf16.msra.mxu1 %v5573_v2  ;;  %v5233_v2 = vpack.c.bf16 %v4276_v1, %v4275_v0 }
 0x91a   :  { %4989 = vmatprep.subr.bf16.mxu1 %v5574_v7  ;;  %v3963_v27 = vpop.f32.mrb[38].mxu1  ;;  %v4259_v7 = vld [vmem:[%s6473_s25 + $0x70] sm:$0xff] }
 0x91b   :  { %4235 = vmatprep.mubr.f32.mxu1 %v3963_v27  ;;  %v5114_v29 = vpop.f32.mrb[39].mxu1  ;;  %v4372_v27 = vld [vmem:[%s6463_s15 + $0x10] sm:$0xff] }
 0x91c   :  { %v5660_v29 = vmov 0.0|0.0  }
 0x91d   :  { %4990 = vmatpush3.bf16.msra.mxu1 %v5575_v49  ;;  %v4370_v49 = vld [vmem:[%s6463_s15] sm:$0xff] }
 0x91e   :  { %4991 = vmatprep.subr.bf16.mxu1 %v5576_v26  ;;  %v4371_v26 = vld [vmem:[%s6463_s15 + $0x8] sm:$0xff] }
 0x921   :  { %4992 = vmatpush3.bf16.msra.mxu1 %v5577_v6  ;;  %v5238_v6 = vpack.c.bf16 %v4371_v26, %v4370_v49 }
 0x922   :  { %4993 = vmatprep.subr.bf16.mxu1 %v5578_v8  ;;  %v4373_v8 = vld [vmem:[%s6463_s15 + $0x18] sm:$0xff] }
 0x925   :  { %4994 = vmatpush3.bf16.msra.mxu1 %v5579_v50  ;;  %v5241_v50 = vpack.c.bf16 %v4373_v8, %v4372_v27 }
 0x926   :  { %4995 = vmatprep.subr.bf16.mxu1 %v5580_v9  ;;  %v4374_v9 = vld [vmem:[%s6463_s15 + $0x20] sm:$0xff] }
 0x929   :  { %4996 = vmatpush3.bf16.msra.mxu1 %v5581_v10  ;;  %v4375_v10 = vld [vmem:[%s6463_s15 + $0x28] sm:$0xff] }
 0x92a   :  { %4997 = vmatprep.subr.bf16.mxu1 %v5582_v11  ;;  %v5244_v11 = vpack.c.bf16 %v4375_v10, %v4374_v9 }
 0x92d   :  { %4998 = vmatpush3.bf16.msra.mxu1 %v5583_v12  ;;  %v4376_v12 = vld [vmem:[%s6463_s15 + $0x30] sm:$0xff] }
 0x92e   :  { %4999 = vmatprep.subr.bf16.mxu1 %v5584_v13  ;;  %v4377_v13 = vld [vmem:[%s6463_s15 + $0x38] sm:$0xff] }
 0x92f   :  { %v5247_v14 = vpack.c.bf16 %v4377_v13, %v4376_v12 }
 0x931   :  { %5000 = vmatpush3.bf16.msra.mxu1 %v5585_v16 }
 0x932   :  { %5206 = vmatprep.subr.bf16.mxu1 %v5205_v61 }
 0x934   :  { %4236 = vmatmul.mubr.f32.vlgmr.msra.gmra.mrb[42].mxu1 %v3888_v4  ;;  %v4260_v4 = vld [vmem:[%s6473_s25 + $0x78] sm:$0xff] }
 0x935   :  { %5208 = vmatpush3.bf16.msra.mxu1 %v5207_v22  ;;  %4352 = vmatprep.mubr.f32.mxu1 %v4285_v23  ;;  %v5235_v46 = vpack.c.bf16 %v4260_v4, %v4259_v7 }
 0x936   :  { %5210 = vmatprep.subr.bf16.mxu1 %v5209_v24 }
 0x939   :  { %5212 = vmatpush3.bf16.msra.mxu1 %v5211_v48 }
 0x93a   :  { %5214 = vmatprep.subr.bf16.mxu1 %v5213_v31 }
 0x93d   :  { %5216 = vmatpush3.bf16.msra.mxu1 %v5215_v34 }
 0x93e   :  { %5218 = vmatprep.subr.bf16.mxu1 %v5217_v35 }
 0x941   :  { %5220 = vmatpush3.bf16.msra.mxu1 %v5219_v41 }
 0x942   :  { %5222 = vmatprep.subr.bf16.mxu1 %v5221_v42 }
 0x945   :  { %5224 = vmatpush3.bf16.msra.mxu1 %v5223_v53 }
 0x946   :  { %5226 = vmatprep.subr.bf16.mxu1 %v5225_v54 }
 0x949   :  { %5228 = vmatpush3.bf16.msra.mxu1 %v5227_v57 }
 0x94a   :  { %5230 = vmatprep.subr.bf16.mxu1 %v5229_v59 }
 0x94d   :  { %5232 = vmatpush3.bf16.msra.mxu1 %v5231_v38 }
 0x94e   :  { %5234 = vmatprep.subr.bf16.mxu1 %v5233_v2 }
 0x951   :  { %5236 = vmatpush3.bf16.msra.mxu1 %v5235_v46 }
 0x952   :  { %5237 = vmatprep.subr.bf16.mxu1 %v5660_v29 }
 0x954   :  { %4353 = vmatmul.mubr.f32.vlgmr.msra.gmra.mrb[44].mxu1 %v6299_v19 }
 0x955   :  { %5131 = vmatprep.mubr.msk.f32.mxu1 %vm5659_vm13, %v5658_v47  ;;  %5239 = vmatpush3.bf16.msra.mxu1 %v5238_v6 }
 0x956   :  { %5240 = vmatprep.subr.bf16.mxu1 %v5660_v29 }
 0x959   :  { %5242 = vmatpush3.bf16.msra.mxu1 %v5241_v50 }
 0x95a   :  { %5243 = vmatprep.subr.bf16.mxu1 %v5660_v29 }
 0x95d   :  { %5245 = vmatpush3.bf16.msra.mxu1 %v5244_v11 }
 0x95e   :  { %5246 = vmatprep.subr.bf16.mxu1 %v5660_v29 }
 0x961   :  { %5248 = vmatpush3.bf16.msra.mxu1 %v5247_v14 }
 0x962   :  { %5249 = vmatprep.subr.bf16.mxu1 %v5660_v29 }
 0x9e7   :  { %v4982_v15 = vpop.f32.mrb[40].mxu1 }
 0x9e8   :  { %v4983_v16 = vpop.f32.mrb[41].mxu1 }
 0x9e9   :  { %v4984_v61 = vadd.f32 %v4983_v16, %v4982_v15 }
 0x9eb   :  { %v4200_v20 = vadd.f32 %v4984_v61, %v4820_v17 }
 0xa07   :  { %v5001_v18 = vpop.f32.mrb[42].mxu1 }
 0xa08   :  { %v5002_v19 = vpop.f32.mrb[43].mxu1 }
 0xa09   :  { %v5003_v21 = vadd.f32 %v5002_v19, %v5001_v18 }
 0xa0b   :  { %v4238_v22 = vadd.f32 %v5003_v21, %v4200_v20 }
 0xa0d   :  { %vm4241_vm1 = vcmp.ge.f32.partialorder %v4238_v22, 0.0  ;;  %v4242_v23 = vmul.f32 0.1, %v4238_v22 }
 0xa0f   :  { %v4243_v24 = vsel %vm4241_vm1, %v4238_v22, %v4242_v23 }
 0xa10   :  { %5132 = vmatmul.mubr.msk.f32.vlgmr.msra.gmra.mrb[46].mxu1 %vm4385_vm2, %v4243_v24 }
 0xa11   :  { %5138 = vmatprep.mubr.msk.f32.mxu1 %vm5659_vm13, %v5658_v47  ;;  %5251 = vmatpush3.bf16.msra.mxu1 %v5250_v45 }
 0xa27   :  { %v5036_v3 = vpop.f32.mrb[44].mxu1 }
 0xa28   :  { %v5037_v25 = vpop.f32.mrb[45].mxu1 }
 0xa29   :  { %v5038_v28 = vadd.f32 %v5037_v25, %v5036_v3 }
 0xa2b   :  { %v4359_v60 = vsel %vm4358_vm3, %v5038_v28, -inf }
 0xa2c   :  { %4360 = vmax.xlane.f32.xlu0 %v4359_v60 }
 0xab9   :  { %v4361_v48 = vpop.xlane.xlu0 %4360 }
 0xaba   :  { %v4362_v31 = vsub.f32 %v5038_v28, %v4361_v48 }
 0xabc   :  { %v4363_v58 = vmul.f32 1.442695, %v4362_v31 }
 0xabe   :  { %5586 = vpow2.f32 %v4363_v58 }
 0xac8   :  { %v5587_v51 = vpop.eup %5586 }
 0xac9   :  { %v4365_v32 = vsel %vm4358_vm3, %v5587_v51, 0.0 }
 0xaca   :  { %4366 = vadd.xlane.f32.xlu1 %v4365_v32 }
 0xae3   :  { %v4455_v47 = vpop.f32.mrb[46].mxu1 }
 0xae4   :  { %v4456_v34 = vadd.f32 %v4854_v33, %v4455_v47  ;;  %v5133_v35 = vpop.f32.mrb[47].mxu1 }
 0xae6   :  { %v4459_v36 = vsel %vm4358_vm3, %v4456_v34, -inf }
 0xae7   :  { %4460 = vmax.xlane.f32.xlu0 %v4459_v36 }
 0xb57   :  { %v4367_v52 = vpop.xlane.xlu1 %4366 }
 0xb74   :  { %v4461_v37 = vpop.xlane.xlu0 %4460 }
 0xb75   :  { %v4462_v39 = vsub.f32 %v4456_v34, %v4461_v37 }
 0xb77   :  { %v4463_v40 = vmul.f32 1.442695, %v4462_v39 }
 0xb79   :  { %5588 = vpow2.f32 %v4463_v40 }
 0xb7a   :  { %5590 = vrcp.f32 %v4367_v52 }
 0xb83   :  { %v5589_v41 = vpop.eup %5588 }
 0xb84   :  { %v4465_v42 = vsel %vm4358_vm3, %v5589_v41, 0.0  ;;  %v5591_v54 = vpop.eup %5590 }
 0xb85   :  { %4466 = vadd.xlane.f32.xlu1 %v4465_v42  ;;  %v4369_v55 = vmul.f32 %v5591_v54, %v5587_v51 }
 0xb87   :  { %v4471_v5 = vmul.f32 0.3, %v4369_v55 }
 0xc12   :  { %v4467_v53 = vpop.xlane.xlu1 %4466 }
 0xc13   :  { %5592 = vrcp.f32 %v4467_v53 }
 0xc1d   :  { %v5593_v30 = vpop.eup %5592 }
 0xc1e   :  { %v4469_v56 = vmul.f32 %v5593_v30, %v5589_v41 }
 0xc20   :  { %v4470_v57 = vmul.f32 0.7, %v4469_v56 }
 0xc22   :  { %v4472_v59 = vadd.f32 %v4471_v5, %v4470_v57 }
 0xc24   :  { %5139 = vmatmul.mubr.msk.f32.vlgmr.msra.gmra.mrb[48].mxu1 %vm1704_vm9, %v4472_v59 }
 0xcf7   :  { %v4544_v62 = vpop.f32.mrb[48].mxu1 }
 0xcf8   :  { %v5140_v63 = vpop.f32.mrb[49].mxu1  ;;  %v4549_v0 = vsel %vm4548_vm4, %v4544_v62, -inf }
 0xcf9   :  { %4550 = vmax.xlane.f32.xlu0 %v4549_v0 }
 0xd86   :  { %v4551_v1 = vpop.xlane.xlu0 %4550 }
 0xd87   :  { %v4552_v38 = vsub.f32 %v4544_v62, %v4551_v1 }
 0xd89   :  { %v4553_v2 = vmul.f32 1.442695, %v4552_v38 }
 0xd8b   :  { %5594 = vpow2.f32 %v4553_v2 }
 0xd95   :  { %v5595_v7 = vpop.eup %5594 }
 0xd96   :  { %v4555_v4 = vsel %vm4548_vm4, %v5595_v7, 0.0 }
 0xd97   :  { %4556 = vadd.xlane.f32.xlu1 %v4555_v4 }
 0xe24   :  { %v4557_v46 = vpop.xlane.xlu1 %4556 }
 0xe25   :  { %5596 = vrcp.f32 %v4557_v46 }
 0xe2f   :  { %v5597_v49 = vpop.eup %5596 }
 0xe30   :  { %v4559_v26 = vmul.f32 %v5597_v49, %v5595_v7 }
 0xe32   :  { %4560 = vst.msk [vmem:[#allocation7] sm:$0x3] %vm4548_vm4, %v4559_v26 }
 0xe33   :  { %5631 = shalt.err (!%p5628_p12)
}
 0xe34   :  { %s5632_s21 = scalar_lea.hbm %s6466_s18, 32 }
 0xe35   :  { %p5633_p13 = scmp.ne.s32.totalorder %s6466_s18, %s5632_s21  ;;  %p5636_p0 = scmp.lt.u32.totalorder %s5632_s21, %s6466_s18 }
 0xe37   :  { %p5638_p1 = pnand %p5636_p0, %p5633_p13 }
 0xe39   :  { %5641 = shalt.err (!%p5638_p1)
}
 0xe3a   :  { %4570 = dma.vmem_to_hbm [thread:$0]  %s4568_s19, 32, %s6466_s18, [#allocation6]  }
 0xe3b   :  { %5646 = dma.done.wait [#allocation6], 32  }
 0xe3c   :  { %5647 = vsyncadd [#allocation6], 4294967264 }
 0xe3d   :  { %4574 = vsyncpa [#allocation5], 1 }
 0xe3e   :  { %4575 = vsyncpa [#allocation6], 1 }
 0xe3f   :  { %4576 = vsyncmov [#allocation3] }
 0xe42   :  { %s4577_s25 = vpop.sfrf %4576 }
 0xe43   :  { %p4857_p2 = scmp.ne.s32.totalorder %s4577_s25, 0 }
 0xe45   :  { %4581 = shalt.err (%p4857_p2)  }

</bundles_post_ra>
